<compile_context>
chip_gen: v7x
topology: tpu7x:2x2x1
jax: 0.10.0
libtpu: 0.0.40
codegen_flags: <defaults>
</compile_context>

<pallas_src>
import functools
import math

import jax
import jax.numpy as jnp
from jax import lax
from jax.experimental import pallas as pl
from jax.experimental.pallas import tpu as pltpu  # noqa: F401  (kept for TPU-specific tuning hooks)


# ----------------------------------------------------------------------------
# Fused forward kernel: single invocation (no grid), everything VMEM-resident.
# ----------------------------------------------------------------------------
def _fused_forward_kernel(
    x_ref, bias_ref, inten_ref, qmask_ref,
    wqkv_ref, bqkv_ref, wo_ref, bo_ref, g1_ref, be1_ref,
    w1_ref, b1_ref, w2_ref, b2_ref, g2_ref, be2_ref,
    wc_ref, bc_ref, hw_ref, hb_ref,
    o_ref, *, n_head, seq_len, eps):
    M, D = x_ref.shape                      # M = B*L rows (batch folded), D lanes
    n_layers = wqkv_ref.shape[0]
    n_conv = wc_ref.shape[0] // 2
    dk = D // n_head
    B = M // seq_len
    scale = 1.0 / math.sqrt(dk)

    x = x_ref[...]                          # (M, D)  f32
    bias = bias_ref[...]                    # (n_head*M, M) f32: key-pad + block-diag mask
    inten = inten_ref[...]                  # (M, 1)  f32 key intensities (folded layout)
    qmask = qmask_ref[...]                  # (n_head*M, D) f32 per-head column selector

    def layer_norm(y, g, b):
        mu = jnp.mean(y, axis=-1, keepdims=True)
        var = jnp.mean(jnp.square(y - mu), axis=-1, keepdims=True)
        return (y - mu) * lax.rsqrt(var + eps) * g + b

    def bdot(a, w_bf16):                    # bf16 MXU matmul, f32 accumulation
        return jnp.dot(a.astype(jnp.bfloat16), w_bf16,
                       preferred_element_type=jnp.float32)

    # ---------------- encoder layers (post-LN MHA + FFN) ---------------------
    for li in range(n_layers):
        qkv = bdot(x, wqkv_ref[li]) + bqkv_ref[li]          # (M, 3D) f32
        q = qkv[:, :D]
        k = qkv[:, D:2 * D].astype(jnp.bfloat16)
        v = (qkv[:, 2 * D:] * inten).astype(jnp.bfloat16)   # intensity folded into V

        # All heads' scores with ONE matmul: row block h holds q_h . k_h^T.
        q_stack = (jnp.concatenate([q] * n_head, axis=0) * qmask).astype(jnp.bfloat16)
        s = lax.dot_general(q_stack, k, (((1,), (1,)), ((), ())),
                            preferred_element_type=jnp.float32) * scale + bias
        s = s - jnp.max(s, axis=-1, keepdims=True)
        p = jnp.exp(s)
        p = p * pl.reciprocal(jnp.sum(p, axis=-1, keepdims=True), approx=True)
        p = p.astype(jnp.bfloat16)                           # (n_head*M, M)

        heads = [jnp.dot(p[h * M:(h + 1) * M, :], v[:, h * dk:(h + 1) * dk],
                         preferred_element_type=jnp.float32)
                 for h in range(n_head)]
        attn = jnp.concatenate(heads, axis=-1)               # (M, D)

        y = bdot(attn, wo_ref[li]) + bo_ref[li]
        x = layer_norm(x + y, g1_ref[li], be1_ref[li])
        h1 = jnp.maximum(bdot(x, w1_ref[li]) + b1_ref[li], 0.0)
        ff = bdot(h1, w2_ref[li]) + b2_ref[li]
        x = layer_norm(x + ff, g2_ref[li], be2_ref[li])

    # ------------- conv stack: im2col matmul, channels padded to D lanes -----
    cur_len = seq_len
    for ci in range(n_conv):
        rows_n = B * cur_len
        rows = lax.broadcasted_iota(jnp.int32, (rows_n, 1), 0)
        first = rows == 0                                    # first row of each batch seg
        last = rows == cur_len - 1                           # last row of each batch seg
        for bi in range(1, B):
            first = jnp.logical_or(first, rows == bi * cur_len)
            last = jnp.logical_or(last, rows == (bi + 1) * cur_len - 1)
        zero_row = jnp.zeros((1, D), jnp.float32)

        for j in range(2):                  # conv1(+ReLU), conv2(+ReLU)
            w = wc_ref[2 * ci + j]          # (3*D, D) bf16, im2col layout
            bcj = bc_ref[2 * ci + j]        # (1, D)  f32
            x_prev = jnp.where(first, 0.0,
                               jnp.concatenate([zero_row, x[:rows_n - 1]], axis=0))
            x_next = jnp.where(last, 0.0,
                               jnp.concatenate([x[1:], zero_row], axis=0))
            cat = jnp.concatenate([x_prev, x, x_next], axis=-1)   # (rows_n, 3D)
            x = jnp.maximum(bdot(cat, w) + bcj, 0.0)

        # MaxPool1d(2): VPU max with shifted-up rows, then ONE even-row selection matmul.
        x_up = jnp.concatenate([x[1:], x[rows_n - 1:]], axis=0)
        m = jnp.maximum(x, x_up)
        half = rows_n // 2
        r2 = lax.broadcasted_iota(jnp.int32, (half, rows_n), 0)
        c2 = lax.broadcasted_iota(jnp.int32, (half, rows_n), 1)
        sel_e = (c2 == 2 * r2).astype(jnp.float32)
        x = jnp.dot(sel_e, m, preferred_element_type=jnp.float32)  # keep pooled vals exact
        cur_len //= 2

    # ------------- head: Linear(Lf, 1) over length + tanh, batch un-folded ---
    # hw_ref is a precomputed (B, B*Lf) block-diagonal weight matrix.
    out = jnp.dot(hw_ref[...], x, preferred_element_type=jnp.float32) + hb_ref[...]
    o_ref[...] = jnp.tanh(out)              # (B, D) lane-dense; real channels sliced in wrapper


# ----------------------------------------------------------------------------
# Wrapper: embedding gather + constant/weight packing + single fused pallas_call
# ----------------------------------------------------------------------------
def attention_conv_forward(ids, intensity, params, cfg):
    B, L = ids.shape
    D = cfg["d_model"]
    H = cfg["n_head"]
    n_conv = cfg["n_conv_layers"]
    c_final = D - 64 * n_conv
    Lf = L >> n_conv
    M = B * L
    dk = D // H
    assert D % 128 == 0, "conv lane padding assumes d_model multiple of 128"
    bf = jnp.bfloat16

    # token embedding (padding row is zero) + dropout (identity at inference), batch folded
    x = jnp.take(params["token_emb"], ids, axis=0).reshape(M, D).astype(jnp.float32)

    # additive attention bias: key-padding + block-diagonal (no cross-batch attention),
    # tiled over heads so the kernel adds it once to the stacked (H*M, M) scores.
    key_valid = (ids != cfg["pad_idx"]).reshape(1, M)
    same_batch = (jnp.arange(M)[:, None] // L) == (jnp.arange(M)[None, :] // L)
    bias = jnp.where(same_batch & key_valid, 0.0, -1e9).astype(jnp.float32)   # (M, M)
    bias_all = jnp.tile(bias, (H, 1))                                         # (H*M, M)

    inten_col = intensity.reshape(M, 1).astype(jnp.float32)

    # per-head column selector for the stacked-Q trick: row block h keeps cols of head h
    qmask = ((jnp.arange(H * M)[:, None] // M) ==
             (jnp.arange(D)[None, :] // dk)).astype(jnp.float32)              # (H*M, D)

    # --- pack encoder weights: stacked over layers, QKV fused to (D, 3D), bf16 matmuls ---
    layers = params["layers"]
    wqkv = jnp.stack([jnp.concatenate([p["wq"], p["wk"], p["wv"]], axis=1)
                      for p in layers]).astype(bf)
    bqkv = jnp.stack([jnp.concatenate([p["bq"], p["bk"], p["bv"]])[None, :] for p in layers])
    wo = jnp.stack([p["wo"] for p in layers]).astype(bf)
    bo = jnp.stack([p["bo"][None, :] for p in layers])
    g1 = jnp.stack([p["ln1_g"][None, :] for p in layers])
    be1 = jnp.stack([p["ln1_b"][None, :] for p in layers])
    w1 = jnp.stack([p["w1"] for p in layers]).astype(bf)
    b1 = jnp.stack([p["b1"][None, :] for p in layers])
    w2 = jnp.stack([p["w2"] for p in layers]).astype(bf)
    b2 = jnp.stack([p["b2"][None, :] for p in layers])
    g2 = jnp.stack([p["ln2_g"][None, :] for p in layers])
    be2 = jnp.stack([p["ln2_b"][None, :] for p in layers])

    # --- conv weights -> im2col layout, channels zero-padded to D (=128) lanes ---
    def pack_conv(w, b):                         # w: (3, Cin, Cout), b: (Cout,)
        K, Cin, Cout = w.shape
        wp = jnp.zeros((K, D, D), jnp.float32).at[:, :Cin, :Cout].set(w)
        bp = jnp.zeros((1, D), jnp.float32).at[0, :Cout].set(b)
        return wp.reshape(K * D, D), bp

    wc_l, bc_l = [], []
    for cp in params["convs"]:
        for wk_, bk_ in ((cp["w1"], cp["b1"]), (cp["w2"], cp["b2"])):
            wp, bp = pack_conv(wk_, bk_)
            wc_l.append(wp)
            bc_l.append(bp)
    wc = jnp.stack(wc_l).astype(bf)              # (2*n_conv, 3*D, D)
    bc = jnp.stack(bc_l)                         # (2*n_conv, 1, D)

    # head: Linear(Lf, 1) over the length axis -> block-diagonal (B, B*Lf) weight matrix
    hw_vec = params["out_w"].reshape(Lf).astype(jnp.float32)
    HW = jnp.kron(jnp.eye(B, dtype=jnp.float32), hw_vec[None, :])             # (B, B*Lf)
    hb = params["out_b"].reshape(1, 1).astype(jnp.float32)

    kernel = functools.partial(_fused_forward_kernel, n_head=H, seq_len=L, eps=1e-5)
    out = pl.pallas_call(
        kernel,
        out_shape=jax.ShapeDtypeStruct((B, D), jnp.float32),
    )(x, bias_all, inten_col, qmask,
      wqkv, bqkv, wo, bo, g1, be1, w1, b1, w2, b2, g2, be2, wc, bc, HW, hb)

    return out[:, :c_final]                      # (B, C_final)


# ----------------------------------------------------------------------------
# Deterministic parameter init (shapes from AttentionConv.__init__)
# ----------------------------------------------------------------------------
def init_params(key, cfg):
    D, F = cfg["d_model"], cfg["ffn_hidden"]
    keys = iter(jax.random.split(key, 32))

    def lin(k, fi, fo):
        k1, k2 = jax.random.split(k)
        w = jax.random.normal(k1, (fi, fo), jnp.float32) / math.sqrt(fi)
        b = jax.random.normal(k2, (fo,), jnp.float32) * 0.01
        return w, b

    emb = jax.random.normal(next(keys), (cfg["voc_size"], D), jnp.float32) * 0.02
    emb = emb.at[cfg["pad_idx"]].set(0.0)

    layers = []
    for _ in range(cfg["n_enc_layers"]):
        lk = jax.random.split(next(keys), 6)
        wq, bq = lin(lk[0], D, D)
        wk, bk = lin(lk[1], D, D)
        wv, bv = lin(lk[2], D, D)
        wo, bo = lin(lk[3], D, D)
        w1, b1 = lin(lk[4], D, F)
        w2, b2 = lin(lk[5], F, D)
        layers.append(dict(
            wq=wq, bq=bq, wk=wk, bk=bk, wv=wv, bv=bv, wo=wo, bo=bo,
            ln1_g=jnp.ones((D,), jnp.float32), ln1_b=jnp.zeros((D,), jnp.float32),
            w1=w1, b1=b1, w2=w2, b2=b2,
            ln2_g=jnp.ones((D,), jnp.float32), ln2_b=jnp.zeros((D,), jnp.float32)))

    convs = []
    for i in range(cfg["n_conv_layers"]):
        cin = D - 64 * i
        chid = D - 32 * (i + 1)
        cout = D - 64 * (i + 1)
        ck = jax.random.split(next(keys), 4)
        convs.append(dict(
            w1=jax.random.normal(ck[0], (3, cin, chid), jnp.float32) / math.sqrt(3 * cin),
            b1=jax.random.normal(ck[1], (chid,), jnp.float32) * 0.01,
            w2=jax.random.normal(ck[2], (3, chid, cout), jnp.float32) / math.sqrt(3 * chid),
            b2=jax.random.normal(ck[3], (cout,), jnp.float32) * 0.01))

    Lf = cfg["max_num_peaks"] >> cfg["n_conv_layers"]
    out_w = jax.random.normal(next(keys), (Lf, 1), jnp.float32) / math.sqrt(Lf)
    out_b = jnp.zeros((1, 1), jnp.float32)
    return dict(token_emb=emb, layers=layers, convs=convs, out_w=out_w, out_b=out_b)


# ----------------------------------------------------------------------------
if __name__ == "__main__":
    cfg = dict(voc_size=50, d_model=128, n_head=4, ffn_idden=None, ffn_hidden=256,
               n_enc_layers=2, n_conv_layers=1, max_num_peaks=16, pad_idx=0)

    key = jax.random.PRNGKey(0)
    k_ids, k_int, k_par = jax.random.split(key, 3)
    B, L = 2, cfg["max_num_peaks"]

    # already-padded token ids + intensities (equivalent of batch_add_pad)
    ids = jax.random.randint(k_ids, (B, L), 1, cfg["voc_size"], dtype=jnp.int32)
    lengths = jnp.array([L, 11], dtype=jnp.int32)
    valid = jnp.arange(L)[None, :] < lengths[:, None]
    ids = jnp.where(valid, ids, cfg["pad_idx"])
    intensity = jax.random.uniform(k_int, (B, L), jnp.float32)
    intensity = jnp.where(valid, intensity, 0.0)

    params = init_params(k_par, cfg)

    fwd = jax.jit(functools.partial(attention_conv_forward, cfg=cfg))
    out = jax.block_until_ready(fwd(ids, intensity, params))

    assert out.shape == (B, cfg["d_model"] - 64 * cfg["n_conv_layers"]), out.shape
    assert bool(jnp.all(jnp.isfinite(out)))
    print("KERNEL_OK")
</pallas_src>

<mosaic_0001>
module attributes {stable_mosaic.version = 11 : i64} {
  func.func @_fused_forward_kernel(%arg0: memref<32x128xf32, #tpu.memory_space<vmem>>, %arg1: memref<128x32xf32, #tpu.memory_space<vmem>>, %arg2: memref<32x1xf32, #tpu.memory_space<vmem>>, %arg3: memref<128x128xf32, #tpu.memory_space<vmem>>, %arg4: memref<2x128x384xbf16, #tpu.memory_space<vmem>>, %arg5: memref<2x1x384xf32, #tpu.memory_space<vmem>>, %arg6: memref<2x128x128xbf16, #tpu.memory_space<vmem>>, %arg7: memref<2x1x128xf32, #tpu.memory_space<vmem>>, %arg8: memref<2x1x128xf32, #tpu.memory_space<vmem>>, %arg9: memref<2x1x128xf32, #tpu.memory_space<vmem>>, %arg10: memref<2x128x256xbf16, #tpu.memory_space<vmem>>, %arg11: memref<2x1x256xf32, #tpu.memory_space<vmem>>, %arg12: memref<2x256x128xbf16, #tpu.memory_space<vmem>>, %arg13: memref<2x1x128xf32, #tpu.memory_space<vmem>>, %arg14: memref<2x1x128xf32, #tpu.memory_space<vmem>>, %arg15: memref<2x1x128xf32, #tpu.memory_space<vmem>>, %arg16: memref<2x384x128xbf16, #tpu.memory_space<vmem>>, %arg17: memref<2x1x128xf32, #tpu.memory_space<vmem>>, %arg18: memref<2x16xf32, #tpu.memory_space<vmem>>, %arg19: memref<1x1xf32, #tpu.memory_space<vmem>>, %arg20: memref<2x128xf32, #tpu.memory_space<vmem>>) attributes {dimension_semantics = [], scalar_prefetch = 0 : i64, scratch_operands = 0 : i64, tpu.core_type = #tpu.core_type<tc>} {
    %c0 = arith.constant 0 : index
    %c0_0 = arith.constant 0 : index
    %0 = vector.load %arg0[%c0, %c0_0] : memref<32x128xf32, #tpu.memory_space<vmem>>, vector<32x128xf32>
    %c0_1 = arith.constant 0 : index
    %c0_2 = arith.constant 0 : index
    %1 = vector.load %arg1[%c0_1, %c0_2] : memref<128x32xf32, #tpu.memory_space<vmem>>, vector<128x32xf32>
    %c0_3 = arith.constant 0 : index
    %c0_4 = arith.constant 0 : index
    %2 = vector.load %arg2[%c0_3, %c0_4] : memref<32x1xf32, #tpu.memory_space<vmem>>, vector<32x1xf32>
    %c0_5 = arith.constant 0 : index
    %c0_6 = arith.constant 0 : index
    %3 = vector.load %arg3[%c0_5, %c0_6] : memref<128x128xf32, #tpu.memory_space<vmem>>, vector<128x128xf32>
    %c0_7 = arith.constant 0 : index
    %c0_8 = arith.constant 0 : index
    %c0_9 = arith.constant 0 : index
    %4 = vector.load %arg4[%c0_7, %c0_8, %c0_9] : memref<2x128x384xbf16, #tpu.memory_space<vmem>>, vector<1x128x384xbf16>
    %5 = vector.shape_cast %4 : vector<1x128x384xbf16> to vector<128x384xbf16>
    %6 = arith.truncf %0 : vector<32x128xf32> to vector<32x128xbf16>
    %cst = arith.constant dense<0.000000e+00> : vector<32x384xf32>
    %7 = tpu.matmul %6, %5, %cst {dimension_numbers = #tpu.dot_dimension_numbers<[1], [0], [0], [1], [0, 0, 1, 1], [], []>} : vector<32x128xbf16>, vector<128x384xbf16>, vector<32x384xf32> -> vector<32x384xf32>
    %c0_10 = arith.constant 0 : index
    %c0_11 = arith.constant 0 : index
    %c0_12 = arith.constant 0 : index
    %8 = vector.load %arg5[%c0_10, %c0_11, %c0_12] : memref<2x1x384xf32, #tpu.memory_space<vmem>>, vector<1x1x384xf32>
    %9 = vector.shape_cast %8 : vector<1x1x384xf32> to vector<1x384xf32>
    %10 = vector.broadcast %9 : vector<1x384xf32> to vector<32x384xf32>
    %11 = arith.addf %7, %10 : vector<32x384xf32>
    %12 = vector.extract_strided_slice %11 {offsets = [0, 0], sizes = [32, 128], strides = [1, 1]} : vector<32x384xf32> to vector<32x128xf32>
    %13 = vector.extract_strided_slice %11 {offsets = [0, 128], sizes = [32, 128], strides = [1, 1]} : vector<32x384xf32> to vector<32x128xf32>
    %14 = arith.truncf %13 : vector<32x128xf32> to vector<32x128xbf16>
    %15 = vector.extract_strided_slice %11 {offsets = [0, 256], sizes = [32, 128], strides = [1, 1]} : vector<32x384xf32> to vector<32x128xf32>
    %16 = vector.broadcast %2 : vector<32x1xf32> to vector<32x128xf32>
    %17 = arith.mulf %15, %16 : vector<32x128xf32>
    %18 = arith.truncf %17 : vector<32x128xf32> to vector<32x128xbf16>
    %19 = tpu.concatenate %12, %12, %12, %12 in 0 : vector<32x128xf32>, vector<32x128xf32>, vector<32x128xf32>, vector<32x128xf32> -> vector<128x128xf32>
    %20 = arith.mulf %19, %3 : vector<128x128xf32>
    %21 = arith.truncf %20 : vector<128x128xf32> to vector<128x128xbf16>
    %cst_13 = arith.constant dense<0.000000e+00> : vector<128x32xf32>
    %22 = tpu.matmul %21, %14, %cst_13 {dimension_numbers = #tpu.dot_dimension_numbers<[1], [1], [0], [0], [0, 0, 1, 0], [], []>} : vector<128x128xbf16>, vector<32x128xbf16>, vector<128x32xf32> -> vector<128x32xf32>
    %cst_14 = arith.constant 0.176776692 : f32
    %23 = vector.broadcast %cst_14 : f32 to vector<128x32xf32>
    %24 = arith.mulf %22, %23 : vector<128x32xf32>
    %25 = arith.addf %24, %1 : vector<128x32xf32>
    %cst_15 = arith.constant dense<0xFF800000> : vector<128xf32>
    %26 = vector.multi_reduction <maximumf>, %25, %cst_15 [1] : vector<128x32xf32> to vector<128xf32>
    %27 = vector.shape_cast %26 : vector<128xf32> to vector<128x1xf32>
    %28 = vector.broadcast %27 : vector<128x1xf32> to vector<128x32xf32>
    %29 = arith.subf %25, %28 : vector<128x32xf32>
    %30 = math.exp %29 : vector<128x32xf32>
    %cst_16 = arith.constant dense<0.000000e+00> : vector<128xf32>
    %31 = vector.multi_reduction <add>, %30, %cst_16 [1] : vector<128x32xf32> to vector<128xf32>
    %32 = vector.shape_cast %31 : vector<128xf32> to vector<128x1xf32>
    %33 = tpu.reciprocal %32 {approx = true} : vector<128x1xf32> -> vector<128x1xf32>
    %34 = vector.broadcast %33 : vector<128x1xf32> to vector<128x32xf32>
    %35 = arith.mulf %30, %34 : vector<128x32xf32>
    %36 = arith.truncf %35 : vector<128x32xf32> to vector<128x32xbf16>
    %37 = vector.extract_strided_slice %36 {offsets = [0, 0], sizes = [32, 32], strides = [1, 1]} : vector<128x32xbf16> to vector<32x32xbf16>
    %38 = vector.extract_strided_slice %18 {offsets = [0, 0], sizes = [32, 32], strides = [1, 1]} : vector<32x128xbf16> to vector<32x32xbf16>
    %cst_17 = arith.constant dense<0.000000e+00> : vector<32x32xf32>
    %39 = tpu.matmul %37, %38, %cst_17 {dimension_numbers = #tpu.dot_dimension_numbers<[1], [0], [0], [1], [0, 0, 1, 1], [], []>} : vector<32x32xbf16>, vector<32x32xbf16>, vector<32x32xf32> -> vector<32x32xf32>
    %40 = vector.extract_strided_slice %36 {offsets = [32, 0], sizes = [32, 32], strides = [1, 1]} : vector<128x32xbf16> to vector<32x32xbf16>
    %41 = vector.extract_strided_slice %18 {offsets = [0, 32], sizes = [32, 32], strides = [1, 1]} : vector<32x128xbf16> to vector<32x32xbf16>
    %cst_18 = arith.constant dense<0.000000e+00> : vector<32x32xf32>
    %42 = tpu.matmul %40, %41, %cst_18 {dimension_numbers = #tpu.dot_dimension_numbers<[1], [0], [0], [1], [0, 0, 1, 1], [], []>} : vector<32x32xbf16>, vector<32x32xbf16>, vector<32x32xf32> -> vector<32x32xf32>
    %43 = vector.extract_strided_slice %36 {offsets = [64, 0], sizes = [32, 32], strides = [1, 1]} : vector<128x32xbf16> to vector<32x32xbf16>
    %44 = vector.extract_strided_slice %18 {offsets = [0, 64], sizes = [32, 32], strides = [1, 1]} : vector<32x128xbf16> to vector<32x32xbf16>
    %cst_19 = arith.constant dense<0.000000e+00> : vector<32x32xf32>
    %45 = tpu.matmul %43, %44, %cst_19 {dimension_numbers = #tpu.dot_dimension_numbers<[1], [0], [0], [1], [0, 0, 1, 1], [], []>} : vector<32x32xbf16>, vector<32x32xbf16>, vector<32x32xf32> -> vector<32x32xf32>
    %46 = vector.extract_strided_slice %36 {offsets = [96, 0], sizes = [32, 32], strides = [1, 1]} : vector<128x32xbf16> to vector<32x32xbf16>
    %47 = vector.extract_strided_slice %18 {offsets = [0, 96], sizes = [32, 32], strides = [1, 1]} : vector<32x128xbf16> to vector<32x32xbf16>
    %cst_20 = arith.constant dense<0.000000e+00> : vector<32x32xf32>
    %48 = tpu.matmul %46, %47, %cst_20 {dimension_numbers = #tpu.dot_dimension_numbers<[1], [0], [0], [1], [0, 0, 1, 1], [], []>} : vector<32x32xbf16>, vector<32x32xbf16>, vector<32x32xf32> -> vector<32x32xf32>
    %49 = tpu.concatenate %39, %42, %45, %48 in 1 : vector<32x32xf32>, vector<32x32xf32>, vector<32x32xf32>, vector<32x32xf32> -> vector<32x128xf32>
    %c0_21 = arith.constant 0 : index
    %c0_22 = arith.constant 0 : index
    %c0_23 = arith.constant 0 : index
    %50 = vector.load %arg6[%c0_21, %c0_22, %c0_23] : memref<2x128x128xbf16, #tpu.memory_space<vmem>>, vector<1x128x128xbf16>
    %51 = vector.shape_cast %50 : vector<1x128x128xbf16> to vector<128x128xbf16>
    %52 = arith.truncf %49 : vector<32x128xf32> to vector<32x128xbf16>
    %cst_24 = arith.constant dense<0.000000e+00> : vector<32x128xf32>
    %53 = tpu.matmul %52, %51, %cst_24 {dimension_numbers = #tpu.dot_dimension_numbers<[1], [0], [0], [1], [0, 0, 1, 1], [], []>} : vector<32x128xbf16>, vector<128x128xbf16>, vector<32x128xf32> -> vector<32x128xf32>
    %c0_25 = arith.constant 0 : index
    %c0_26 = arith.constant 0 : index
    %c0_27 = arith.constant 0 : index
    %54 = vector.load %arg7[%c0_25, %c0_26, %c0_27] : memref<2x1x128xf32, #tpu.memory_space<vmem>>, vector<1x1x128xf32>
    %55 = vector.shape_cast %54 : vector<1x1x128xf32> to vector<1x128xf32>
    %56 = vector.broadcast %55 : vector<1x128xf32> to vector<32x128xf32>
    %57 = arith.addf %53, %56 : vector<32x128xf32>
    %58 = arith.addf %0, %57 : vector<32x128xf32>
    %c0_28 = arith.constant 0 : index
    %c0_29 = arith.constant 0 : index
    %c0_30 = arith.constant 0 : index
    %59 = vector.load %arg8[%c0_28, %c0_29, %c0_30] : memref<2x1x128xf32, #tpu.memory_space<vmem>>, vector<1x1x128xf32>
    %60 = vector.shape_cast %59 : vector<1x1x128xf32> to vector<1x128xf32>
    %c0_31 = arith.constant 0 : index
    %c0_32 = arith.constant 0 : index
    %c0_33 = arith.constant 0 : index
    %61 = vector.load %arg9[%c0_31, %c0_32, %c0_33] : memref<2x1x128xf32, #tpu.memory_space<vmem>>, vector<1x1x128xf32>
    %62 = vector.shape_cast %61 : vector<1x1x128xf32> to vector<1x128xf32>
    %cst_34 = arith.constant dense<0.000000e+00> : vector<32xf32>
    %63 = vector.multi_reduction <add>, %58, %cst_34 [1] : vector<32x128xf32> to vector<32xf32>
    %64 = vector.shape_cast %63 : vector<32xf32> to vector<32x1xf32>
    %cst_35 = arith.constant 1.280000e+02 : f32
    %65 = vector.broadcast %cst_35 : f32 to vector<32x1xf32>
    %66 = arith.divf %64, %65 : vector<32x1xf32>
    %67 = vector.broadcast %66 : vector<32x1xf32> to vector<32x128xf32>
    %68 = arith.subf %58, %67 : vector<32x128xf32>
    %69 = arith.mulf %68, %68 : vector<32x128xf32>
    %cst_36 = arith.constant dense<0.000000e+00> : vector<32xf32>
    %70 = vector.multi_reduction <add>, %69, %cst_36 [1] : vector<32x128xf32> to vector<32xf32>
    %71 = vector.shape_cast %70 : vector<32xf32> to vector<32x1xf32>
    %cst_37 = arith.constant 1.280000e+02 : f32
    %72 = vector.broadcast %cst_37 : f32 to vector<32x1xf32>
    %73 = arith.divf %71, %72 : vector<32x1xf32>
    %74 = vector.broadcast %66 : vector<32x1xf32> to vector<32x128xf32>
    %75 = arith.subf %58, %74 : vector<32x128xf32>
    %cst_38 = arith.constant 9.99999974E-6 : f32
    %76 = vector.broadcast %cst_38 : f32 to vector<32x1xf32>
    %77 = arith.addf %73, %76 : vector<32x1xf32>
    %78 = math.rsqrt %77 : vector<32x1xf32>
    %79 = vector.broadcast %78 : vector<32x1xf32> to vector<32x128xf32>
    %80 = arith.mulf %75, %79 : vector<32x128xf32>
    %81 = vector.broadcast %60 : vector<1x128xf32> to vector<32x128xf32>
    %82 = arith.mulf %80, %81 : vector<32x128xf32>
    %83 = vector.broadcast %62 : vector<1x128xf32> to vector<32x128xf32>
    %84 = arith.addf %82, %83 : vector<32x128xf32>
    %c0_39 = arith.constant 0 : index
    %c0_40 = arith.constant 0 : index
    %c0_41 = arith.constant 0 : index
    %85 = vector.load %arg10[%c0_39, %c0_40, %c0_41] : memref<2x128x256xbf16, #tpu.memory_space<vmem>>, vector<1x128x256xbf16>
    %86 = vector.shape_cast %85 : vector<1x128x256xbf16> to vector<128x256xbf16>
    %87 = arith.truncf %84 : vector<32x128xf32> to vector<32x128xbf16>
    %cst_42 = arith.constant dense<0.000000e+00> : vector<32x256xf32>
    %88 = tpu.matmul %87, %86, %cst_42 {dimension_numbers = #tpu.dot_dimension_numbers<[1], [0], [0], [1], [0, 0, 1, 1], [], []>} : vector<32x128xbf16>, vector<128x256xbf16>, vector<32x256xf32> -> vector<32x256xf32>
    %c0_43 = arith.constant 0 : index
    %c0_44 = arith.constant 0 : index
    %c0_45 = arith.constant 0 : index
    %89 = vector.load %arg11[%c0_43, %c0_44, %c0_45] : memref<2x1x256xf32, #tpu.memory_space<vmem>>, vector<1x1x256xf32>
    %90 = vector.shape_cast %89 : vector<1x1x256xf32> to vector<1x256xf32>
    %91 = vector.broadcast %90 : vector<1x256xf32> to vector<32x256xf32>
    %92 = arith.addf %88, %91 : vector<32x256xf32>
    %cst_46 = arith.constant 0.000000e+00 : f32
    %93 = vector.broadcast %cst_46 : f32 to vector<32x256xf32>
    %94 = arith.maximumf %92, %93 : vector<32x256xf32>
    %c0_47 = arith.constant 0 : index
    %c0_48 = arith.constant 0 : index
    %c0_49 = arith.constant 0 : index
    %95 = vector.load %arg12[%c0_47, %c0_48, %c0_49] : memref<2x256x128xbf16, #tpu.memory_space<vmem>>, vector<1x256x128xbf16>
    %96 = vector.shape_cast %95 : vector<1x256x128xbf16> to vector<256x128xbf16>
    %97 = arith.truncf %94 : vector<32x256xf32> to vector<32x256xbf16>
    %cst_50 = arith.constant dense<0.000000e+00> : vector<32x128xf32>
    %98 = tpu.matmul %97, %96, %cst_50 {dimension_numbers = #tpu.dot_dimension_numbers<[1], [0], [0], [1], [0, 0, 1, 1], [], []>} : vector<32x256xbf16>, vector<256x128xbf16>, vector<32x128xf32> -> vector<32x128xf32>
    %c0_51 = arith.constant 0 : index
    %c0_52 = arith.constant 0 : index
    %c0_53 = arith.constant 0 : index
    %99 = vector.load %arg13[%c0_51, %c0_52, %c0_53] : memref<2x1x128xf32, #tpu.memory_space<vmem>>, vector<1x1x128xf32>
    %100 = vector.shape_cast %99 : vector<1x1x128xf32> to vector<1x128xf32>
    %101 = vector.broadcast %100 : vector<1x128xf32> to vector<32x128xf32>
    %102 = arith.addf %98, %101 : vector<32x128xf32>
    %103 = arith.addf %84, %102 : vector<32x128xf32>
    %c0_54 = arith.constant 0 : index
    %c0_55 = arith.constant 0 : index
    %c0_56 = arith.constant 0 : index
    %104 = vector.load %arg14[%c0_54, %c0_55, %c0_56] : memref<2x1x128xf32, #tpu.memory_space<vmem>>, vector<1x1x128xf32>
    %105 = vector.shape_cast %104 : vector<1x1x128xf32> to vector<1x128xf32>
    %c0_57 = arith.constant 0 : index
    %c0_58 = arith.constant 0 : index
    %c0_59 = arith.constant 0 : index
    %106 = vector.load %arg15[%c0_57, %c0_58, %c0_59] : memref<2x1x128xf32, #tpu.memory_space<vmem>>, vector<1x1x128xf32>
    %107 = vector.shape_cast %106 : vector<1x1x128xf32> to vector<1x128xf32>
    %cst_60 = arith.constant dense<0.000000e+00> : vector<32xf32>
    %108 = vector.multi_reduction <add>, %103, %cst_60 [1] : vector<32x128xf32> to vector<32xf32>
    %109 = vector.shape_cast %108 : vector<32xf32> to vector<32x1xf32>
    %cst_61 = arith.constant 1.280000e+02 : f32
    %110 = vector.broadcast %cst_61 : f32 to vector<32x1xf32>
    %111 = arith.divf %109, %110 : vector<32x1xf32>
    %112 = vector.broadcast %111 : vector<32x1xf32> to vector<32x128xf32>
    %113 = arith.subf %103, %112 : vector<32x128xf32>
    %114 = arith.mulf %113, %113 : vector<32x128xf32>
    %cst_62 = arith.constant dense<0.000000e+00> : vector<32xf32>
    %115 = vector.multi_reduction <add>, %114, %cst_62 [1] : vector<32x128xf32> to vector<32xf32>
    %116 = vector.shape_cast %115 : vector<32xf32> to vector<32x1xf32>
    %cst_63 = arith.constant 1.280000e+02 : f32
    %117 = vector.broadcast %cst_63 : f32 to vector<32x1xf32>
    %118 = arith.divf %116, %117 : vector<32x1xf32>
    %119 = vector.broadcast %111 : vector<32x1xf32> to vector<32x128xf32>
    %120 = arith.subf %103, %119 : vector<32x128xf32>
    %cst_64 = arith.constant 9.99999974E-6 : f32
    %121 = vector.broadcast %cst_64 : f32 to vector<32x1xf32>
    %122 = arith.addf %118, %121 : vector<32x1xf32>
    %123 = math.rsqrt %122 : vector<32x1xf32>
    %124 = vector.broadcast %123 : vector<32x1xf32> to vector<32x128xf32>
    %125 = arith.mulf %120, %124 : vector<32x128xf32>
    %126 = vector.broadcast %105 : vector<1x128xf32> to vector<32x128xf32>
    %127 = arith.mulf %125, %126 : vector<32x128xf32>
    %128 = vector.broadcast %107 : vector<1x128xf32> to vector<32x128xf32>
    %129 = arith.addf %127, %128 : vector<32x128xf32>
    %c1 = arith.constant 1 : index
    %c0_65 = arith.constant 0 : index
    %c0_66 = arith.constant 0 : index
    %130 = vector.load %arg4[%c1, %c0_65, %c0_66] : memref<2x128x384xbf16, #tpu.memory_space<vmem>>, vector<1x128x384xbf16>
    %131 = vector.shape_cast %130 : vector<1x128x384xbf16> to vector<128x384xbf16>
    %132 = arith.truncf %129 : vector<32x128xf32> to vector<32x128xbf16>
    %cst_67 = arith.constant dense<0.000000e+00> : vector<32x384xf32>
    %133 = tpu.matmul %132, %131, %cst_67 {dimension_numbers = #tpu.dot_dimension_numbers<[1], [0], [0], [1], [0, 0, 1, 1], [], []>} : vector<32x128xbf16>, vector<128x384xbf16>, vector<32x384xf32> -> vector<32x384xf32>
    %c1_68 = arith.constant 1 : index
    %c0_69 = arith.constant 0 : index
    %c0_70 = arith.constant 0 : index
    %134 = vector.load %arg5[%c1_68, %c0_69, %c0_70] : memref<2x1x384xf32, #tpu.memory_space<vmem>>, vector<1x1x384xf32>
    %135 = vector.shape_cast %134 : vector<1x1x384xf32> to vector<1x384xf32>
    %136 = vector.broadcast %135 : vector<1x384xf32> to vector<32x384xf32>
    %137 = arith.addf %133, %136 : vector<32x384xf32>
    %138 = vector.extract_strided_slice %137 {offsets = [0, 0], sizes = [32, 128], strides = [1, 1]} : vector<32x384xf32> to vector<32x128xf32>
    %139 = vector.extract_strided_slice %137 {offsets = [0, 128], sizes = [32, 128], strides = [1, 1]} : vector<32x384xf32> to vector<32x128xf32>
    %140 = arith.truncf %139 : vector<32x128xf32> to vector<32x128xbf16>
    %141 = vector.extract_strided_slice %137 {offsets = [0, 256], sizes = [32, 128], strides = [1, 1]} : vector<32x384xf32> to vector<32x128xf32>
    %142 = vector.broadcast %2 : vector<32x1xf32> to vector<32x128xf32>
    %143 = arith.mulf %141, %142 : vector<32x128xf32>
    %144 = arith.truncf %143 : vector<32x128xf32> to vector<32x128xbf16>
    %145 = tpu.concatenate %138, %138, %138, %138 in 0 : vector<32x128xf32>, vector<32x128xf32>, vector<32x128xf32>, vector<32x128xf32> -> vector<128x128xf32>
    %146 = arith.mulf %145, %3 : vector<128x128xf32>
    %147 = arith.truncf %146 : vector<128x128xf32> to vector<128x128xbf16>
    %cst_71 = arith.constant dense<0.000000e+00> : vector<128x32xf32>
    %148 = tpu.matmul %147, %140, %cst_71 {dimension_numbers = #tpu.dot_dimension_numbers<[1], [1], [0], [0], [0, 0, 1, 0], [], []>} : vector<128x128xbf16>, vector<32x128xbf16>, vector<128x32xf32> -> vector<128x32xf32>
    %cst_72 = arith.constant 0.176776692 : f32
    %149 = vector.broadcast %cst_72 : f32 to vector<128x32xf32>
    %150 = arith.mulf %148, %149 : vector<128x32xf32>
    %151 = arith.addf %150, %1 : vector<128x32xf32>
    %cst_73 = arith.constant dense<0xFF800000> : vector<128xf32>
    %152 = vector.multi_reduction <maximumf>, %151, %cst_73 [1] : vector<128x32xf32> to vector<128xf32>
    %153 = vector.shape_cast %152 : vector<128xf32> to vector<128x1xf32>
    %154 = vector.broadcast %153 : vector<128x1xf32> to vector<128x32xf32>
    %155 = arith.subf %151, %154 : vector<128x32xf32>
    %156 = math.exp %155 : vector<128x32xf32>
    %cst_74 = arith.constant dense<0.000000e+00> : vector<128xf32>
    %157 = vector.multi_reduction <add>, %156, %cst_74 [1] : vector<128x32xf32> to vector<128xf32>
    %158 = vector.shape_cast %157 : vector<128xf32> to vector<128x1xf32>
    %159 = tpu.reciprocal %158 {approx = true} : vector<128x1xf32> -> vector<128x1xf32>
    %160 = vector.broadcast %159 : vector<128x1xf32> to vector<128x32xf32>
    %161 = arith.mulf %156, %160 : vector<128x32xf32>
    %162 = arith.truncf %161 : vector<128x32xf32> to vector<128x32xbf16>
    %163 = vector.extract_strided_slice %162 {offsets = [0, 0], sizes = [32, 32], strides = [1, 1]} : vector<128x32xbf16> to vector<32x32xbf16>
    %164 = vector.extract_strided_slice %144 {offsets = [0, 0], sizes = [32, 32], strides = [1, 1]} : vector<32x128xbf16> to vector<32x32xbf16>
    %cst_75 = arith.constant dense<0.000000e+00> : vector<32x32xf32>
    %165 = tpu.matmul %163, %164, %cst_75 {dimension_numbers = #tpu.dot_dimension_numbers<[1], [0], [0], [1], [0, 0, 1, 1], [], []>} : vector<32x32xbf16>, vector<32x32xbf16>, vector<32x32xf32> -> vector<32x32xf32>
    %166 = vector.extract_strided_slice %162 {offsets = [32, 0], sizes = [32, 32], strides = [1, 1]} : vector<128x32xbf16> to vector<32x32xbf16>
    %167 = vector.extract_strided_slice %144 {offsets = [0, 32], sizes = [32, 32], strides = [1, 1]} : vector<32x128xbf16> to vector<32x32xbf16>
    %cst_76 = arith.constant dense<0.000000e+00> : vector<32x32xf32>
    %168 = tpu.matmul %166, %167, %cst_76 {dimension_numbers = #tpu.dot_dimension_numbers<[1], [0], [0], [1], [0, 0, 1, 1], [], []>} : vector<32x32xbf16>, vector<32x32xbf16>, vector<32x32xf32> -> vector<32x32xf32>
    %169 = vector.extract_strided_slice %162 {offsets = [64, 0], sizes = [32, 32], strides = [1, 1]} : vector<128x32xbf16> to vector<32x32xbf16>
    %170 = vector.extract_strided_slice %144 {offsets = [0, 64], sizes = [32, 32], strides = [1, 1]} : vector<32x128xbf16> to vector<32x32xbf16>
    %cst_77 = arith.constant dense<0.000000e+00> : vector<32x32xf32>
    %171 = tpu.matmul %169, %170, %cst_77 {dimension_numbers = #tpu.dot_dimension_numbers<[1], [0], [0], [1], [0, 0, 1, 1], [], []>} : vector<32x32xbf16>, vector<32x32xbf16>, vector<32x32xf32> -> vector<32x32xf32>
    %172 = vector.extract_strided_slice %162 {offsets = [96, 0], sizes = [32, 32], strides = [1, 1]} : vector<128x32xbf16> to vector<32x32xbf16>
    %173 = vector.extract_strided_slice %144 {offsets = [0, 96], sizes = [32, 32], strides = [1, 1]} : vector<32x128xbf16> to vector<32x32xbf16>
    %cst_78 = arith.constant dense<0.000000e+00> : vector<32x32xf32>
    %174 = tpu.matmul %172, %173, %cst_78 {dimension_numbers = #tpu.dot_dimension_numbers<[1], [0], [0], [1], [0, 0, 1, 1], [], []>} : vector<32x32xbf16>, vector<32x32xbf16>, vector<32x32xf32> -> vector<32x32xf32>
    %175 = tpu.concatenate %165, %168, %171, %174 in 1 : vector<32x32xf32>, vector<32x32xf32>, vector<32x32xf32>, vector<32x32xf32> -> vector<32x128xf32>
    %c1_79 = arith.constant 1 : index
    %c0_80 = arith.constant 0 : index
    %c0_81 = arith.constant 0 : index
    %176 = vector.load %arg6[%c1_79, %c0_80, %c0_81] : memref<2x128x128xbf16, #tpu.memory_space<vmem>>, vector<1x128x128xbf16>
    %177 = vector.shape_cast %176 : vector<1x128x128xbf16> to vector<128x128xbf16>
    %178 = arith.truncf %175 : vector<32x128xf32> to vector<32x128xbf16>
    %cst_82 = arith.constant dense<0.000000e+00> : vector<32x128xf32>
    %179 = tpu.matmul %178, %177, %cst_82 {dimension_numbers = #tpu.dot_dimension_numbers<[1], [0], [0], [1], [0, 0, 1, 1], [], []>} : vector<32x128xbf16>, vector<128x128xbf16>, vector<32x128xf32> -> vector<32x128xf32>
    %c1_83 = arith.constant 1 : index
    %c0_84 = arith.constant 0 : index
    %c0_85 = arith.constant 0 : index
    %180 = vector.load %arg7[%c1_83, %c0_84, %c0_85] : memref<2x1x128xf32, #tpu.memory_space<vmem>>, vector<1x1x128xf32>
    %181 = vector.shape_cast %180 : vector<1x1x128xf32> to vector<1x128xf32>
    %182 = vector.broadcast %181 : vector<1x128xf32> to vector<32x128xf32>
    %183 = arith.addf %179, %182 : vector<32x128xf32>
    %184 = arith.addf %129, %183 : vector<32x128xf32>
    %c1_86 = arith.constant 1 : index
    %c0_87 = arith.constant 0 : index
    %c0_88 = arith.constant 0 : index
    %185 = vector.load %arg8[%c1_86, %c0_87, %c0_88] : memref<2x1x128xf32, #tpu.memory_space<vmem>>, vector<1x1x128xf32>
    %186 = vector.shape_cast %185 : vector<1x1x128xf32> to vector<1x128xf32>
    %c1_89 = arith.constant 1 : index
    %c0_90 = arith.constant 0 : index
    %c0_91 = arith.constant 0 : index
    %187 = vector.load %arg9[%c1_89, %c0_90, %c0_91] : memref<2x1x128xf32, #tpu.memory_space<vmem>>, vector<1x1x128xf32>
    %188 = vector.shape_cast %187 : vector<1x1x128xf32> to vector<1x128xf32>
    %cst_92 = arith.constant dense<0.000000e+00> : vector<32xf32>
    %189 = vector.multi_reduction <add>, %184, %cst_92 [1] : vector<32x128xf32> to vector<32xf32>
    %190 = vector.shape_cast %189 : vector<32xf32> to vector<32x1xf32>
    %cst_93 = arith.constant 1.280000e+02 : f32
    %191 = vector.broadcast %cst_93 : f32 to vector<32x1xf32>
    %192 = arith.divf %190, %191 : vector<32x1xf32>
    %193 = vector.broadcast %192 : vector<32x1xf32> to vector<32x128xf32>
    %194 = arith.subf %184, %193 : vector<32x128xf32>
    %195 = arith.mulf %194, %194 : vector<32x128xf32>
    %cst_94 = arith.constant dense<0.000000e+00> : vector<32xf32>
    %196 = vector.multi_reduction <add>, %195, %cst_94 [1] : vector<32x128xf32> to vector<32xf32>
    %197 = vector.shape_cast %196 : vector<32xf32> to vector<32x1xf32>
    %cst_95 = arith.constant 1.280000e+02 : f32
    %198 = vector.broadcast %cst_95 : f32 to vector<32x1xf32>
    %199 = arith.divf %197, %198 : vector<32x1xf32>
    %200 = vector.broadcast %192 : vector<32x1xf32> to vector<32x128xf32>
    %201 = arith.subf %184, %200 : vector<32x128xf32>
    %cst_96 = arith.constant 9.99999974E-6 : f32
    %202 = vector.broadcast %cst_96 : f32 to vector<32x1xf32>
    %203 = arith.addf %199, %202 : vector<32x1xf32>
    %204 = math.rsqrt %203 : vector<32x1xf32>
    %205 = vector.broadcast %204 : vector<32x1xf32> to vector<32x128xf32>
    %206 = arith.mulf %201, %205 : vector<32x128xf32>
    %207 = vector.broadcast %186 : vector<1x128xf32> to vector<32x128xf32>
    %208 = arith.mulf %206, %207 : vector<32x128xf32>
    %209 = vector.broadcast %188 : vector<1x128xf32> to vector<32x128xf32>
    %210 = arith.addf %208, %209 : vector<32x128xf32>
    %c1_97 = arith.constant 1 : index
    %c0_98 = arith.constant 0 : index
    %c0_99 = arith.constant 0 : index
    %211 = vector.load %arg10[%c1_97, %c0_98, %c0_99] : memref<2x128x256xbf16, #tpu.memory_space<vmem>>, vector<1x128x256xbf16>
    %212 = vector.shape_cast %211 : vector<1x128x256xbf16> to vector<128x256xbf16>
    %213 = arith.truncf %210 : vector<32x128xf32> to vector<32x128xbf16>
    %cst_100 = arith.constant dense<0.000000e+00> : vector<32x256xf32>
    %214 = tpu.matmul %213, %212, %cst_100 {dimension_numbers = #tpu.dot_dimension_numbers<[1], [0], [0], [1], [0, 0, 1, 1], [], []>} : vector<32x128xbf16>, vector<128x256xbf16>, vector<32x256xf32> -> vector<32x256xf32>
    %c1_101 = arith.constant 1 : index
    %c0_102 = arith.constant 0 : index
    %c0_103 = arith.constant 0 : index
    %215 = vector.load %arg11[%c1_101, %c0_102, %c0_103] : memref<2x1x256xf32, #tpu.memory_space<vmem>>, vector<1x1x256xf32>
    %216 = vector.shape_cast %215 : vector<1x1x256xf32> to vector<1x256xf32>
    %217 = vector.broadcast %216 : vector<1x256xf32> to vector<32x256xf32>
    %218 = arith.addf %214, %217 : vector<32x256xf32>
    %cst_104 = arith.constant 0.000000e+00 : f32
    %219 = vector.broadcast %cst_104 : f32 to vector<32x256xf32>
    %220 = arith.maximumf %218, %219 : vector<32x256xf32>
    %c1_105 = arith.constant 1 : index
    %c0_106 = arith.constant 0 : index
    %c0_107 = arith.constant 0 : index
    %221 = vector.load %arg12[%c1_105, %c0_106, %c0_107] : memref<2x256x128xbf16, #tpu.memory_space<vmem>>, vector<1x256x128xbf16>
    %222 = vector.shape_cast %221 : vector<1x256x128xbf16> to vector<256x128xbf16>
    %223 = arith.truncf %220 : vector<32x256xf32> to vector<32x256xbf16>
    %cst_108 = arith.constant dense<0.000000e+00> : vector<32x128xf32>
    %224 = tpu.matmul %223, %222, %cst_108 {dimension_numbers = #tpu.dot_dimension_numbers<[1], [0], [0], [1], [0, 0, 1, 1], [], []>} : vector<32x256xbf16>, vector<256x128xbf16>, vector<32x128xf32> -> vector<32x128xf32>
    %c1_109 = arith.constant 1 : index
    %c0_110 = arith.constant 0 : index
    %c0_111 = arith.constant 0 : index
    %225 = vector.load %arg13[%c1_109, %c0_110, %c0_111] : memref<2x1x128xf32, #tpu.memory_space<vmem>>, vector<1x1x128xf32>
    %226 = vector.shape_cast %225 : vector<1x1x128xf32> to vector<1x128xf32>
    %227 = vector.broadcast %226 : vector<1x128xf32> to vector<32x128xf32>
    %228 = arith.addf %224, %227 : vector<32x128xf32>
    %229 = arith.addf %210, %228 : vector<32x128xf32>
    %c1_112 = arith.constant 1 : index
    %c0_113 = arith.constant 0 : index
    %c0_114 = arith.constant 0 : index
    %230 = vector.load %arg14[%c1_112, %c0_113, %c0_114] : memref<2x1x128xf32, #tpu.memory_space<vmem>>, vector<1x1x128xf32>
    %231 = vector.shape_cast %230 : vector<1x1x128xf32> to vector<1x128xf32>
    %c1_115 = arith.constant 1 : index
    %c0_116 = arith.constant 0 : index
    %c0_117 = arith.constant 0 : index
    %232 = vector.load %arg15[%c1_115, %c0_116, %c0_117] : memref<2x1x128xf32, #tpu.memory_space<vmem>>, vector<1x1x128xf32>
    %233 = vector.shape_cast %232 : vector<1x1x128xf32> to vector<1x128xf32>
    %cst_118 = arith.constant dense<0.000000e+00> : vector<32xf32>
    %234 = vector.multi_reduction <add>, %229, %cst_118 [1] : vector<32x128xf32> to vector<32xf32>
    %235 = vector.shape_cast %234 : vector<32xf32> to vector<32x1xf32>
    %cst_119 = arith.constant 1.280000e+02 : f32
    %236 = vector.broadcast %cst_119 : f32 to vector<32x1xf32>
    %237 = arith.divf %235, %236 : vector<32x1xf32>
    %238 = vector.broadcast %237 : vector<32x1xf32> to vector<32x128xf32>
    %239 = arith.subf %229, %238 : vector<32x128xf32>
    %240 = arith.mulf %239, %239 : vector<32x128xf32>
    %cst_120 = arith.constant dense<0.000000e+00> : vector<32xf32>
    %241 = vector.multi_reduction <add>, %240, %cst_120 [1] : vector<32x128xf32> to vector<32xf32>
    %242 = vector.shape_cast %241 : vector<32xf32> to vector<32x1xf32>
    %cst_121 = arith.constant 1.280000e+02 : f32
    %243 = vector.broadcast %cst_121 : f32 to vector<32x1xf32>
    %244 = arith.divf %242, %243 : vector<32x1xf32>
    %245 = vector.broadcast %237 : vector<32x1xf32> to vector<32x128xf32>
    %246 = arith.subf %229, %245 : vector<32x128xf32>
    %cst_122 = arith.constant 9.99999974E-6 : f32
    %247 = vector.broadcast %cst_122 : f32 to vector<32x1xf32>
    %248 = arith.addf %244, %247 : vector<32x1xf32>
    %249 = math.rsqrt %248 : vector<32x1xf32>
    %250 = vector.broadcast %249 : vector<32x1xf32> to vector<32x128xf32>
    %251 = arith.mulf %246, %250 : vector<32x128xf32>
    %252 = vector.broadcast %231 : vector<1x128xf32> to vector<32x128xf32>
    %253 = arith.mulf %251, %252 : vector<32x128xf32>
    %254 = vector.broadcast %233 : vector<1x128xf32> to vector<32x128xf32>
    %255 = arith.addf %253, %254 : vector<32x128xf32>
    %256 = tpu.iota {dimensions = array<i32: 0>} : vector<32x1xi32>
    %c0_i32 = arith.constant 0 : i32
    %257 = vector.broadcast %c0_i32 : i32 to vector<32x1xi32>
    %258 = arith.cmpi eq, %256, %257 : vector<32x1xi32>
    %c15_i32 = arith.constant 15 : i32
    %259 = vector.broadcast %c15_i32 : i32 to vector<32x1xi32>
    %260 = arith.cmpi eq, %256, %259 : vector<32x1xi32>
    %c16_i32 = arith.constant 16 : i32
    %261 = vector.broadcast %c16_i32 : i32 to vector<32x1xi32>
    %262 = arith.cmpi eq, %256, %261 : vector<32x1xi32>
    %263 = arith.ori %258, %262 : vector<32x1xi1>
    %c31_i32 = arith.constant 31 : i32
    %264 = vector.broadcast %c31_i32 : i32 to vector<32x1xi32>
    %265 = arith.cmpi eq, %256, %264 : vector<32x1xi32>
    %266 = arith.ori %260, %265 : vector<32x1xi1>
    %cst_123 = arith.constant 0.000000e+00 : f32
    %267 = vector.broadcast %cst_123 : f32 to vector<1x128xf32>
    %c0_124 = arith.constant 0 : index
    %c0_125 = arith.constant 0 : index
    %c0_126 = arith.constant 0 : index
    %268 = vector.load %arg16[%c0_124, %c0_125, %c0_126] : memref<2x384x128xbf16, #tpu.memory_space<vmem>>, vector<1x384x128xbf16>
    %269 = vector.shape_cast %268 : vector<1x384x128xbf16> to vector<384x128xbf16>
    %c0_127 = arith.constant 0 : index
    %c0_128 = arith.constant 0 : index
    %c0_129 = arith.constant 0 : index
    %270 = vector.load %arg17[%c0_127, %c0_128, %c0_129] : memref<2x1x128xf32, #tpu.memory_space<vmem>>, vector<1x1x128xf32>
    %271 = vector.shape_cast %270 : vector<1x1x128xf32> to vector<1x128xf32>
    %272 = vector.extract_strided_slice %255 {offsets = [0, 0], sizes = [31, 128], strides = [1, 1]} : vector<32x128xf32> to vector<31x128xf32>
    %273 = tpu.concatenate %267, %272 in 0 : vector<1x128xf32>, vector<31x128xf32> -> vector<32x128xf32>
    %cst_130 = arith.constant 0.000000e+00 : f32
    %274 = vector.shape_cast %263 : vector<32x1xi1> to vector<32x1xi1>
    %275 = vector.broadcast %274 : vector<32x1xi1> to vector<32x128xi1>
    %276 = vector.broadcast %cst_130 : f32 to vector<32x128xf32>
    %277 = arith.select %275, %276, %273 : vector<32x128xi1>, vector<32x128xf32>
    %278 = vector.extract_strided_slice %255 {offsets = [1, 0], sizes = [31, 128], strides = [1, 1]} : vector<32x128xf32> to vector<31x128xf32>
    %279 = tpu.concatenate %278, %267 in 0 : vector<31x128xf32>, vector<1x128xf32> -> vector<32x128xf32>
    %cst_131 = arith.constant 0.000000e+00 : f32
    %280 = vector.shape_cast %266 : vector<32x1xi1> to vector<32x1xi1>
    %281 = vector.broadcast %280 : vector<32x1xi1> to vector<32x128xi1>
    %282 = vector.broadcast %cst_131 : f32 to vector<32x128xf32>
    %283 = arith.select %281, %282, %279 : vector<32x128xi1>, vector<32x128xf32>
    %284 = tpu.concatenate %277, %255, %283 in 1 : vector<32x128xf32>, vector<32x128xf32>, vector<32x128xf32> -> vector<32x384xf32>
    %285 = arith.truncf %284 : vector<32x384xf32> to vector<32x384xbf16>
    %cst_132 = arith.constant dense<0.000000e+00> : vector<32x128xf32>
    %286 = tpu.matmul %285, %269, %cst_132 {dimension_numbers = #tpu.dot_dimension_numbers<[1], [0], [0], [1], [0, 0, 1, 1], [], []>} : vector<32x384xbf16>, vector<384x128xbf16>, vector<32x128xf32> -> vector<32x128xf32>
    %287 = vector.broadcast %271 : vector<1x128xf32> to vector<32x128xf32>
    %288 = arith.addf %286, %287 : vector<32x128xf32>
    %cst_133 = arith.constant 0.000000e+00 : f32
    %289 = vector.broadcast %cst_133 : f32 to vector<32x128xf32>
    %290 = arith.maximumf %288, %289 : vector<32x128xf32>
    %c1_134 = arith.constant 1 : index
    %c0_135 = arith.constant 0 : index
    %c0_136 = arith.constant 0 : index
    %291 = vector.load %arg16[%c1_134, %c0_135, %c0_136] : memref<2x384x128xbf16, #tpu.memory_space<vmem>>, vector<1x384x128xbf16>
    %292 = vector.shape_cast %291 : vector<1x384x128xbf16> to vector<384x128xbf16>
    %c1_137 = arith.constant 1 : index
    %c0_138 = arith.constant 0 : index
    %c0_139 = arith.constant 0 : index
    %293 = vector.load %arg17[%c1_137, %c0_138, %c0_139] : memref<2x1x128xf32, #tpu.memory_space<vmem>>, vector<1x1x128xf32>
    %294 = vector.shape_cast %293 : vector<1x1x128xf32> to vector<1x128xf32>
    %295 = vector.extract_strided_slice %290 {offsets = [0, 0], sizes = [31, 128], strides = [1, 1]} : vector<32x128xf32> to vector<31x128xf32>
    %296 = tpu.concatenate %267, %295 in 0 : vector<1x128xf32>, vector<31x128xf32> -> vector<32x128xf32>
    %cst_140 = arith.constant 0.000000e+00 : f32
    %297 = vector.shape_cast %263 : vector<32x1xi1> to vector<32x1xi1>
    %298 = vector.broadcast %297 : vector<32x1xi1> to vector<32x128xi1>
    %299 = vector.broadcast %cst_140 : f32 to vector<32x128xf32>
    %300 = arith.select %298, %299, %296 : vector<32x128xi1>, vector<32x128xf32>
    %301 = vector.extract_strided_slice %290 {offsets = [1, 0], sizes = [31, 128], strides = [1, 1]} : vector<32x128xf32> to vector<31x128xf32>
    %302 = tpu.concatenate %301, %267 in 0 : vector<31x128xf32>, vector<1x128xf32> -> vector<32x128xf32>
    %cst_141 = arith.constant 0.000000e+00 : f32
    %303 = vector.shape_cast %266 : vector<32x1xi1> to vector<32x1xi1>
    %304 = vector.broadcast %303 : vector<32x1xi1> to vector<32x128xi1>
    %305 = vector.broadcast %cst_141 : f32 to vector<32x128xf32>
    %306 = arith.select %304, %305, %302 : vector<32x128xi1>, vector<32x128xf32>
    %307 = tpu.concatenate %300, %290, %306 in 1 : vector<32x128xf32>, vector<32x128xf32>, vector<32x128xf32> -> vector<32x384xf32>
    %308 = arith.truncf %307 : vector<32x384xf32> to vector<32x384xbf16>
    %cst_142 = arith.constant dense<0.000000e+00> : vector<32x128xf32>
    %309 = tpu.matmul %308, %292, %cst_142 {dimension_numbers = #tpu.dot_dimension_numbers<[1], [0], [0], [1], [0, 0, 1, 1], [], []>} : vector<32x384xbf16>, vector<384x128xbf16>, vector<32x128xf32> -> vector<32x128xf32>
    %310 = vector.broadcast %294 : vector<1x128xf32> to vector<32x128xf32>
    %311 = arith.addf %309, %310 : vector<32x128xf32>
    %cst_143 = arith.constant 0.000000e+00 : f32
    %312 = vector.broadcast %cst_143 : f32 to vector<32x128xf32>
    %313 = arith.maximumf %311, %312 : vector<32x128xf32>
    %314 = vector.extract_strided_slice %313 {offsets = [1, 0], sizes = [31, 128], strides = [1, 1]} : vector<32x128xf32> to vector<31x128xf32>
    %315 = vector.extract_strided_slice %313 {offsets = [31, 0], sizes = [1, 128], strides = [1, 1]} : vector<32x128xf32> to vector<1x128xf32>
    %316 = tpu.concatenate %314, %315 in 0 : vector<31x128xf32>, vector<1x128xf32> -> vector<32x128xf32>
    %317 = arith.maximumf %313, %316 : vector<32x128xf32>
    %318 = tpu.iota {dimensions = array<i32: 0>} : vector<16x32xi32>
    %319 = tpu.iota {dimensions = array<i32: 1>} : vector<16x32xi32>
    %c2_i32 = arith.constant 2 : i32
    %320 = vector.broadcast %c2_i32 : i32 to vector<16x32xi32>
    %321 = arith.muli %320, %318 : vector<16x32xi32>
    %322 = arith.cmpi eq, %319, %321 : vector<16x32xi32>
    %323 = arith.extui %322 : vector<16x32xi1> to vector<16x32xi32>
    %324 = arith.sitofp %323 : vector<16x32xi32> to vector<16x32xf32>
    %cst_144 = arith.constant dense<0.000000e+00> : vector<16x128xf32>
    %325 = tpu.matmul %324, %317, %cst_144 {dimension_numbers = #tpu.dot_dimension_numbers<[1], [0], [0], [1], [0, 0, 1, 1], [], []>} : vector<16x32xf32>, vector<32x128xf32>, vector<16x128xf32> -> vector<16x128xf32>
    %c0_145 = arith.constant 0 : index
    %c0_146 = arith.constant 0 : index
    %326 = vector.load %arg18[%c0_145, %c0_146] : memref<2x16xf32, #tpu.memory_space<vmem>>, vector<2x16xf32>
    %cst_147 = arith.constant dense<0.000000e+00> : vector<2x128xf32>
    %327 = tpu.matmul %326, %325, %cst_147 {dimension_numbers = #tpu.dot_dimension_numbers<[1], [0], [0], [1], [0, 0, 1, 1], [], []>} : vector<2x16xf32>, vector<16x128xf32>, vector<2x128xf32> -> vector<2x128xf32>
    %c0_148 = arith.constant 0 : index
    %c0_149 = arith.constant 0 : index
    %328 = vector.load %arg19[%c0_148, %c0_149] : memref<1x1xf32, #tpu.memory_space<vmem>>, vector<1x1xf32>
    %329 = vector.broadcast %328 : vector<1x1xf32> to vector<2x128xf32>
    %330 = arith.addf %327, %329 : vector<2x128xf32>
    %331 = math.tanh %330 : vector<2x128xf32>
    %c0_150 = arith.constant 0 : index
    %c0_151 = arith.constant 0 : index
    %332 = vector.load %arg20[%c0_150, %c0_151] : memref<2x128xf32, #tpu.memory_space<vmem>>, vector<2x128xf32>
    tpu.vector_store %arg20[%c0_150, %c0_151], %331 {strides = array<i32>} : memref<2x128xf32, #tpu.memory_space<vmem>>, vector<2x128xf32>,
    return
  }
}

</mosaic_0001>

<bundles_post_ra>
// kernel: attention_conv_forward.1
= control target key start
LH: loop header
LB: loop body
LE: loop exit
PB: predicated region body
PF: predicated region fallthrough
CT: control target
= control target key end

     0   :  { %s7278_s0 = inlined_call_operand.vmem [shape: f32[32,128], index: 0, kind: input, shape index: {}]   ;;  %s7279_s1 = inlined_call_operand.vmem [shape: f32[128,32], index: 1, kind: input, shape index: {}]   ;;  %s7280_s2 = inlined_call_operand.vmem [shape: f32[32,1], index: 2, kind: input, shape index: {}]   ;;  %s7281_s3 = inlined_call_operand.vmem [shape: f32[128,128], index: 3, kind: input, shape index: {}]   ;;  %s7282_s4 = inlined_call_operand.vmem [shape: bf16[2,128,384], index: 4, kind: input, shape index: {}]   ;;  %s7283_s5 = inlined_call_operand.vmem [shape: f32[2,1,384], index: 5, kind: input, shape index: {}]   ;;  %s7284_s6 = inlined_call_operand.vmem [shape: bf16[2,128,128], index: 6, kind: input, shape index: {}]   ;;  %s7285_s7 = inlined_call_operand.vmem [shape: f32[2,1,128], index: 7, kind: input, shape index: {}]   ;;  %s7286_s8 = inlined_call_operand.vmem [shape: f32[2,1,128], index: 8, kind: input, shape index: {}]   ;;  %s7287_s9 = inlined_call_operand.vmem [shape: f32[2,1,128], index: 9, kind: input, shape index: {}]   ;;  %s7288_s10 = inlined_call_operand.vmem [shape: bf16[2,128,256], index: 10, kind: input, shape index: {}]   ;;  %s7289_s11 = inlined_call_operand.vmem [shape: f32[2,1,256], index: 11, kind: input, shape index: {}]   ;;  %s7290_s12 = inlined_call_operand.vmem [shape: bf16[2,256,128], index: 12, kind: input, shape index: {}]   ;;  %s7291_s13 = inlined_call_operand.vmem [shape: f32[2,1,128], index: 13, kind: input, shape index: {}]   ;;  %s7292_s14 = inlined_call_operand.vmem [shape: f32[2,1,128], index: 14, kind: input, shape index: {}]   ;;  %s7293_s15 = inlined_call_operand.vmem [shape: f32[2,1,128], index: 15, kind: input, shape index: {}]   ;;  %s7294_s16 = inlined_call_operand.vmem [shape: bf16[2,384,128], index: 16, kind: input, shape index: {}]   ;;  %s7295_s17 = inlined_call_operand.vmem [shape: f32[2,1,128], index: 17, kind: input, shape index: {}]   ;;  %s7296_s18 = inlined_call_operand.vmem [shape: f32[2,16], index: 18, kind: input, shape index: {}]   ;;  %s7297_s19 = inlined_call_operand.<no memory space> [shape: f32[1,1], index: 19, kind: input, shape index: {}]   ;;  %s7298_s20 = inlined_call_operand.hbm [shape: f32[2,128], index: 20, kind: output, shape index: {}]  }
   0x1   :  { %7306 = sst [smem:[#allocation6_spill]] %s7278_s0  ;;  %v25_v0 = vstv %s7297_s19 }
   0x2   :  { %7307 = sst [smem:[#allocation7_spill]] %s7279_s1  ;;  %26 = vst [vmem:[#allocation2] sm:$0x1] %v25_v0 }
   0x3   :  { %7308 = sst [smem:[#allocation8_spill]] %s7280_s2 }
   0x4   :  { %7309 = sst [smem:[#allocation9_spill]] %s7281_s3 }
   0x5   :  { %7310 = sst [smem:[#allocation10_spill]] %s7282_s4 }
   0x6   :  { %s7311_s2 = sld [smem:[#allocation10_spill]]  ;;  %v5574_v3 = vmov 0   ;;  %s7312_s24 = sld [smem:[#allocation6_spill]] }
   0x7   :  { %320 = vmatprep.mubr.bf16.mxu0 %v5574_v3  ;;  %5083 = vset.pattern.permute.xlu1 %v5574_v3 }
   0x8   :  { %5082 = vset.pattern.permute.xlu0 %v5574_v3 }
   0xc   :  { %v5144_v1 = vld [vmem:[%s7311_s2 + $0x4] ss:$12 sps:$4 sm:$0xff]   ;;  %v5146_v2 = vld [vmem:[%s7311_s2] ss:$12 sps:$4 sm:$0xff]   ;;  %v5147_v4 = vld [vmem:[%s7311_s2 + $0x1c] ss:$12 sps:$4 sm:$0xff]  }
   0xd   :  { %288 = vmatprep.subr.bf16.mxu0 %v5144_v1  ;;  %v5149_v5 = vld [vmem:[%s7311_s2 + $0x18] ss:$12 sps:$4 sm:$0xff]   ;;  %v5150_v6 = vld [vmem:[%s7311_s2 + $0x34] ss:$12 sps:$4 sm:$0xff]   ;;  %v5152_v7 = vld [vmem:[%s7311_s2 + $0x30] ss:$12 sps:$4 sm:$0xff]  }
   0xe   :  { %289 = vmatpush1.bf16.msra.mxu0 %v5146_v2  ;;  %v5153_v8 = vld [vmem:[%s7311_s2 + $0x4c] ss:$12 sps:$4 sm:$0xff]   ;;  %v69_v9 = vld [vmem:[%s7312_s24] sm:$0xff]  ;;  %v5155_v10 = vld [vmem:[%s7311_s2 + $0x48] ss:$12 sps:$4 sm:$0xff]  }
   0xf   :  { %290 = vmatprep.subr.bf16.mxu0 %v5147_v4  ;;  %v70_v11 = vld [vmem:[%s7312_s24 + $0x8] sm:$0xff]  ;;  %v5156_v12 = vld [vmem:[%s7311_s2 + $0x64] ss:$12 sps:$4 sm:$0xff]   ;;  %v5162_v17 = vld [vmem:[%s7311_s2 + $0x94] ss:$12 sps:$4 sm:$0xff]  }
  0x10   :  { %v141_v13 = vpack.c.bf16 %v70_v11, %v69_v9  ;;  %v5158_v14 = vld [vmem:[%s7311_s2 + $0x60] ss:$12 sps:$4 sm:$0xff]   ;;  %v5159_v15 = vld [vmem:[%s7311_s2 + $0x7c] ss:$12 sps:$4 sm:$0xff]   ;;  %v5161_v16 = vld [vmem:[%s7311_s2 + $0x78] ss:$12 sps:$4 sm:$0xff]  }
  0x11   :  { %v5164_v18 = vld [vmem:[%s7311_s2 + $0x90] ss:$12 sps:$4 sm:$0xff]   ;;  %v5165_v19 = vld [vmem:[%s7311_s2 + $0xac] ss:$12 sps:$4 sm:$0xff]   ;;  %v5167_v20 = vld [vmem:[%s7311_s2 + $0xa8] ss:$12 sps:$4 sm:$0xff]  }
  0x12   :  { %291 = vmatpush1.bf16.msra.mxu0 %v5149_v5  ;;  %4836 = vmatprep.mubr.bf16.mxu1 %v141_v13  ;;  %v71_v21 = vld [vmem:[%s7312_s24 + $0x10] sm:$0xff]  ;;  %v72_v22 = vld [vmem:[%s7312_s24 + $0x18] sm:$0xff] }
  0x13   :  { %292 = vmatprep.subr.bf16.mxu0 %v5150_v6  ;;  %v142_v23 = vpack.c.bf16 %v72_v22, %v71_v21 }
  0x16   :  { %293 = vmatpush1.bf16.msra.mxu0 %v5152_v7 }
  0x17   :  { %294 = vmatprep.subr.bf16.mxu0 %v5153_v8 }
  0x1a   :  { %295 = vmatpush1.bf16.msra.mxu0 %v5155_v10 }
  0x1b   :  { %296 = vmatprep.subr.bf16.mxu0 %v5156_v12 }
  0x1e   :  { %297 = vmatpush1.bf16.msra.mxu0 %v5158_v14 }
  0x1f   :  { %298 = vmatprep.subr.bf16.mxu0 %v5159_v15 }
  0x22   :  { %299 = vmatpush1.bf16.msra.mxu0 %v5161_v16 }
  0x23   :  { %300 = vmatprep.subr.bf16.mxu0 %v5162_v17 }
  0x26   :  { %301 = vmatpush1.bf16.msra.mxu0 %v5164_v18 }
  0x27   :  { %302 = vmatprep.subr.bf16.mxu0 %v5165_v19 }
  0x2a   :  { %303 = vmatpush1.bf16.msra.mxu0 %v5167_v20 }
  0x2d   :  { %321 = vmatmul.mubr.bf16.vlgmr.msra.gmra.mrb[0].mxu0 %v141_v13 }
  0x2e   :  { %330 = vmatprep.mubr.bf16.mxu0 %v5574_v3 }
  0x35   :  { %331 = vmatmul.mubr.bf16.gmra.mrb[4].mxu0 %v142_v23 }
  0x36   :  { %27 = vsyncpa [#allocation4], 0  ;;  %v5168_v24 = vld [vmem:[%s7311_s2 + $0x8] ss:$12 sps:$4 sm:$0xff]   ;;  %v5169_v25 = vld [vmem:[%s7311_s2 + $0x20] ss:$12 sps:$4 sm:$0xff]   ;;  %v145_v32 = vlaneseq }
  0x37   :  { %4820 = vmatprep.subr.bf16.mxu1 %v5168_v24  ;;  %v5170_v26 = vld [vmem:[%s7311_s2 + $0x38] ss:$12 sps:$4 sm:$0xff]   ;;  %v5171_v27 = vld [vmem:[%s7311_s2 + $0x50] ss:$12 sps:$4 sm:$0xff]   ;;  %v5172_v28 = vld [vmem:[%s7311_s2 + $0x68] ss:$12 sps:$4 sm:$0xff]  }
  0x38   :  { %4821 = vmatpush3.bf16.msra.mxu1 %v5168_v24  ;;  %v5173_v29 = vld [vmem:[%s7311_s2 + $0x80] ss:$12 sps:$4 sm:$0xff]   ;;  %v5174_v30 = vld [vmem:[%s7311_s2 + $0x98] ss:$12 sps:$4 sm:$0xff]   ;;  %v5175_v31 = vld [vmem:[%s7311_s2 + $0xb0] ss:$12 sps:$4 sm:$0xff]  }
  0x39   :  { %4822 = vmatprep.subr.bf16.mxu1 %v5169_v25  ;;  %v5780_v33 = vshrl.u32 %v145_v32, 7  ;;  %v5788_v35 = vld [vmem:[%s7283_s5] sm:$0x7]  ;;  %s7313_s26 = sld [smem:[#allocation9_spill]]  ;;  %s7314_s0 = sld [smem:[#allocation7_spill]]  ;;  %vm571_vm0 = vcmask 261120  }
  0x3a   :  { %s7315_s25 = sld [smem:[#allocation8_spill]]  ;;  %s5575_s30 = smov 96   ;;  %vm1048_vm1 = vcmask 523264   ;;  %vm1053_vm2 = vcmask 785408   ;;  %vm3321_vm3 = vcmask 1040384   ;;  %vm5578_vm5 = vmmov 1  }
  0x3b   :  { %v5783_v34 = vsub.s32 0, %v5780_v33  ;;  %v5791_v36 = vsub.s32 1, %v5780_v33  ;;  %s5576_s21 = smov 64   ;;  %s7304_s3 = smov 32   ;;  %vm4583_vm4 = vcmp.ne.s32.totalorder %v5780_v33, 0  ;;  %vm3346_vm7 = vcmask 1046528  }
  0x3c   :  { %4823 = vmatpush3.bf16.msra.mxu1 %v5169_v25  ;;  %vm7120_vm6 = vmpackc.low %vm5578_vm5, %vm4583_vm4 }
  0x3d   :  { %4824 = vmatprep.subr.bf16.mxu1 %v5170_v26  ;;  %v148_v37 = vrot.slane %v5788_v35, %v5783_v34  ;;  %v152_v38 = vrot.slane %v5788_v35, %v5791_v36 }
  0x3f   :  { %v93_v40 = vld [vmem:[%s7313_s26] sm:$0xff]  ;;  %v94_v44 = vld [vmem:[%s7313_s26 + $0x8] sm:$0xff]  ;;  %v95_v5 = vld [vmem:[%s7313_s26 + $0x10] sm:$0xff] }
  0x40   :  { %4825 = vmatpush3.bf16.msra.mxu1 %v5170_v26  ;;  %v97_v41 = vld [vmem:[%s7313_s26 + $0x20] sm:$0xff]  ;;  %v98_v48 = vld [vmem:[%s7313_s26 + $0x28] sm:$0xff]  ;;  %v99_v7 = vld [vmem:[%s7313_s26 + $0x30] sm:$0xff] }
  0x41   :  { %4826 = vmatprep.subr.bf16.mxu1 %v5171_v27  ;;  %v101_v45 = vld [vmem:[%s7313_s26 + $0x40] sm:$0xff]  ;;  %v102_v49 = vld [vmem:[%s7313_s26 + $0x48] sm:$0xff]  ;;  %v96_v10 = vld [vmem:[%s7313_s26 + $0x18] sm:$0xff] }
  0x42   :  { %v105_v46 = vld [vmem:[%s7313_s26 + $0x60] sm:$0xff]  ;;  %v106_v50 = vld [vmem:[%s7313_s26 + $0x68] sm:$0xff]  ;;  %v103_v11 = vld [vmem:[%s7313_s26 + $0x50] sm:$0xff] }
  0x43   :  { %v107_v12 = vld [vmem:[%s7313_s26 + $0x70] sm:$0xff]  ;;  %v100_v14 = vld [vmem:[%s7313_s26 + $0x38] sm:$0xff] }
  0x44   :  { %4827 = vmatpush3.bf16.msra.mxu1 %v5171_v27  ;;  %v104_v15 = vld [vmem:[%s7313_s26 + $0x58] sm:$0xff] }
  0x45   :  { %4828 = vmatprep.subr.bf16.mxu1 %v5172_v28  ;;  %v108_v16 = vld [vmem:[%s7313_s26 + $0x78] sm:$0xff] }
  0x48   :  { %4829 = vmatpush3.bf16.msra.mxu1 %v5172_v28 }
  0x49   :  { %4830 = vmatprep.subr.bf16.mxu1 %v5173_v29 }
  0x4c   :  { %4831 = vmatpush3.bf16.msra.mxu1 %v5173_v29 }
  0x4d   :  { %4832 = vmatprep.subr.bf16.mxu1 %v5174_v30 }
  0x50   :  { %4833 = vmatpush3.bf16.msra.mxu1 %v5174_v30 }
  0x51   :  { %4834 = vmatprep.subr.bf16.mxu1 %v5175_v31 }
  0x54   :  { %4835 = vmatpush3.bf16.msra.mxu1 %v5175_v31 }
  0x57   :  { %4837 = vmatmul.mubr.bf16.vlgmr.msra.gmra.mrb[0].mxu1 %v142_v23 }
 0x100   :  { %v322_v39 = vpop.f32.mrb[0].mxu0 }
 0x101   :  { %v323_v42 = vadd.f32 %v322_v39, %v148_v37  ;;  %v324_v43 = vpop.f32.mrb[1].mxu0 }
 0x102   :  { %v326_v47 = vpop.f32.mrb[2].mxu0  ;;  %v325_v51 = vadd.f32 %v324_v43, %v152_v38  ;;  %v73_v43 = vld [vmem:[%s7314_s0] sm:$0xff] }
 0x103   :  { %v327_v52 = vadd.f32 %v326_v47, %v148_v37  ;;  %v328_v53 = vpop.f32.mrb[3].mxu0  ;;  %v418_v54 = vmul.f32 %v323_v42, %v93_v40  ;;  %v422_v56 = vmul.f32 %v323_v42, %v97_v41  ;;  %v426_v57 = vmul.f32 %v323_v42, %v101_v45 }
 0x104   :  { %v329_v55 = vadd.f32 %v328_v53, %v152_v38  ;;  %v430_v58 = vmul.f32 %v323_v42, %v105_v46  ;;  %v76_v46 = vld [vmem:[%s7314_s0 + $0x18] sm:$0xff] }
 0x105   :  { %v419_v59 = vmul.f32 %v327_v52, %v94_v44  ;;  %v423_v60 = vmul.f32 %v327_v52, %v98_v48  ;;  %v427_v61 = vmul.f32 %v327_v52, %v102_v49  ;;  %v431_v62 = vmul.f32 %v327_v52, %v106_v50  ;;  %v74_v50 = vld [vmem:[%s7314_s0 + $0x8] sm:$0xff] }
 0x106   :  { %v390_v63 = vpack.c.bf16 %v329_v55, %v325_v51 }
 0x107   :  { %v434_v0 = vpack.c.bf16 %v419_v59, %v418_v54  ;;  %v436_v1 = vpack.c.bf16 %v423_v60, %v422_v56  ;;  %v438_v2 = vpack.c.bf16 %v427_v61, %v426_v57  ;;  %v440_v4 = vpack.c.bf16 %v431_v62, %v430_v58  ;;  %v79_v58 = vld [vmem:[%s7314_s0 + $0x30] sm:$0xff] }
 0x108   :  { %v332_v6 = vpop.f32.mrb[4].mxu0  ;;  %4840 = vmatprep.subr.bf16.mxu0 %v390_v63 }
 0x109   :  { %v333_v8 = vadd.f32 %v332_v6, %v148_v37  ;;  %v334_v9 = vpop.f32.mrb[5].mxu0  ;;  %4841 = vmatpush3.bf16.xpose.msra.mxu0 %v390_v63  ;;  %4844 = vmatprep.mubr.bf16.mxu0 %v434_v0  ;;  %v77_v6 = vld [vmem:[%s7314_s0 + $0x20] sm:$0xff] }
 0x10a   :  { %v336_v13 = vpop.f32.mrb[6].mxu0  ;;  %v335_v18 = vadd.f32 %v334_v9, %v152_v38 }
 0x10b   :  { %v420_v17 = vmul.f32 %v333_v8, %v95_v5  ;;  %v337_v19 = vadd.f32 %v336_v13, %v148_v37  ;;  %v338_v20 = vpop.f32.mrb[7].mxu0  ;;  %v424_v22 = vmul.f32 %v333_v8, %v99_v7  ;;  %v428_v23 = vmul.f32 %v333_v8, %v103_v11 }
 0x10c   :  { %v339_v21 = vadd.f32 %v338_v20, %v152_v38  ;;  %v432_v24 = vmul.f32 %v333_v8, %v107_v12  ;;  %v75_v38 = vld [vmem:[%s7314_s0 + $0x10] sm:$0xff]  ;;  %v78_v8 = vld [vmem:[%s7314_s0 + $0x28] sm:$0xff] }
 0x10d   :  { %v421_v25 = vmul.f32 %v337_v19, %v96_v10  ;;  %v425_v26 = vmul.f32 %v337_v19, %v100_v14  ;;  %v429_v27 = vmul.f32 %v337_v19, %v104_v15  ;;  %v433_v28 = vmul.f32 %v337_v19, %v108_v16  ;;  %v83_v15 = vld [vmem:[%s7314_s0 + $0x50] sm:$0xff] }
 0x10e   :  { %v391_v29 = vpack.c.bf16 %v339_v21, %v335_v18  ;;  %v84_v21 = vld [vmem:[%s7314_s0 + $0x58] sm:$0xff] }
 0x10f   :  { %v435_v30 = vpack.c.bf16 %v421_v25, %v420_v17  ;;  %v437_v31 = vpack.c.bf16 %v425_v26, %v424_v22  ;;  %v439_v39 = vpack.c.bf16 %v429_v27, %v428_v23  ;;  %v441_v40 = vpack.c.bf16 %v433_v28, %v432_v24  ;;  %v81_v26 = vld [vmem:[%s7314_s0 + $0x40] sm:$0xff]  ;;  %v82_v28 = vld [vmem:[%s7314_s0 + $0x48] sm:$0xff] }
 0x110   :  { %4842 = vmatprep.subr.bf16.mxu0 %v391_v29 }
 0x111   :  { %4843 = vmatpush3.bf16.xpose.msra.mxu0 %v391_v29 }
 0x118   :  { %4845 = vmatmul.mubr.bf16.vlgmr.msra.gmra.mrb[8].mxu0 %v435_v30 }
 0x119   :  { %4848 = vmatprep.mubr.bf16.mxu0 %v436_v1  ;;  %v80_v1 = vld [vmem:[%s7314_s0 + $0x38] sm:$0xff] }
 0x120   :  { %4849 = vmatmul.mubr.bf16.gmra.mrb[12].mxu0 %v437_v31 }
 0x121   :  { %4852 = vmatprep.mubr.bf16.mxu0 %v438_v2 }
 0x128   :  { %4853 = vmatmul.mubr.bf16.gmra.mrb[16].mxu0 %v439_v39 }
 0x129   :  { %4856 = vmatprep.mubr.bf16.mxu0 %v440_v4 }
 0x130   :  { %4857 = vmatmul.mubr.bf16.gmra.mrb[20].mxu0 %v441_v40 }
 0x1eb   :  { %v4846_v37 = vpop.f32.mrb[8].mxu0 }
 0x1ec   :  { %v541_v41 = vmul.f32 0.17677669, %v4846_v37  ;;  %v476_v42 = vpop.f32.mrb[9].mxu0 }
 0x1ed   :  { %v539_v44 = vmul.f32 0.17677669, %v476_v42  ;;  %v4847_v45 = vpop.f32.mrb[10].mxu0 }
 0x1ee   :  { %v542_v47 = vmul.f32 0.17677669, %v4847_v45  ;;  %v479_v48 = vpop.f32.mrb[11].mxu0  ;;  %v5854_v49 = vadd.f32 %v541_v41, %v75_v38  ;;  %v87_v38 = vld [vmem:[%s7314_s0 + $0x70] sm:$0xff] }
 0x1ef   :  { %v540_v51 = vmul.f32 0.17677669, %v479_v48  ;;  %v5859_v52 = vadd.f32 %v539_v44, %v73_v43 }
 0x1f0   :  { %v578_v53 = vsel %vm571_vm0, %v5854_v49, -inf  ;;  %v5863_v54 = vadd.f32 %v542_v47, %v76_v46 }
 0x1f1   :  { %579 = vmax.xlane.f32.xlu1 %v578_v53  ;;  %v572_v55 = vsel %vm571_vm0, %v5859_v52, -inf  ;;  %v5867_v56 = vadd.f32 %v540_v51, %v74_v50  ;;  %v85_v50 = vld [vmem:[%s7314_s0 + $0x60] sm:$0xff] }
 0x1f2   :  { %573 = vmax.xlane.f32.xlu0 %v572_v55  ;;  %v581_v61 = vsel %vm571_vm0, %v5863_v54, -inf }
 0x1f3   :  { %v4850_v57 = vpop.f32.mrb[12].mxu0  ;;  %v575_v0 = vsel %vm571_vm0, %v5867_v56, -inf }
 0x1f4   :  { %v545_v59 = vmul.f32 0.17677669, %v4850_v57  ;;  %v492_v60 = vpop.f32.mrb[13].mxu0  ;;  %v4838_v57 = vpop.f32.mrb[0].mxu1 }
 0x1f5   :  { %v543_v62 = vmul.f32 0.17677669, %v492_v60  ;;  %582 = vmax.xlane.f32.xlu1 %v581_v61  ;;  %v4851_v63 = vpop.f32.mrb[14].mxu0 }
 0x1f6   :  { %v546_v2 = vmul.f32 0.17677669, %v4851_v63  ;;  %576 = vmax.xlane.f32.xlu0 %v575_v0  ;;  %v495_v4 = vpop.f32.mrb[15].mxu0  ;;  %v5879_v5 = vadd.f32 %v545_v59, %v79_v58  ;;  %v90_v58 = vld [vmem:[%s7315_s25 + $0x8] sm:$0xff]  ;;  %v375_v59 = vpop.f32.mrb[1].mxu1  ;;  %v92_v63 = vld [vmem:[%s7315_s25 + $0x18] sm:$0xff] }
 0x1f7   :  { %v544_v7 = vmul.f32 0.17677669, %v495_v4  ;;  %v5891_v11 = vadd.f32 %v543_v62, %v77_v6  ;;  %v4839_v60 = vpop.f32.mrb[2].mxu1  ;;  %v91_v62 = vld [vmem:[%s7315_s25 + $0x10] sm:$0xff]  ;;  %v89_v0 = vld [vmem:[%s7315_s25] sm:$0xff] }
 0x1f8   :  { %v590_v9 = vsel %vm571_vm0, %v5879_v5, -inf  ;;  %v5889_v10 = vadd.f32 %v546_v2, %v80_v1  ;;  %v378_v61 = vpop.f32.mrb[3].mxu1 }
 0x1f9   :  { %v5895_v13 = vadd.f32 %v544_v7, %v78_v8  ;;  %v584_v20 = vsel %vm571_vm0, %v5891_v11, -inf }
 0x1fa   :  { %591 = vmax.xlane.f32.xlu0 %v590_v9  ;;  %v593_v12 = vsel %vm571_vm0, %v5889_v10, -inf }
 0x1fb   :  { %594 = vmax.xlane.f32.xlu1 %v593_v12  ;;  %v4854_v14 = vpop.f32.mrb[16].mxu0  ;;  %v587_v24 = vsel %vm571_vm0, %v5895_v13, -inf }
 0x1fc   :  { %v549_v16 = vmul.f32 0.17677669, %v4854_v14  ;;  %v508_v17 = vpop.f32.mrb[17].mxu0 }
 0x1fd   :  { %v547_v18 = vmul.f32 0.17677669, %v508_v17  ;;  %v4855_v19 = vpop.f32.mrb[18].mxu0 }
 0x1fe   :  { %v550_v22 = vmul.f32 0.17677669, %v4855_v19  ;;  %585 = vmax.xlane.f32.xlu0 %v584_v20  ;;  %v511_v23 = vpop.f32.mrb[19].mxu0  ;;  %v5907_v25 = vadd.f32 %v549_v16, %v83_v15 }
 0x1ff   :  { %v548_v27 = vmul.f32 0.17677669, %v511_v23  ;;  %588 = vmax.xlane.f32.xlu1 %v587_v24  ;;  %v5919_v31 = vadd.f32 %v547_v18, %v81_v26  ;;  %v155_v18 = vsub.s32 2, %v5780_v33 }
 0x200   :  { %v602_v29 = vsel %vm571_vm0, %v5907_v25, -inf  ;;  %v5917_v30 = vadd.f32 %v550_v22, %v84_v21 }
 0x201   :  { %v5923_v40 = vadd.f32 %v548_v27, %v82_v28  ;;  %v596_v45 = vsel %vm571_vm0, %v5919_v31, -inf  ;;  %v156_v21 = vrot.slane %v5788_v35, %v155_v18 }
 0x202   :  { %603 = vmax.xlane.f32.xlu0 %v602_v29  ;;  %v605_v39 = vsel %vm571_vm0, %v5917_v30, -inf }
 0x203   :  { %606 = vmax.xlane.f32.xlu1 %v605_v39  ;;  %v4858_v37 = vpop.f32.mrb[20].mxu0  ;;  %v599_v47 = vsel %vm571_vm0, %v5923_v40, -inf  ;;  %v384_v23 = vadd.f32 %v4838_v57, %v156_v21  ;;  %v387_v24 = vadd.f32 %v4839_v60, %v156_v21  ;;  %v379_v27 = vadd.f32 %v378_v61, %v156_v21  ;;  %v88_v60 = vld [vmem:[%s7314_s0 + $0x78] sm:$0xff] }
 0x204   :  { %v553_v41 = vmul.f32 0.17677669, %v4858_v37  ;;  %v524_v42 = vpop.f32.mrb[21].mxu0  ;;  %v376_v37 = vadd.f32 %v375_v59, %v156_v21 }
 0x205   :  { %v551_v43 = vmul.f32 0.17677669, %v524_v42  ;;  %v5928_v44 = vpop.f32.mrb[22].mxu0 }
 0x206   :  { %597 = vmax.xlane.f32.xlu0 %v596_v45  ;;  %v5932_v46 = vpop.f32.mrb[23].mxu0  ;;  %v5936_v48 = vadd.f32 %v553_v41, %v87_v38  ;;  %v554_v57 = vmul.f32 0.17677669, %v5928_v44 }
 0x207   :  { %600 = vmax.xlane.f32.xlu1 %v599_v47  ;;  %v5943_v53 = vadd.f32 %v551_v43, %v85_v50  ;;  %v552_v61 = vmul.f32 0.17677669, %v5932_v46 }
 0x208   :  { %v614_v51 = vsel %vm571_vm0, %v5936_v48, -inf }
 0x209   :  { %v608_v55 = vsel %vm571_vm0, %v5943_v53, -inf }
 0x20a   :  { %615 = vmax.xlane.f32.xlu0 %v614_v51 }
 0x20e   :  { %609 = vmax.xlane.f32.xlu0 %v608_v55 }
 0x218   :  { %399 = vperm.xlu1 %5083, %v90_v58  }
 0x21c   :  { %404 = vperm.xlu1 %5083, %v91_v62  }
 0x220   :  { %409 = vperm.xlu1 %5083, %v92_v63  }
 0x224   :  { %394 = vperm.xlu0 %5082, %v89_v0  }
 0x27e   :  { %v5959_v1 = vpop.xlane.xlu1 %579 }
 0x27f   :  { %v5961_v2 = vpop.xlane.xlu0 %573 }
 0x282   :  { %v5963_v6 = vpop.xlane.xlu1 %582 }
 0x283   :  { %v577_v4 = vpop.xlane.xlu0 %576 }
 0x284   :  { %v621_v45 = vsub.f32 %v5867_v56, %v577_v4  ;;  %v6014_v56 = vadd.f32 %v554_v57, %v88_v60 }
 0x286   :  { %v638_v47 = vmul.f32 1.442695, %v621_v45  ;;  %v623_v45 = vsub.f32 %v5863_v54, %v5963_v6 }
 0x287   :  { %v592_v7 = vpop.xlane.xlu0 %591 }
 0x288   :  { %v5965_v8 = vpop.xlane.xlu1 %594  ;;  %v626_v50 = vsub.f32 %v5879_v5, %v592_v7  ;;  %5352 = vpow2.f32 %v638_v47  ;;  %v642_v47 = vmul.f32 1.442695, %v623_v45 }
 0x28a   :  { %v648_v51 = vmul.f32 1.442695, %v626_v50 }
 0x28b   :  { %v5967_v9 = vpop.xlane.xlu0 %585 }
 0x28c   :  { %v5969_v12 = vpop.xlane.xlu1 %588  ;;  %5354 = vpow2.f32 %v648_v51  ;;  %v624_v50 = vsub.f32 %v5891_v11, %v5967_v9 }
 0x28d   :  { %v625_v54 = vsub.f32 %v5895_v13, %v5969_v12 }
 0x28f   :  { %v604_v14 = vpop.xlane.xlu0 %603  ;;  %v646_v11 = vmul.f32 1.442695, %v625_v54 }
 0x290   :  { %v5971_v15 = vpop.xlane.xlu1 %606  ;;  %v630_v55 = vsub.f32 %v5907_v25, %v604_v14  ;;  %v86_v25 = vld [vmem:[%s7314_s0 + $0x68] sm:$0xff] }
 0x291   :  { %v6024_v63 = vadd.f32 %v552_v61, %v86_v25  ;;  %v631_v9 = vsub.f32 %v5917_v30, %v5971_v15 }
 0x292   :  { %v656_v58 = vmul.f32 1.442695, %v630_v55  ;;  %v6020_v44 = vpop.eup %5352 }
 0x293   :  { %v598_v16 = vpop.xlane.xlu0 %597  ;;  %v671_v4 = vsel %vm571_vm0, %v6020_v44, 0.0  ;;  %v611_v7 = vsel %vm571_vm0, %v6024_v63, -inf  ;;  %v658_v51 = vmul.f32 1.442695, %v631_v9 }
 0x294   :  { %v5973_v17 = vpop.xlane.xlu1 %600  ;;  %v628_v59 = vsub.f32 %v5919_v31, %v598_v16  ;;  %5356 = vpow2.f32 %v656_v58  ;;  %v617_v31 = vsel %vm571_vm0, %v6014_v56, -inf }
 0x295   :  { %v629_v13 = vsub.f32 %v5923_v40, %v5973_v17 }
 0x296   :  { %v652_v5 = vmul.f32 1.442695, %v628_v59 }
 0x297   :  { %v616_v20 = vpop.xlane.xlu0 %615  ;;  %v654_v57 = vmul.f32 1.442695, %v629_v13 }
 0x298   :  { %v5976_v19 = vpop.permute.xlu1 %399  ;;  %v634_v62 = vsub.f32 %v5936_v48, %v616_v20  ;;  %5358 = vpow2.f32 %v652_v5  ;;  %v6029_v48 = vpop.eup %5354 }
 0x299   :  { %v413_v42 = vmul.f32 %v5976_v19, %v379_v27  ;;  %v686_v16 = vsel %vm571_vm0, %v6029_v48, 0.0 }
 0x29a   :  { %v664_v0 = vmul.f32 1.442695, %v634_v62 }
 0x29b   :  { %v610_v26 = vpop.xlane.xlu0 %609 }
 0x29c   :  { %v5981_v22 = vpop.permute.xlu1 %404  ;;  %v632_v46 = vsub.f32 %v5943_v53, %v610_v26  ;;  %5360 = vpow2.f32 %v664_v0 }
 0x29d   :  { %v414_v29 = vmul.f32 %v5981_v22, %v384_v23 }
 0x29e   :  { %v660_v14 = vmul.f32 1.442695, %v632_v46  ;;  %v6035_v20 = vpop.eup %5356 }
 0x29f   :  { %v698_v53 = vsel %vm571_vm0, %v6035_v20, 0.0 }
 0x2a0   :  { %v5983_v28 = vpop.permute.xlu1 %409  ;;  %5362 = vpow2.f32 %v660_v14 }
 0x2a1   :  { %v415_v39 = vmul.f32 %v5983_v28, %v387_v24 }
 0x2a2   :  { %v6039_v21 = vpop.eup %5358 }
 0x2a3   :  { %v5987_v38 = vpack.c.bf16 %v415_v39, %v414_v29  ;;  %v5989_v41 = vpop.permute.xlu0 %394  ;;  %v692_v23 = vsel %vm571_vm0, %v6039_v21, 0.0  ;;  %v622_v39 = vsub.f32 %v5854_v49, %v5959_v1  ;;  %v627_v49 = vsub.f32 %v5889_v10, %v5965_v8 }
 0x2a4   :  { %v412_v35 = vmul.f32 %v5989_v41, %v376_v37  ;;  %v644_v1 = vmul.f32 1.442695, %v624_v50 }
 0x2a5   :  { %815 = vrot.lane.b32.xlu1 %v5987_v38, %s5575_s30  ;;  %v640_v37 = vmul.f32 1.442695, %v622_v39 }
 0x2a6   :  { %v5995_v43 = vpack.c.bf16 %v413_v42, %v412_v35  ;;  %v6043_v24 = vpop.eup %5360  ;;  %v620_v42 = vsub.f32 %v5859_v52, %v5961_v2  ;;  %v650_v2 = vmul.f32 1.442695, %v627_v49 }
 0x2a7   :  { %v710_v26 = vsel %vm571_vm0, %v6043_v24, 0.0  ;;  %5364 = vpow2.f32 %v640_v37 }
 0x2a8   :  { %813 = vrot.lane.b32.xlu0 %v5995_v43, %s5575_s30  ;;  %4860 = vmatprep.subr.bf16.mxu1 %v5995_v43  ;;  %v636_v35 = vmul.f32 1.442695, %v620_v42 }
 0x2a9   :  { %4861 = vmatpush3.bf16.msra.mxu1 %v5995_v43 }
 0x2aa   :  { %4862 = vmatprep.subr.bf16.mxu1 %v5987_v38  ;;  %v6047_v27 = vpop.eup %5362  ;;  %5366 = vpow2.f32 %v636_v35 }
 0x2ab   :  { %v704_v29 = vsel %vm571_vm0, %v6047_v27, 0.0  ;;  %5368 = vpow2.f32 %v642_v47 }
 0x2ac   :  { %876 = vrot.lane.b32.xlu0 %v5987_v38, %s5576_s21  ;;  %5370 = vpow2.f32 %v644_v1 }
 0x2ad   :  { %4863 = vmatpush3.bf16.msra.mxu1 %v5987_v38  ;;  %5372 = vpow2.f32 %v650_v2 }
 0x2ae   :  { %5374 = vpow2.f32 %v646_v11 }
 0x2af   :  { %5376 = vpow2.f32 %v658_v51 }
 0x2b0   :  { %5378 = vpow2.f32 %v654_v57 }
 0x2b1   :  { %v6065_v52 = vpop.eup %5364 }
 0x2b2   :  { %v674_v6 = vsel %vm571_vm0, %v6065_v52, 0.0 }
 0x2c9   :  { %618 = vmax.xlane.f32.xlu1 %v617_v31 }
 0x2cb   :  { %672 = vadd.xlane.f32.xlu0 %v671_v4 }
 0x2cd   :  { %612 = vmax.xlane.f32.xlu1 %v611_v7 }
 0x2cf   :  { %687 = vadd.xlane.f32.xlu0 %v686_v16 }
 0x2d3   :  { %699 = vadd.xlane.f32.xlu0 %v698_v53 }
 0x2d7   :  { %693 = vadd.xlane.f32.xlu0 %v692_v23 }
 0x2db   :  { %711 = vadd.xlane.f32.xlu0 %v710_v26 }
 0x2de   :  { %874 = vrot.lane.b32.xlu1 %v5995_v43, %s5576_s21 }
 0x2df   :  { %705 = vadd.xlane.f32.xlu0 %v704_v29 }
 0x2f5   :  { %937 = vrot.lane.b32.xlu0 %v5987_v38, %s7304_s3  ;;  %v6071_v38 = vpop.eup %5366 }
 0x2f6   :  { %v668_v10 = vsel %vm571_vm0, %v6071_v38, 0.0  ;;  %v6077_v8 = vpop.eup %5368 }
 0x2f7   :  { %v677_v12 = vsel %vm571_vm0, %v6077_v8, 0.0  ;;  %v6083_v55 = vpop.eup %5370 }
 0x2f8   :  { %v680_v30 = vsel %vm571_vm0, %v6083_v55, 0.0  ;;  %v6087_v15 = vpop.eup %5372 }
 0x2f9   :  { %v689_v58 = vsel %vm571_vm0, %v6087_v15, 0.0  ;;  %v6091_v59 = vpop.eup %5374 }
 0x2fa   :  { %v683_v40 = vsel %vm571_vm0, %v6091_v59, 0.0  ;;  %v6095_v17 = vpop.eup %5376 }
 0x2fb   :  { %v701_v60 = vsel %vm571_vm0, %v6095_v17, 0.0  ;;  %v6099_v61 = vpop.eup %5378 }
 0x2fc   :  { %v695_v62 = vsel %vm571_vm0, %v6099_v61, 0.0 }
 0x302   :  { %675 = vadd.xlane.f32.xlu1 %v674_v6 }
 0x306   :  { %669 = vadd.xlane.f32.xlu1 %v668_v10 }
 0x30a   :  { %678 = vadd.xlane.f32.xlu1 %v677_v12 }
 0x30e   :  { %681 = vadd.xlane.f32.xlu1 %v680_v30 }
 0x312   :  { %690 = vadd.xlane.f32.xlu1 %v689_v58 }
 0x316   :  { %684 = vadd.xlane.f32.xlu1 %v683_v40 }
 0x317   :  { %v816_v25 = vpop.permute.xlu1 %815 }
 0x31a   :  { %v814_v5 = vpop.permute.xlu0 %813  ;;  %702 = vadd.xlane.f32.xlu1 %v701_v60 }
 0x31b   :  { %4868 = vmatprep.subr.bf16.mxu1 %v814_v5 }
 0x31e   :  { %696 = vadd.xlane.f32.xlu1 %v695_v62 }
 0x356   :  { %v619_v31 = vpop.xlane.xlu1 %618 }
 0x357   :  { %v635_v0 = vsub.f32 %v6014_v56, %v619_v31  ;;  %v6115_v56 = vpop.permute.xlu0 %876 }
 0x359   :  { %v666_v46 = vmul.f32 1.442695, %v635_v0 }
 0x35a   :  { %v613_v4 = vpop.xlane.xlu1 %612 }
 0x35b   :  { %5380 = vpow2.f32 %v666_v46  ;;  %v633_v7 = vsub.f32 %v6024_v63, %v613_v4  ;;  %v673_v29 = vpop.xlane.xlu0 %672 }
 0x35d   :  { %v662_v14 = vmul.f32 1.442695, %v633_v7 }
 0x35e   :  { %v875_v63 = vpop.permute.xlu1 %874 }
 0x35f   :  { %5382 = vpow2.f32 %v662_v14  ;;  %v688_v35 = vpop.xlane.xlu0 %687 }
 0x360   :  { %5384 = vrcp.f32 %v673_v29 }
 0x363   :  { %v700_v54 = vpop.xlane.xlu0 %699 }
 0x365   :  { %v6105_v16 = vpop.eup %5380 }
 0x366   :  { %v713_v53 = vsel %vm571_vm0, %v6105_v16, 0.0 }
 0x367   :  { %714 = vadd.xlane.f32.xlu1 %v713_v53  ;;  %v694_v12 = vpop.xlane.xlu0 %693 }
 0x369   :  { %v6109_v23 = vpop.eup %5382 }
 0x36a   :  { %v707_v26 = vsel %vm571_vm0, %v6109_v23, 0.0  ;;  %v5385_v47 = vpop.eup %5384 }
 0x36b   :  { %708 = vadd.xlane.f32.xlu1 %v707_v26  ;;  %v712_v53 = vpop.xlane.xlu0 %711 }
 0x36f   :  { %v706_v26 = vpop.xlane.xlu0 %705 }
 0x37c   :  { %935 = vrot.lane.b32.xlu1 %v5995_v43, %s7304_s3  ;;  %v733_v43 = vmul.f32 %v5385_v47, %v6020_v44 }
 0x38f   :  { %v676_v39 = vpop.xlane.xlu1 %675 }
 0x393   :  { %v670_v37 = vpop.xlane.xlu1 %669 }
 0x394   :  { %5386 = vrcp.f32 %v670_v37 }
 0x395   :  { %5388 = vrcp.f32 %v676_v39 }
 0x397   :  { %v679_v42 = vpop.xlane.xlu1 %678 }
 0x398   :  { %5390 = vrcp.f32 %v679_v42 }
 0x39b   :  { %v682_v45 = vpop.xlane.xlu1 %681 }
 0x39e   :  { %v5387_v50 = vpop.eup %5386 }
 0x39f   :  { %v691_v49 = vpop.xlane.xlu1 %690  ;;  %v732_v1 = vmul.f32 %v5387_v50, %v6071_v38  ;;  %v5389_v2 = vpop.eup %5388 }
 0x3a0   :  { %5392 = vrcp.f32 %v691_v49  ;;  %v734_v9 = vmul.f32 %v5389_v2, %v6065_v52 }
 0x3a1   :  { %v748_v6 = vpack.c.bf16 %v733_v43, %v732_v1  ;;  %5394 = vrcp.f32 %v682_v45 }
 0x3a2   :  { %v5391_v11 = vpop.eup %5390  ;;  %5396 = vrcp.f32 %v688_v35 }
 0x3a3   :  { %v735_v10 = vmul.f32 %v5391_v11, %v6077_v8  ;;  %4864 = vmatprep.mubr.msk.bf16.mxu1 %vm571_vm0, %v748_v6  ;;  %v685_v51 = vpop.xlane.xlu1 %684  ;;  %v5176_v6 = vld [vmem:[%s7284_s6] sm:$0xff]   ;;  %v5177_v11 = vld [vmem:[%s7284_s6 + $0x8] sm:$0xff]  }
 0x3a4   :  { %5398 = vrcp.f32 %v685_v51  ;;  %4892 = vmatprep.subr.bf16.mxu0 %v5176_v6 }
 0x3a5   :  { %v749_v13 = vpack.c.bf16 %v735_v10, %v734_v9  ;;  %4893 = vmatpush3.bf16.msra.mxu0 %v5176_v6  ;;  %v5178_v10 = vld [vmem:[%s7284_s6 + $0x10] sm:$0xff]  }
 0x3a6   :  { %4894 = vmatprep.subr.bf16.mxu0 %v5177_v11 }
 0x3a7   :  { %4865 = vmatmul.mubr.msk.bf16.vlgmr.msra.gmra.mrb[4].mxu1 %vm571_vm0, %v749_v13  ;;  %v703_v44 = vpop.xlane.xlu1 %702 }
 0x3a8   :  { %4869 = vmatpush3.bf16.msra.mxu1 %v814_v5  ;;  %5400 = vrcp.f32 %v703_v44 }
 0x3a9   :  { %4870 = vmatprep.subr.bf16.mxu1 %v816_v25  ;;  %5402 = vrcp.f32 %v694_v12  ;;  %4895 = vmatpush3.bf16.msra.mxu0 %v5177_v11 }
 0x3aa   :  { %v5393_v38 = vpop.eup %5392  ;;  %5404 = vrcp.f32 %v700_v54  ;;  %4896 = vmatprep.subr.bf16.mxu0 %v5178_v10 }
 0x3ab   :  { %v697_v57 = vpop.xlane.xlu1 %696  ;;  %v5395_v30 = vpop.eup %5394  ;;  %v739_v58 = vmul.f32 %v5393_v38, %v6087_v15 }
 0x3ac   :  { %4871 = vmatpush3.bf16.msra.mxu1 %v816_v25  ;;  %5406 = vrcp.f32 %v697_v57  ;;  %v5397_v52 = vpop.eup %5396  ;;  %v736_v40 = vmul.f32 %v5395_v30, %v6083_v55  ;;  %v5179_v57 = vld [vmem:[%s7284_s6 + $0x18] sm:$0xff]  }
 0x3ad   :  { %4876 = vmatprep.subr.bf16.mxu1 %v875_v63  ;;  %v738_v5 = vmul.f32 %v5397_v52, %v6029_v48  ;;  %4897 = vmatpush3.bf16.msra.mxu0 %v5178_v10  ;;  %v5180_v52 = vld [vmem:[%s7284_s6 + $0x20] sm:$0xff]  }
 0x3ae   :  { %v5399_v8 = vpop.eup %5398  ;;  %4898 = vmatprep.subr.bf16.mxu0 %v5179_v57 }
 0x3af   :  { %v737_v60 = vmul.f32 %v5399_v8, %v6091_v59  ;;  %v751_v31 = vpack.c.bf16 %v739_v58, %v738_v5  ;;  %v5181_v8 = vld [vmem:[%s7284_s6 + $0x28] sm:$0xff]   ;;  %v5182_v58 = vld [vmem:[%s7284_s6 + $0x30] sm:$0xff]  }
 0x3b1   :  { %v750_v62 = vpack.c.bf16 %v737_v60, %v736_v40  ;;  %4899 = vmatpush3.bf16.msra.mxu0 %v5179_v57  ;;  %v5183_v40 = vld [vmem:[%s7284_s6 + $0x38] sm:$0xff]  }
 0x3b2   :  { %v5401_v0 = vpop.eup %5400  ;;  %4900 = vmatprep.subr.bf16.mxu0 %v5180_v52 }
 0x3b3   :  { %4872 = vmatprep.mubr.msk.bf16.mxu1 %vm571_vm0, %v750_v62  ;;  %v5403_v46 = vpop.eup %5402  ;;  %v743_v7 = vmul.f32 %v5401_v0, %v6095_v17 }
 0x3b4   :  { %4873 = vmatmul.mubr.msk.bf16.vlgmr.msra.gmra.mrb[8].mxu1 %vm571_vm0, %v751_v31  ;;  %v5405_v25 = vpop.eup %5404  ;;  %v740_v55 = vmul.f32 %v5403_v46, %v6039_v21 }
 0x3b5   :  { %4877 = vmatpush3.bf16.msra.mxu1 %v875_v63  ;;  %v742_v48 = vmul.f32 %v5405_v25, %v6035_v20  ;;  %4901 = vmatpush3.bf16.msra.mxu0 %v5180_v52 }
 0x3b6   :  { %v5407_v4 = vpop.eup %5406  ;;  %4878 = vmatprep.subr.bf16.mxu1 %v6115_v56  ;;  %4902 = vmatprep.subr.bf16.mxu0 %v5181_v8 }
 0x3b7   :  { %v741_v15 = vmul.f32 %v5407_v4, %v6099_v61  ;;  %v753_v14 = vpack.c.bf16 %v743_v7, %v742_v48  ;;  %v938_v61 = vpop.permute.xlu0 %937 }
 0x3b9   :  { %4879 = vmatpush3.bf16.msra.mxu1 %v6115_v56  ;;  %v752_v59 = vpack.c.bf16 %v741_v15, %v740_v55  ;;  %4903 = vmatpush3.bf16.msra.mxu0 %v5181_v8  ;;  %v5516_v8 = vld [vmem:[%s7312_s24 + $0x18] sm:$0xff] }
 0x3ba   :  { %4904 = vmatprep.subr.bf16.mxu0 %v5182_v58 }
 0x3bb   :  { %4880 = vmatprep.mubr.msk.bf16.mxu1 %vm571_vm0, %v752_v59 }
 0x3bc   :  { %4881 = vmatmul.mubr.msk.bf16.vlgmr.msra.gmra.mrb[12].mxu1 %vm571_vm0, %v753_v14 }
 0x3bd   :  { %4905 = vmatpush3.bf16.msra.mxu0 %v5182_v58 }
 0x3be   :  { %4906 = vmatprep.subr.bf16.mxu0 %v5183_v40 }
 0x3c1   :  { %4907 = vmatpush3.bf16.msra.mxu0 %v5183_v40  ;;  %v5517_v40 = vld [vmem:[%s7312_s24 + $0x10] sm:$0xff] }
 0x3f4   :  { %v715_v63 = vpop.xlane.xlu1 %714 }
 0x3f5   :  { %5408 = vrcp.f32 %v715_v63 }
 0x3f6   :  { %5410 = vrcp.f32 %v706_v26 }
 0x3f7   :  { %5412 = vrcp.f32 %v712_v53 }
 0x3f8   :  { %v709_v17 = vpop.xlane.xlu1 %708 }
 0x3f9   :  { %5414 = vrcp.f32 %v709_v17 }
 0x3fc   :  { %v936_v21 = vpop.permute.xlu1 %935 }
 0x3fd   :  { %4884 = vmatprep.subr.bf16.mxu1 %v936_v21 }
 0x3fe   :  { %4885 = vmatpush3.bf16.msra.mxu1 %v936_v21 }
 0x3ff   :  { %4886 = vmatprep.subr.bf16.mxu1 %v938_v61  ;;  %v5409_v20 = vpop.eup %5408 }
 0x400   :  { %v5411_v56 = vpop.eup %5410  ;;  %v747_v37 = vmul.f32 %v5409_v20, %v6105_v16 }
 0x401   :  { %v5413_v29 = vpop.eup %5412  ;;  %v744_v42 = vmul.f32 %v5411_v56, %v6047_v27 }
 0x402   :  { %4887 = vmatpush3.bf16.msra.mxu1 %v938_v61  ;;  %v746_v45 = vmul.f32 %v5413_v29, %v6043_v24 }
 0x403   :  { %v5415_v39 = vpop.eup %5414 }
 0x404   :  { %v745_v35 = vmul.f32 %v5415_v39, %v6109_v23  ;;  %v755_v50 = vpack.c.bf16 %v747_v37, %v746_v45 }
 0x406   :  { %v754_v47 = vpack.c.bf16 %v745_v35, %v744_v42 }
 0x408   :  { %4888 = vmatprep.mubr.msk.bf16.mxu1 %vm571_vm0, %v754_v47 }
 0x409   :  { %4889 = vmatmul.mubr.msk.bf16.vlgmr.msra.gmra.mrb[16].mxu1 %vm571_vm0, %v755_v50 }
 0x40a   :  { %1393 = vmatprep.mubr.bf16.mxu1 %v5574_v3 }
 0x47a   :  { %v6144_v49 = vpop.f32.mrb[4].mxu1 }
 0x47b   :  { %v6146_v1 = vpop.f32.mrb[5].mxu1 }
 0x47c   :  { %v6148_v43 = vpop.f32.mrb[6].mxu1 }
 0x47d   :  { %v6150_v16 = vpop.f32.mrb[7].mxu1 }
 0x487   :  { %v4874_v27 = vpop.f32.mrb[8].mxu1 }
 0x488   :  { %v859_v23 = vpop.f32.mrb[9].mxu1 }
 0x489   :  { %v4875_v2 = vpop.f32.mrb[10].mxu1 }
 0x48a   :  { %v5084_v24 = vpack.i.bf16 %v4875_v2, %v4874_v27  ;;  %v862_v54 = vpop.f32.mrb[11].mxu1 }
 0x48b   :  { %v5089_v9 = vpack.i.bf16 %v862_v54, %v859_v23  ;;  %v4218_v54 = vld [vmem:[%s7285_s7] ss:$0 sm:$0xff] }
 0x48c   :  { %5085 = vrot.lane.b32.xlu0 %v5084_v24, %s7304_s3 }
 0x48d   :  { %5090 = vrot.lane.b32.xlu1 %v5089_v9, %s7304_s3 }
 0x48f   :  { %v4882_v51 = vpop.f32.mrb[12].mxu1 }
 0x490   :  { %v920_v13 = vpop.f32.mrb[13].mxu1 }
 0x491   :  { %v4883_v12 = vpop.f32.mrb[14].mxu1 }
 0x492   :  { %v5094_v44 = vpack.i.bf16 %v4883_v12, %v4882_v51  ;;  %v923_v38 = vpop.f32.mrb[15].mxu1 }
 0x493   :  { %v5099_v30 = vpack.i.bf16 %v923_v38, %v920_v13 }
 0x494   :  { %5095 = vrot.lane.b32.xlu0 %v5094_v44, %s5576_s21  ;;  %v5514_v44 = vld [vmem:[%s7312_s24] sm:$0xff] }
 0x495   :  { %5100 = vrot.lane.b32.xlu1 %v5099_v30, %s5576_s21  ;;  %v5515_v30 = vld [vmem:[%s7312_s24 + $0x8] sm:$0xff] }
 0x4dc   :  { %v4890_v60 = vpop.f32.mrb[16].mxu1 }
 0x4dd   :  { %v981_v5 = vpop.f32.mrb[17].mxu1 }
 0x4de   :  { %v4891_v62 = vpop.f32.mrb[18].mxu1 }
 0x4df   :  { %v5109_v31 = vpack.i.bf16 %v4891_v62, %v4890_v60  ;;  %v984_v0 = vpop.f32.mrb[19].mxu1  ;;  %v5186_v62 = vld [vmem:[%s7288_s10 + $0x4] ss:$8 sps:$4 sm:$0xff]  }
 0x4e0   :  { %v5104_v46 = vpack.i.bf16 %v984_v0, %v981_v5  ;;  %v5184_v5 = vld [vmem:[%s7288_s10] ss:$8 sps:$4 sm:$0xff]   ;;  %1361 = vmatprep.subr.bf16.mxu1 %v5186_v62  ;;  %v5187_v0 = vld [vmem:[%s7288_s10 + $0x10] ss:$8 sps:$4 sm:$0xff]  }
 0x4e1   :  { %5110 = vrot.lane.b32.xlu0 %v5109_v31, %s5575_s30  ;;  %v5189_v31 = vld [vmem:[%s7288_s10 + $0x14] ss:$8 sps:$4 sm:$0xff]   ;;  %1362 = vmatpush1.bf16.msra.mxu1 %v5184_v5 }
 0x4e2   :  { %5105 = vrot.lane.b32.xlu1 %v5104_v46, %s5575_s30  ;;  %1363 = vmatprep.subr.bf16.mxu1 %v5189_v31  ;;  %v4227_v31 = vld [vmem:[%s7286_s8] ss:$0 sm:$0xff] }
 0x4e5   :  { %1364 = vmatpush1.bf16.msra.mxu1 %v5187_v0 }
 0x4fe   :  { %v5086_v25 = vpop.permute.xlu0 %5085 }
 0x4ff   :  { %v5091_v4 = vpop.permute.xlu1 %5090  ;;  %v5088_v55 = vunpack.i.h.bf16 %v5086_v25  ;;  %v5087_v15 = vunpack.i.l.bf16 %v5086_v25 }
 0x500   :  { %v5093_v59 = vunpack.i.h.bf16 %v5091_v4  ;;  %v5092_v14 = vunpack.i.l.bf16 %v5091_v4 }
 0x501   :  { %v1047_v21 = vsel %vm571_vm0, %v6148_v43, %v5088_v55  ;;  %v1046_v61 = vsel %vm571_vm0, %v6144_v49, %v5087_v15 }
 0x502   :  { %v1045_v56 = vsel %vm571_vm0, %v6150_v16, %v5093_v59  ;;  %v1044_v29 = vsel %vm571_vm0, %v6146_v1, %v5092_v14 }
 0x506   :  { %v5096_v7 = vpop.permute.xlu0 %5095 }
 0x507   :  { %v5101_v48 = vpop.permute.xlu1 %5100  ;;  %v5098_v53 = vunpack.i.h.bf16 %v5096_v7  ;;  %v5097_v26 = vunpack.i.l.bf16 %v5096_v7 }
 0x508   :  { %v5103_v63 = vunpack.i.h.bf16 %v5101_v48  ;;  %v5102_v17 = vunpack.i.l.bf16 %v5101_v48 }
 0x509   :  { %v1052_v35 = vsel %vm1048_vm1, %v1047_v21, %v5098_v53  ;;  %v1051_v45 = vsel %vm1048_vm1, %v1046_v61, %v5097_v26 }
 0x50a   :  { %v1049_v43 = vsel %vm1048_vm1, %v1044_v29, %v5102_v17  ;;  %v1050_v49 = vsel %vm1048_vm1, %v1045_v56, %v5103_v63  ;;  %v5192_v56 = vld [vmem:[%s7288_s10 + $0x24] ss:$8 sps:$4 sm:$0xff]   ;;  %v5190_v29 = vld [vmem:[%s7288_s10 + $0x20] ss:$8 sps:$4 sm:$0xff]  }
 0x50b   :  { %1365 = vmatprep.subr.bf16.mxu1 %v5192_v56 }
 0x50c   :  { %1366 = vmatpush1.bf16.msra.mxu1 %v5190_v29 }
 0x553   :  { %v5111_v20 = vpop.permute.xlu0 %5110 }
 0x554   :  { %v5113_v39 = vunpack.i.h.bf16 %v5111_v20  ;;  %v5112_v37 = vunpack.i.l.bf16 %v5111_v20  ;;  %v5106_v42 = vpop.permute.xlu1 %5105 }
 0x555   :  { %v5108_v47 = vunpack.i.h.bf16 %v5106_v42  ;;  %v5107_v50 = vunpack.i.l.bf16 %v5106_v42  ;;  %v5198_v42 = vld [vmem:[%s7288_s10 + $0x44] ss:$8 sps:$4 sm:$0xff]  }
 0x556   :  { %v1057_v27 = vsel %vm1053_vm2, %v1052_v35, %v5113_v39  ;;  %v1056_v16 = vsel %vm1053_vm2, %v1051_v45, %v5112_v37  ;;  %v5195_v39 = vld [vmem:[%s7288_s10 + $0x34] ss:$8 sps:$4 sm:$0xff]   ;;  %v5193_v37 = vld [vmem:[%s7288_s10 + $0x30] ss:$8 sps:$4 sm:$0xff]   ;;  %v5196_v35 = vld [vmem:[%s7288_s10 + $0x40] ss:$8 sps:$4 sm:$0xff]  }
 0x557   :  { %v1075_v23 = vpack.c.bf16 %v1057_v27, %v1056_v16  ;;  %v1054_v1 = vsel %vm1053_vm2, %v1049_v43, %v5107_v50  ;;  %v1055_v2 = vsel %vm1053_vm2, %v1050_v49, %v5108_v47  ;;  %1367 = vmatprep.subr.bf16.mxu1 %v5195_v39  ;;  %v5201_v45 = vld [vmem:[%s7288_s10 + $0x54] ss:$8 sps:$4 sm:$0xff]   ;;  %v5199_v47 = vld [vmem:[%s7288_s10 + $0x50] ss:$8 sps:$4 sm:$0xff]   ;;  %v5204_v50 = vld [vmem:[%s7288_s10 + $0x64] ss:$8 sps:$4 sm:$0xff]  }
 0x558   :  { %v1074_v24 = vpack.c.bf16 %v1055_v2, %v1054_v1  ;;  %1368 = vmatpush1.bf16.msra.mxu1 %v5193_v37  ;;  %v5202_v43 = vld [vmem:[%s7288_s10 + $0x60] ss:$8 sps:$4 sm:$0xff]   ;;  %v5207_v49 = vld [vmem:[%s7288_s10 + $0x74] ss:$8 sps:$4 sm:$0xff]   ;;  %v5205_v27 = vld [vmem:[%s7288_s10 + $0x70] ss:$8 sps:$4 sm:$0xff]  }
 0x559   :  { %1369 = vmatprep.subr.bf16.mxu1 %v5198_v42  ;;  %v5208_v16 = vld [vmem:[%s7290_s12 + $0x40] sm:$0xff]   ;;  %v5210_v1 = vld [vmem:[%s7290_s12 + $0x48] sm:$0xff]   ;;  %v5221_v37 = vld [vmem:[%s7290_s12 + $0x30] sm:$0xff]  }
 0x55a   :  { %4908 = vmatprep.mubr.bf16.mxu0 %v1074_v24  ;;  %4633 = vmatprep.subr.bf16.mxu0 %v5208_v16  ;;  %v5211_v2 = vld [vmem:[%s7290_s12 + $0x8] sm:$0xff]   ;;  %v5212_v24 = vld [vmem:[%s7290_s12 + $0x50] sm:$0xff]   ;;  %v5222_v42 = vld [vmem:[%s7290_s12 + $0x78] sm:$0xff]  }
 0x55b   :  { %4909 = vmatmul.mubr.bf16.vlgmr.msra.gmra.mrb[24].mxu0 %v1075_v23  ;;  %v5209_v23 = vld [vmem:[%s7290_s12] sm:$0xff]  }
 0x55c   :  { %1370 = vmatpush1.bf16.msra.mxu1 %v5196_v35  ;;  %4634 = vmatpush3.bf16.msra.mxu0 %v5209_v23  ;;  %v5223_v35 = vld [vmem:[%s7290_s12 + $0x38] sm:$0xff]  }
 0x55d   :  { %1371 = vmatprep.subr.bf16.mxu1 %v5201_v45  ;;  %4635 = vmatprep.subr.bf16.mxu0 %v5210_v1  ;;  %v1269_v45 = vld [vmem:[%s7289_s11] sm:$0x3] }
 0x560   :  { %1372 = vmatpush1.bf16.msra.mxu1 %v5199_v47  ;;  %4636 = vmatpush3.bf16.msra.mxu0 %v5211_v2  ;;  %v1274_v47 = vrot.slane %v1269_v45, %v5783_v34 }
 0x561   :  { %1373 = vmatprep.subr.bf16.mxu1 %v5204_v50  ;;  %4637 = vmatprep.subr.bf16.mxu0 %v5212_v24  ;;  %v1278_v50 = vrot.slane %v1269_v45, %v5791_v36 }
 0x564   :  { %1374 = vmatpush1.bf16.msra.mxu1 %v5202_v43 }
 0x565   :  { %1375 = vmatprep.subr.bf16.mxu1 %v5207_v49 }
 0x568   :  { %1376 = vmatpush1.bf16.msra.mxu1 %v5205_v27 }
 0x62e   :  { %v4910_v6 = vpop.f32.mrb[24].mxu0 }
 0x62f   :  { %v1165_v11 = vpop.f32.mrb[25].mxu0  ;;  %v1174_v57 = vadd.f32 %v4910_v6, %v4218_v54  ;;  %v5214_v6 = vld [vmem:[%s7290_s12 + $0x58] sm:$0xff]  }
 0x630   :  { %v1166_v9 = vadd.f32 %v4218_v54, %v1165_v11  ;;  %v4911_v10 = vpop.f32.mrb[26].mxu0  ;;  %v5215_v11 = vld [vmem:[%s7290_s12 + $0x18] sm:$0xff]  }
 0x631   :  { %v1168_v51 = vpop.f32.mrb[27].mxu0  ;;  %v1177_v13 = vadd.f32 %v4911_v10, %v4218_v54  ;;  %v1182_v60 = vadd.f32 %v5517_v40, %v1174_v57  ;;  %v5217_v10 = vld [vmem:[%s7290_s12 + $0x20] sm:$0xff]  }
 0x632   :  { %v1169_v12 = vadd.f32 %v4218_v54, %v1168_v51  ;;  %v1180_v38 = vadd.f32 %v5514_v44, %v1166_v9  ;;  %v5213_v54 = vld [vmem:[%s7290_s12 + $0x10] sm:$0xff]   ;;  %v5216_v9 = vld [vmem:[%s7290_s12 + $0x60] sm:$0xff]   ;;  %v5218_v51 = vld [vmem:[%s7290_s12 + $0x68] sm:$0xff]  }
 0x633   :  { %v1183_v58 = vadd.f32 %v5516_v8, %v1177_v13  ;;  %4638 = vmatpush3.bf16.msra.mxu0 %v5213_v54 }
 0x634   :  { %1186 = vadd.xlane.f32.xlu1 %v1180_v38  ;;  %v1181_v52 = vadd.f32 %v5515_v30, %v1169_v12  ;;  %4639 = vmatprep.subr.bf16.mxu0 %v5214_v6 }
 0x636   :  { %1188 = vadd.xlane.f32.xlu0 %v1181_v52 }
 0x637   :  { %4640 = vmatpush3.bf16.msra.mxu0 %v5215_v11 }
 0x638   :  { %1192 = vadd.xlane.f32.xlu1 %v1183_v58  ;;  %4641 = vmatprep.subr.bf16.mxu0 %v5216_v9 }
 0x63a   :  { %1190 = vadd.xlane.f32.xlu0 %v1182_v60 }
 0x63b   :  { %4642 = vmatpush3.bf16.msra.mxu0 %v5217_v10 }
 0x63c   :  { %4643 = vmatprep.subr.bf16.mxu0 %v5218_v51 }
 0x6c1   :  { %v1187_v46 = vpop.xlane.xlu1 %1186 }
 0x6c2   :  { %v1195_v25 = vmul.f32 0.0078125, %v1187_v46 }
 0x6c3   :  { %v1189_v4 = vpop.xlane.xlu0 %1188 }
 0x6c4   :  { %v6225_v7 = vsub.f32 %v1180_v38, %v1195_v25  ;;  %v1196_v55 = vmul.f32 0.0078125, %v1189_v4 }
 0x6c5   :  { %v1193_v15 = vpop.xlane.xlu1 %1192 }
 0x6c6   :  { %v6227_v48 = vsub.f32 %v1181_v52, %v1196_v55  ;;  %v1198_v59 = vmul.f32 0.0078125, %v1193_v15  ;;  %v1203_v14 = vmul.f32 %v6225_v7, %v6225_v7  ;;  %v4228_v55 = vld [vmem:[%s7287_s9] ss:$0 sm:$0xff] }
 0x6c7   :  { %v1191_v53 = vpop.xlane.xlu0 %1190 }
 0x6c8   :  { %v6231_v26 = vsub.f32 %v1183_v58, %v1198_v59  ;;  %v1197_v63 = vmul.f32 0.0078125, %v1191_v53  ;;  %1207 = vadd.xlane.f32.xlu0 %v1203_v14  ;;  %v1204_v17 = vmul.f32 %v6227_v48, %v6227_v48 }
 0x6ca   :  { %v6235_v21 = vsub.f32 %v1182_v60, %v1197_v63  ;;  %1209 = vadd.xlane.f32.xlu1 %v1204_v17  ;;  %v1206_v20 = vmul.f32 %v6231_v26, %v6231_v26 }
 0x6cc   :  { %v1205_v61 = vmul.f32 %v6235_v21, %v6235_v21 }
 0x6ce   :  { %1211 = vadd.xlane.f32.xlu0 %v1205_v61  ;;  %1213 = vadd.xlane.f32.xlu1 %v1206_v20 }
 0x755   :  { %v1208_v13 = vpop.xlane.xlu0 %1207 }
 0x756   :  { %v1215_v12 = vmul.f32 0.0078125, %v1208_v13 }
 0x757   :  { %v1210_v44 = vpop.xlane.xlu1 %1209 }
 0x758   :  { %v1219_v38 = vadd.f32 1e-05, %v1215_v12  ;;  %v1216_v57 = vmul.f32 0.0078125, %v1210_v44 }
 0x75a   :  { %5416 = vrsqrt.f32 %v1219_v38  ;;  %v1220_v30 = vadd.f32 1e-05, %v1216_v57 }
 0x75b   :  { %v1212_v52 = vpop.xlane.xlu0 %1211  ;;  %v1214_v8 = vpop.xlane.xlu1 %1213 }
 0x75c   :  { %5418 = vrsqrt.f32 %v1220_v30  ;;  %v1217_v58 = vmul.f32 0.0078125, %v1212_v52  ;;  %v1218_v40 = vmul.f32 0.0078125, %v1214_v8 }
 0x75e   :  { %v1221_v60 = vadd.f32 1e-05, %v1217_v58  ;;  %v1222_v5 = vadd.f32 1e-05, %v1218_v40 }
 0x760   :  { %5420 = vrsqrt.f32 %v1221_v60 }
 0x761   :  { %5422 = vrsqrt.f32 %v1222_v5 }
 0x764   :  { %v5417_v62 = vpop.eup %5416 }
 0x765   :  { %v1227_v0 = vmul.f32 %v5417_v62, %v6225_v7 }
 0x766   :  { %v5419_v46 = vpop.eup %5418 }
 0x767   :  { %v1228_v25 = vmul.f32 %v5419_v46, %v6227_v48  ;;  %v1237_v4 = vmul.f32 %v4227_v31, %v1227_v0  ;;  %v4245_v46 = vld [vmem:[%s7291_s13] ss:$0 sm:$0xff] }
 0x769   :  { %v1238_v15 = vmul.f32 %v4227_v31, %v1228_v25  ;;  %v6318_v53 = vadd.f32 %v4228_v55, %v1237_v4 }
 0x76a   :  { %v5421_v59 = vpop.eup %5420 }
 0x76b   :  { %v5423_v14 = vpop.eup %5422  ;;  %v6320_v63 = vadd.f32 %v4228_v55, %v1238_v15  ;;  %v1229_v17 = vmul.f32 %v5421_v59, %v6235_v21  ;;  %v5220_v21 = vld [vmem:[%s7290_s12 + $0x70] sm:$0xff]  }
 0x76c   :  { %v1230_v61 = vmul.f32 %v5423_v14, %v6231_v26  ;;  %v5219_v26 = vld [vmem:[%s7290_s12 + $0x28] sm:$0xff]  }
 0x76d   :  { %v1267_v7 = vpack.c.bf16 %v6320_v63, %v6318_v53  ;;  %v1239_v48 = vmul.f32 %v4227_v31, %v1229_v17  ;;  %4644 = vmatpush3.bf16.msra.mxu0 %v5219_v26 }
 0x76e   :  { %v1240_v20 = vmul.f32 %v4227_v31, %v1230_v61  ;;  %4645 = vmatprep.subr.bf16.mxu0 %v5220_v21 }
 0x76f   :  { %1394 = vmatmul.mubr.bf16.vlgmr.msra.gmra.mrb[20].mxu1 %v1267_v7  ;;  %v6327_v56 = vadd.f32 %v4228_v55, %v1239_v48 }
 0x770   :  { %1403 = vmatprep.mubr.bf16.mxu1 %v5574_v3  ;;  %v6329_v29 = vadd.f32 %v4228_v55, %v1240_v20 }
 0x771   :  { %4646 = vmatpush3.bf16.msra.mxu0 %v5221_v37 }
 0x772   :  { %v1268_v39 = vpack.c.bf16 %v6329_v29, %v6327_v56  ;;  %4647 = vmatprep.subr.bf16.mxu0 %v5222_v42 }
 0x775   :  { %4648 = vmatpush3.bf16.msra.mxu0 %v5223_v35 }
 0x777   :  { %1404 = vmatmul.mubr.bf16.gmra.mrb[24].mxu1 %v1268_v39 }
 0x778   :  { %1893 = vmatprep.mubr.bf16.mxu1 %v5574_v3 }
 0x842   :  { %v1395_v43 = vpop.f32.mrb[20].mxu1 }
 0x843   :  { %v1396_v49 = vadd.f32 %v1395_v43, %v1274_v47  ;;  %v1397_v27 = vpop.f32.mrb[21].mxu1 }
 0x844   :  { %v1398_v16 = vadd.f32 %v1397_v27, %v1278_v50  ;;  %v1399_v23 = vpop.f32.mrb[22].mxu1 }
 0x845   :  { %v1400_v1 = vadd.f32 %v1399_v23, %v1274_v47  ;;  %v1401_v2 = vpop.f32.mrb[23].mxu1  ;;  %v1414_v54 = vmax.f32 %v1396_v49, 0.0 }
 0x846   :  { %v1402_v24 = vadd.f32 %v1401_v2, %v1278_v50  ;;  %v1415_v11 = vmax.f32 %v1398_v16, 0.0 }
 0x847   :  { %v1416_v6 = vmax.f32 %v1400_v1, 0.0 }
 0x848   :  { %v1417_v9 = vmax.f32 %v1402_v24, 0.0 }
 0x849   :  { %v1454_v10 = vpack.c.bf16 %v1416_v6, %v1414_v54 }
 0x84a   :  { %v1455_v51 = vpack.c.bf16 %v1417_v9, %v1415_v11  ;;  %v1405_v13 = vpop.f32.mrb[24].mxu1 }
 0x84b   :  { %v1406_v12 = vadd.f32 %v1405_v13, %v1274_v47  ;;  %v1407_v44 = vpop.f32.mrb[25].mxu1 }
 0x84c   :  { %v1408_v38 = vadd.f32 %v1407_v44, %v1278_v50  ;;  %v1409_v57 = vpop.f32.mrb[26].mxu1  ;;  %1593 = vmatprep.mubr.bf16.mxu0 %v1455_v51  ;;  %v5233_v44 = vld [vmem:[%s7311_s2 + $0xc8] ss:$12 sps:$4 sm:$0xff]  }
 0x84d   :  { %v1410_v30 = vadd.f32 %v1409_v57, %v1274_v47  ;;  %v1411_v52 = vpop.f32.mrb[27].mxu1  ;;  %1594 = vmatmul.mubr.bf16.vlgmr.msra.gmra.mrb[28].mxu0 %v1454_v10  ;;  %v1418_v58 = vmax.f32 %v1406_v12, 0.0  ;;  %v5232_v12 = vld [vmem:[%s7311_s2 + $0xf4] ss:$12 sps:$4 sm:$0xff]   ;;  %4912 = vmatprep.subr.bf16.mxu0 %v5233_v44  ;;  %v5236_v57 = vld [vmem:[%s7311_s2 + $0x10c] ss:$12 sps:$4 sm:$0xff]  }
 0x84e   :  { %v1412_v8 = vadd.f32 %v1411_v52, %v1278_v50  ;;  %v1419_v60 = vmax.f32 %v1408_v38, 0.0  ;;  %v5229_v50 = vld [vmem:[%s7311_s2 + $0xdc] ss:$12 sps:$4 sm:$0xff]   ;;  %4913 = vmatpush3.bf16.msra.mxu0 %v5233_v44 }
 0x84f   :  { %v1420_v40 = vmax.f32 %v1410_v30, 0.0  ;;  %v5230_v38 = vld [vmem:[%s7311_s2 + $0xf0] ss:$12 sps:$4 sm:$0xff]   ;;  %v5237_v30 = vld [vmem:[%s7311_s2 + $0xe0] ss:$12 sps:$4 sm:$0xff]  }
 0x850   :  { %v1421_v5 = vmax.f32 %v1412_v8, 0.0  ;;  %v5234_v52 = vld [vmem:[%s7311_s2 + $0x108] ss:$12 sps:$4 sm:$0xff]   ;;  %4914 = vmatprep.subr.bf16.mxu0 %v5237_v30  ;;  %v5240_v8 = vld [vmem:[%s7311_s2 + $0x124] ss:$12 sps:$4 sm:$0xff]  }
 0x851   :  { %v1456_v62 = vpack.c.bf16 %v1420_v40, %v1418_v58  ;;  %v5241_v58 = vld [vmem:[%s7311_s2 + $0xf8] ss:$12 sps:$4 sm:$0xff]   ;;  %v5238_v40 = vld [vmem:[%s7311_s2 + $0x120] ss:$12 sps:$4 sm:$0xff]  }
 0x852   :  { %v1457_v31 = vpack.c.bf16 %v1421_v5, %v1419_v60  ;;  %4915 = vmatpush3.bf16.msra.mxu0 %v5237_v30  ;;  %v5244_v60 = vld [vmem:[%s7311_s2 + $0x13c] ss:$12 sps:$4 sm:$0xff]  }
 0x853   :  { %4916 = vmatprep.subr.bf16.mxu0 %v5241_v58  ;;  %v5245_v5 = vld [vmem:[%s7311_s2 + $0x110] ss:$12 sps:$4 sm:$0xff]  }
 0x854   :  { %1601 = vmatprep.mubr.bf16.mxu0 %v1457_v31  ;;  %v5248_v31 = vld [vmem:[%s7311_s2 + $0x154] ss:$12 sps:$4 sm:$0xff]  }
 0x855   :  { %1602 = vmatmul.mubr.bf16.gmra.mrb[32].mxu0 %v1456_v62  ;;  %v5242_v62 = vld [vmem:[%s7311_s2 + $0x138] ss:$12 sps:$4 sm:$0xff]  }
 0x856   :  { %4917 = vmatpush3.bf16.msra.mxu0 %v5241_v58 }
 0x857   :  { %4918 = vmatprep.subr.bf16.mxu0 %v5245_v5 }
 0x85a   :  { %4919 = vmatpush3.bf16.msra.mxu0 %v5245_v5 }
 0x920   :  { %v4649_v0 = vpop.f32.mrb[28].mxu0 }
 0x921   :  { %v4650_v25 = vpop.f32.mrb[29].mxu0 }
 0x922   :  { %v4651_v4 = vadd.f32 %v4650_v25, %v4649_v0  ;;  %v4652_v55 = vpop.f32.mrb[30].mxu0  ;;  %v5249_v0 = vld [vmem:[%s7311_s2 + $0x128] ss:$12 sps:$4 sm:$0xff]  }
 0x923   :  { %v4653_v15 = vpop.f32.mrb[31].mxu0  ;;  %4920 = vmatprep.subr.bf16.mxu0 %v5249_v0  ;;  %v5250_v25 = vld [vmem:[%s7311_s2 + $0x168] ss:$12 sps:$4 sm:$0xff]  }
 0x924   :  { %v1596_v59 = vadd.f32 %v4651_v4, %v4245_v46  ;;  %v4654_v14 = vadd.f32 %v4653_v15, %v4652_v55  ;;  %4921 = vmatpush3.bf16.msra.mxu0 %v5249_v0  ;;  %v5252_v4 = vld [vmem:[%s7311_s2 + $0x16c] ss:$12 sps:$4 sm:$0xff]  }
 0x925   :  { %v5253_v55 = vld [vmem:[%s7311_s2 + $0x140] ss:$12 sps:$4 sm:$0xff]   ;;  %v5254_v15 = vld [vmem:[%s7311_s2 + $0x158] ss:$12 sps:$4 sm:$0xff]  }
 0x926   :  { %v1599_v17 = vadd.f32 %v4654_v14, %v4245_v46  ;;  %v1610_v61 = vadd.f32 %v1596_v59, %v6318_v53  ;;  %v5224_v53 = vld [vmem:[%s7311_s2 + $0xc0] ss:$12 sps:$4 sm:$0xff]   ;;  %4922 = vmatprep.subr.bf16.mxu0 %v5253_v55  ;;  %v5255_v59 = vld [vmem:[%s7311_s2 + $0x170] ss:$12 sps:$4 sm:$0xff]  }
 0x928   :  { %1616 = vadd.xlane.f32.xlu0 %v1610_v61  ;;  %v4655_v7 = vpop.f32.mrb[32].mxu0  ;;  %v1611_v48 = vadd.f32 %v1599_v17, %v6320_v63  ;;  %v5226_v63 = vld [vmem:[%s7311_s2 + $0xc4] ss:$12 sps:$4 sm:$0xff]   ;;  %4923 = vmatpush3.bf16.msra.mxu0 %v5253_v55  ;;  %v5522_v55 = vld [vmem:[%s7313_s26 + $0x8] sm:$0xff] }
 0x929   :  { %v4656_v20 = vpop.f32.mrb[33].mxu0  ;;  %1861 = vmatprep.subr.bf16.mxu1 %v5226_v63  ;;  %4924 = vmatprep.subr.bf16.mxu0 %v5254_v15 }
 0x92a   :  { %v4657_v39 = vadd.f32 %v4656_v20, %v4655_v7  ;;  %1618 = vadd.xlane.f32.xlu1 %v1611_v48  ;;  %v4658_v26 = vpop.f32.mrb[34].mxu0  ;;  %1862 = vmatpush1.bf16.msra.mxu1 %v5224_v53 }
 0x92b   :  { %v4659_v21 = vpop.f32.mrb[35].mxu0  ;;  %1863 = vmatprep.subr.bf16.mxu1 %v5229_v50 }
 0x92c   :  { %v1604_v37 = vadd.f32 %v4657_v39, %v4245_v46  ;;  %v4660_v42 = vadd.f32 %v4659_v21, %v4658_v26  ;;  %4925 = vmatpush3.bf16.msra.mxu0 %v5254_v15 }
 0x92d   :  { %4926 = vmatprep.subr.bf16.mxu0 %v5255_v59 }
 0x92e   :  { %v1607_v35 = vadd.f32 %v4660_v42, %v4245_v46  ;;  %v1612_v45 = vadd.f32 %v1604_v37, %v6327_v56  ;;  %v5227_v56 = vld [vmem:[%s7311_s2 + $0xd8] ss:$12 sps:$4 sm:$0xff]   ;;  %v5246_v46 = vld [vmem:[%s7311_s2 + $0x150] ss:$12 sps:$4 sm:$0xff]  }
 0x92f   :  { %1864 = vmatpush1.bf16.msra.mxu1 %v5227_v56 }
 0x930   :  { %1620 = vadd.xlane.f32.xlu0 %v1612_v45  ;;  %v1613_v47 = vadd.f32 %v1607_v35, %v6329_v29  ;;  %1865 = vmatprep.subr.bf16.mxu1 %v5232_v12 }
 0x931   :  { %4927 = vmatpush3.bf16.msra.mxu0 %v5255_v59  ;;  %v5523_v59 = vld [vmem:[%s7313_s26 + $0x28] sm:$0xff] }
 0x932   :  { %1622 = vadd.xlane.f32.xlu1 %v1613_v47 }
 0x933   :  { %1866 = vmatpush1.bf16.msra.mxu1 %v5230_v38 }
 0x934   :  { %1867 = vmatprep.subr.bf16.mxu1 %v5236_v57 }
 0x937   :  { %1868 = vmatpush1.bf16.msra.mxu1 %v5234_v52 }
 0x938   :  { %1869 = vmatprep.subr.bf16.mxu1 %v5240_v8 }
 0x93b   :  { %1870 = vmatpush1.bf16.msra.mxu1 %v5238_v40 }
 0x93c   :  { %1871 = vmatprep.subr.bf16.mxu1 %v5244_v60  ;;  %v5518_v60 = vld [vmem:[%s7313_s26] sm:$0xff] }
 0x93f   :  { %1872 = vmatpush1.bf16.msra.mxu1 %v5242_v62 }
 0x940   :  { %1873 = vmatprep.subr.bf16.mxu1 %v5248_v31  ;;  %v5519_v31 = vld [vmem:[%s7313_s26 + $0x20] sm:$0xff] }
 0x943   :  { %1874 = vmatpush1.bf16.msra.mxu1 %v5246_v46  ;;  %v5520_v46 = vld [vmem:[%s7313_s26 + $0x40] sm:$0xff] }
 0x944   :  { %1875 = vmatprep.subr.bf16.mxu1 %v5252_v4 }
 0x947   :  { %1876 = vmatpush1.bf16.msra.mxu1 %v5250_v25 }
 0x9b5   :  { %v1617_v29 = vpop.xlane.xlu0 %1616 }
 0x9b6   :  { %v1624_v43 = vmul.f32 0.0078125, %v1617_v29  ;;  %v4263_v29 = vld [vmem:[%s7293_s15] ss:$0 sm:$0xff] }
 0x9b7   :  { %v1619_v49 = vpop.xlane.xlu1 %1618 }
 0x9b8   :  { %v6373_v27 = vsub.f32 %v1610_v61, %v1624_v43  ;;  %v1625_v16 = vmul.f32 0.0078125, %v1619_v49 }
 0x9ba   :  { %v6375_v23 = vsub.f32 %v1611_v48, %v1625_v16  ;;  %v1632_v1 = vmul.f32 %v6373_v27, %v6373_v27 }
 0x9bc   :  { %1636 = vadd.xlane.f32.xlu0 %v1632_v1  ;;  %v1633_v2 = vmul.f32 %v6375_v23, %v6375_v23 }
 0x9bd   :  { %v1621_v24 = vpop.xlane.xlu0 %1620 }
 0x9be   :  { %v1626_v54 = vmul.f32 0.0078125, %v1621_v24  ;;  %1638 = vadd.xlane.f32.xlu1 %v1633_v2 }
 0x9bf   :  { %v1623_v6 = vpop.xlane.xlu1 %1622 }
 0x9c0   :  { %v6381_v11 = vsub.f32 %v1612_v45, %v1626_v54  ;;  %v1627_v9 = vmul.f32 0.0078125, %v1623_v6 }
 0x9c2   :  { %v6383_v10 = vsub.f32 %v1613_v47, %v1627_v9  ;;  %v1634_v51 = vmul.f32 %v6381_v11, %v6381_v11  ;;  %v4262_v47 = vld [vmem:[%s7292_s14] ss:$0 sm:$0xff] }
 0x9c4   :  { %1640 = vadd.xlane.f32.xlu0 %v1634_v51  ;;  %v1635_v13 = vmul.f32 %v6383_v10, %v6383_v10 }
 0x9c6   :  { %1642 = vadd.xlane.f32.xlu1 %v1635_v13 }
 0xa49   :  { %v1637_v14 = vpop.xlane.xlu0 %1636 }
 0xa4a   :  { %v1644_v17 = vmul.f32 0.0078125, %v1637_v14 }
 0xa4b   :  { %v1639_v61 = vpop.xlane.xlu1 %1638 }
 0xa4c   :  { %v1648_v7 = vadd.f32 1e-05, %v1644_v17  ;;  %v1645_v48 = vmul.f32 0.0078125, %v1639_v61  ;;  %v5524_v17 = vld [vmem:[%s7313_s26 + $0x48] sm:$0xff] }
 0xa4e   :  { %5424 = vrsqrt.f32 %v1648_v7  ;;  %v1649_v20 = vadd.f32 1e-05, %v1645_v48  ;;  %v5525_v7 = vld [vmem:[%s7313_s26 + $0x68] sm:$0xff] }
 0xa50   :  { %5426 = vrsqrt.f32 %v1649_v20 }
 0xa51   :  { %v1641_v39 = vpop.xlane.xlu0 %1640 }
 0xa52   :  { %v1646_v26 = vmul.f32 0.0078125, %v1641_v39 }
 0xa53   :  { %v1643_v21 = vpop.xlane.xlu1 %1642 }
 0xa54   :  { %v1650_v37 = vadd.f32 1e-05, %v1646_v26  ;;  %v1647_v42 = vmul.f32 0.0078125, %v1643_v21 }
 0xa56   :  { %5428 = vrsqrt.f32 %v1650_v37  ;;  %v1651_v35 = vadd.f32 1e-05, %v1647_v42 }
 0xa58   :  { %v5425_v45 = vpop.eup %5424  ;;  %5430 = vrsqrt.f32 %v1651_v35 }
 0xa59   :  { %v1656_v53 = vmul.f32 %v5425_v45, %v6373_v27 }
 0xa5a   :  { %v5427_v63 = vpop.eup %5426 }
 0xa5b   :  { %v1666_v50 = vmul.f32 %v4262_v47, %v1656_v53  ;;  %v1657_v56 = vmul.f32 %v5427_v63, %v6375_v23 }
 0xa5d   :  { %v1667_v43 = vmul.f32 %v4262_v47, %v1657_v56  ;;  %v6457_v49 = vadd.f32 %v4263_v29, %v1666_v50 }
 0xa5f   :  { %v6459_v16 = vadd.f32 %v4263_v29, %v1667_v43 }
 0xa60   :  { %v5429_v1 = vpop.eup %5428 }
 0xa61   :  { %v1713_v2 = vpack.c.bf16 %v6459_v16, %v6457_v49  ;;  %v1658_v24 = vmul.f32 %v5429_v1, %v6381_v11  ;;  %v4296_v11 = vld [vmem:[%s7283_s5 + $0x3] sm:$0x7]  ;;  %v5526_v1 = vld [vmem:[%s7313_s26 + $0x10] sm:$0xff] }
 0xa62   :  { %v5431_v27 = vpop.eup %5430  ;;  %v1721_v12 = vrot.slane %v4296_v11, %v5783_v34  ;;  %v1729_v40 = vrot.slane %v4296_v11, %v155_v18  ;;  %v5521_v18 = vld [vmem:[%s7313_s26 + $0x60] sm:$0xff] }
 0xa63   :  { %1894 = vmatmul.mubr.bf16.vlgmr.msra.gmra.mrb[28].mxu1 %v1713_v2  ;;  %4928 = vmatprep.mubr.bf16.mxu0 %v1713_v2  ;;  %v1659_v23 = vmul.f32 %v5431_v27, %v6383_v10  ;;  %v1668_v54 = vmul.f32 %v4262_v47, %v1658_v24  ;;  %v1725_v10 = vrot.slane %v4296_v11, %v5791_v36 }
 0xa64   :  { %1903 = vmatprep.mubr.bf16.mxu1 %v5574_v3 }
 0xa65   :  { %v1669_v6 = vmul.f32 %v4262_v47, %v1659_v23  ;;  %v6466_v9 = vadd.f32 %v4263_v29, %v1668_v54 }
 0xa67   :  { %v6468_v51 = vadd.f32 %v4263_v29, %v1669_v6 }
 0xa69   :  { %v1714_v13 = vpack.c.bf16 %v6468_v51, %v6466_v9 }
 0xa6b   :  { %1904 = vmatmul.mubr.bf16.gmra.mrb[32].mxu1 %v1714_v13  ;;  %4929 = vmatmul.mubr.bf16.vlgmr.msra.gmra.mrb[36].mxu0 %v1714_v13 }
 0xb36   :  { %v1895_v44 = vpop.f32.mrb[28].mxu1 }
 0xb37   :  { %v1896_v38 = vadd.f32 %v1895_v44, %v1721_v12  ;;  %v1897_v57 = vpop.f32.mrb[29].mxu1 }
 0xb38   :  { %v1899_v30 = vpop.f32.mrb[30].mxu1  ;;  %v1898_v52 = vadd.f32 %v1897_v57, %v1725_v10 }
 0xb39   :  { %v1900_v8 = vadd.f32 %v1899_v30, %v1721_v12  ;;  %v1901_v58 = vpop.f32.mrb[31].mxu1  ;;  %v1971_v5 = vmul.f32 %v5518_v60, %v1896_v38  ;;  %v6485_v0 = vmul.f32 %v5519_v31, %v1896_v38  ;;  %v6490_v25 = vmul.f32 %v5520_v46, %v1896_v38  ;;  %v5528_v30 = vld [vmem:[%s7313_s26 + $0x18] sm:$0xff] }
 0xb3a   :  { %v1902_v62 = vadd.f32 %v1901_v58, %v1725_v10  ;;  %v6495_v4 = vmul.f32 %v5521_v18, %v1896_v38  ;;  %v5527_v38 = vld [vmem:[%s7313_s26 + $0x30] sm:$0xff]  ;;  %v5531_v60 = vld [vmem:[%s7313_s26 + $0x58] sm:$0xff] }
 0xb3b   :  { %v1972_v15 = vmul.f32 %v5522_v55, %v1900_v8  ;;  %v6503_v14 = vmul.f32 %v5523_v59, %v1900_v8  ;;  %v6508_v61 = vmul.f32 %v5524_v17, %v1900_v8  ;;  %v6513_v48 = vmul.f32 %v5525_v7, %v1900_v8 }
 0xb3c   :  { %v1963_v20 = vpack.c.bf16 %v1902_v62, %v1898_v52 }
 0xb3d   :  { %v1987_v39 = vpack.c.bf16 %v1972_v15, %v1971_v5  ;;  %v1989_v26 = vpack.c.bf16 %v6503_v14, %v6485_v0  ;;  %v1991_v21 = vpack.c.bf16 %v6508_v61, %v6490_v25  ;;  %v1993_v37 = vpack.c.bf16 %v6513_v48, %v6495_v4  ;;  %v5533_v25 = vld [vmem:[%s7313_s26 + $0x78] sm:$0xff] }
 0xb3e   :  { %v1905_v42 = vpop.f32.mrb[32].mxu1  ;;  %v4930_v35 = vpop.f32.mrb[36].mxu0  ;;  %4932 = vmatprep.subr.bf16.mxu1 %v1963_v20 }
 0xb3f   :  { %v1906_v45 = vadd.f32 %v1905_v42, %v1721_v12  ;;  %v1957_v47 = vadd.f32 %v4930_v35, %v1729_v40  ;;  %v1907_v53 = vpop.f32.mrb[33].mxu1  ;;  %v1948_v63 = vpop.f32.mrb[37].mxu0  ;;  %4933 = vmatpush3.bf16.xpose.msra.mxu1 %v1963_v20  ;;  %4936 = vmatprep.mubr.bf16.mxu1 %v1987_v39  ;;  %v5534_v20 = vld [vmem:[%s7314_s0 + $0x10] sm:$0xff]  ;;  %v5536_v35 = vld [vmem:[%s7314_s0] sm:$0xff] }
 0xb40   :  { %v1908_v50 = vadd.f32 %v1907_v53, %v1725_v10  ;;  %v1949_v56 = vadd.f32 %v1948_v63, %v1729_v40  ;;  %v1909_v29 = vpop.f32.mrb[34].mxu1  ;;  %v4931_v43 = vpop.f32.mrb[38].mxu0  ;;  %v5537_v53 = vld [vmem:[%s7314_s0 + $0x8] sm:$0xff] }
 0xb41   :  { %v1973_v2 = vmul.f32 %v5526_v1, %v1906_v45  ;;  %v1967_v24 = vmul.f32 %v1957_v47, %v5981_v22  ;;  %v1910_v27 = vadd.f32 %v1909_v29, %v1721_v12  ;;  %v1960_v23 = vadd.f32 %v4931_v43, %v1729_v40  ;;  %v1911_v54 = vpop.f32.mrb[35].mxu1  ;;  %v1951_v6 = vpop.f32.mrb[39].mxu0  ;;  %v5529_v12 = vld [vmem:[%s7313_s26 + $0x38] sm:$0xff] }
 0xb42   :  { %v1965_v13 = vmul.f32 %v1949_v56, %v5989_v41  ;;  %v1912_v11 = vadd.f32 %v1911_v54, %v1725_v10  ;;  %v1952_v44 = vadd.f32 %v1951_v6, %v1729_v40  ;;  %v1977_v57 = vmul.f32 %v5527_v38, %v1906_v45  ;;  %v5530_v41 = vld [vmem:[%s7313_s26 + $0x50] sm:$0xff] }
 0xb43   :  { %v1974_v52 = vmul.f32 %v5528_v30, %v1910_v27  ;;  %v1968_v22 = vmul.f32 %v1960_v23, %v5983_v28  ;;  %v1978_v8 = vmul.f32 %v5529_v12, %v1910_v27  ;;  %v1981_v10 = vmul.f32 %v5530_v41, %v1906_v45  ;;  %v5532_v28 = vld [vmem:[%s7313_s26 + $0x70] sm:$0xff] }
 0xb44   :  { %v1964_v58 = vpack.c.bf16 %v1912_v11, %v1908_v50  ;;  %v1966_v40 = vmul.f32 %v1952_v44, %v5976_v19  ;;  %v1982_v5 = vmul.f32 %v5531_v60, %v1910_v27  ;;  %v1985_v62 = vmul.f32 %v5532_v28, %v1906_v45  ;;  %v5538_v54 = vld [vmem:[%s7314_s0 + $0x30] sm:$0xff]  ;;  %v5539_v44 = vld [vmem:[%s7314_s0 + $0x38] sm:$0xff] }
 0xb45   :  { %v1988_v31 = vpack.c.bf16 %v1974_v52, %v1973_v2  ;;  %v6546_v0 = vpack.c.bf16 %v1968_v22, %v1967_v24  ;;  %v1990_v46 = vpack.c.bf16 %v1978_v8, %v1977_v57  ;;  %v1986_v18 = vmul.f32 %v5533_v25, %v1910_v27  ;;  %v5540_v57 = vld [vmem:[%s7314_s0 + $0x20] sm:$0xff]  ;;  %v5541_v22 = vld [vmem:[%s7314_s0 + $0x28] sm:$0xff] }
 0xb46   :  { %v6551_v19 = vpack.c.bf16 %v1966_v40, %v1965_v13  ;;  %4934 = vmatprep.subr.bf16.mxu1 %v1964_v58  ;;  %v1992_v4 = vpack.c.bf16 %v1982_v5, %v1981_v10 }
 0xb47   :  { %4935 = vmatpush3.bf16.xpose.msra.mxu1 %v1964_v58  ;;  %v1994_v55 = vpack.c.bf16 %v1986_v18, %v1985_v62 }
 0xb48   :  { %4952 = vmatprep.subr.bf16.mxu0 %v6551_v19 }
 0xb49   :  { %4953 = vmatpush3.bf16.msra.mxu0 %v6551_v19 }
 0xb4a   :  { %4954 = vmatprep.subr.bf16.mxu0 %v6546_v0 }
 0xb4d   :  { %4955 = vmatpush3.bf16.msra.mxu0 %v6546_v0 }
 0xb4e   :  { %4937 = vmatmul.mubr.bf16.vlgmr.msra.gmra.mrb[36].mxu1 %v1988_v31  ;;  %v5542_v31 = vld [vmem:[%s7314_s0 + $0x50] sm:$0xff] }
 0xb4f   :  { %4940 = vmatprep.mubr.bf16.mxu1 %v1989_v26 }
 0xb56   :  { %4941 = vmatmul.mubr.bf16.gmra.mrb[40].mxu1 %v1990_v46 }
 0xb57   :  { %4944 = vmatprep.mubr.bf16.mxu1 %v1991_v21  ;;  %v5535_v21 = vld [vmem:[%s7314_s0 + $0x18] sm:$0xff] }
 0xb5e   :  { %4945 = vmatmul.mubr.bf16.gmra.mrb[44].mxu1 %v1992_v4  ;;  %v5543_v4 = vld [vmem:[%s7314_s0 + $0x58] sm:$0xff] }
 0xb5f   :  { %4948 = vmatprep.mubr.bf16.mxu1 %v1993_v37 }
 0xb66   :  { %4949 = vmatmul.mubr.bf16.gmra.mrb[48].mxu1 %v1994_v55 }
 0xc21   :  { %v4938_v15 = vpop.f32.mrb[36].mxu1 }
 0xc22   :  { %v2094_v59 = vmul.f32 0.17677669, %v4938_v15  ;;  %v2029_v14 = vpop.f32.mrb[37].mxu1  ;;  %v5544_v15 = vld [vmem:[%s7314_s0 + $0x40] sm:$0xff] }
 0xc23   :  { %v2092_v17 = vmul.f32 0.17677669, %v2029_v14  ;;  %v4939_v61 = vpop.f32.mrb[38].mxu1 }
 0xc24   :  { %v2095_v7 = vmul.f32 0.17677669, %v4939_v61  ;;  %v2032_v48 = vpop.f32.mrb[39].mxu1  ;;  %v6560_v39 = vadd.f32 %v5534_v20, %v2094_v59 }
 0xc25   :  { %v2093_v42 = vmul.f32 0.17677669, %v2032_v48  ;;  %v6572_v45 = vadd.f32 %v5536_v35, %v2092_v17  ;;  %v5545_v17 = vld [vmem:[%s7314_s0 + $0x48] sm:$0xff] }
 0xc26   :  { %v2130_v26 = vsel %vm571_vm0, %v6560_v39, -inf  ;;  %v6567_v37 = vadd.f32 %v5535_v21, %v2095_v7 }
 0xc27   :  { %2131 = vmax.xlane.f32.xlu0 %v2130_v26  ;;  %v6579_v63 = vadd.f32 %v5537_v53, %v2093_v42  ;;  %v2124_v43 = vsel %vm571_vm0, %v6572_v45, -inf  ;;  %v5546_v53 = vld [vmem:[%s7314_s0 + $0x70] sm:$0xff] }
 0xc28   :  { %v2133_v47 = vsel %vm571_vm0, %v6567_v37, -inf }
 0xc29   :  { %2134 = vmax.xlane.f32.xlu1 %v2133_v47  ;;  %v4942_v50 = vpop.f32.mrb[40].mxu1  ;;  %v2127_v23 = vsel %vm571_vm0, %v6579_v63, -inf }
 0xc2a   :  { %v2098_v56 = vmul.f32 0.17677669, %v4942_v50  ;;  %v2045_v29 = vpop.f32.mrb[41].mxu1 }
 0xc2b   :  { %v2096_v1 = vmul.f32 0.17677669, %v2045_v29  ;;  %2125 = vmax.xlane.f32.xlu0 %v2124_v43  ;;  %v4943_v2 = vpop.f32.mrb[42].mxu1  ;;  %v5547_v29 = vld [vmem:[%s7314_s0 + $0x60] sm:$0xff] }
 0xc2c   :  { %v2099_v24 = vmul.f32 0.17677669, %v4943_v2  ;;  %v2048_v27 = vpop.f32.mrb[43].mxu1  ;;  %v6588_v6 = vadd.f32 %v5538_v54, %v2098_v56 }
 0xc2d   :  { %v2097_v13 = vmul.f32 0.17677669, %v2048_v27  ;;  %2128 = vmax.xlane.f32.xlu1 %v2127_v23  ;;  %v6600_v30 = vadd.f32 %v5540_v57, %v2096_v1  ;;  %v5548_v27 = vld [vmem:[%s7314_s0 + $0x78] sm:$0xff] }
 0xc2e   :  { %v2142_v11 = vsel %vm571_vm0, %v6588_v6, -inf  ;;  %v6595_v38 = vadd.f32 %v5539_v44, %v2099_v24 }
 0xc2f   :  { %2143 = vmax.xlane.f32.xlu0 %v2142_v11  ;;  %v6607_v12 = vadd.f32 %v5541_v22, %v2097_v13  ;;  %v2136_v58 = vsel %vm571_vm0, %v6600_v30, -inf  ;;  %v5549_v13 = vld [vmem:[%s7314_s0 + $0x68] sm:$0xff]  ;;  %s7316_s0 = smov 32  }
 0xc30   :  { %v2145_v52 = vsel %vm571_vm0, %v6595_v38, -inf }
 0xc31   :  { %2146 = vmax.xlane.f32.xlu1 %v2145_v52  ;;  %v4946_v8 = vpop.f32.mrb[44].mxu1  ;;  %v2139_v62 = vsel %vm571_vm0, %v6607_v12, -inf }
 0xc32   :  { %v2102_v41 = vmul.f32 0.17677669, %v4946_v8  ;;  %v2061_v10 = vpop.f32.mrb[45].mxu1 }
 0xc33   :  { %v2100_v40 = vmul.f32 0.17677669, %v2061_v10  ;;  %2137 = vmax.xlane.f32.xlu0 %v2136_v58  ;;  %v4947_v60 = vpop.f32.mrb[46].mxu1 }
 0xc34   :  { %v2103_v5 = vmul.f32 0.17677669, %v4947_v60  ;;  %v2064_v28 = vpop.f32.mrb[47].mxu1  ;;  %v6616_v46 = vadd.f32 %v5542_v31, %v2102_v41 }
 0xc35   :  { %v2101_v25 = vmul.f32 0.17677669, %v2064_v28  ;;  %2140 = vmax.xlane.f32.xlu1 %v2139_v62  ;;  %v6628_v59 = vadd.f32 %v5544_v15, %v2100_v40 }
 0xc36   :  { %v2154_v18 = vsel %vm571_vm0, %v6616_v46, -inf  ;;  %v6623_v55 = vadd.f32 %v5543_v4, %v2103_v5 }
 0xc37   :  { %2155 = vmax.xlane.f32.xlu0 %v2154_v18  ;;  %v6635_v61 = vadd.f32 %v5545_v17, %v2101_v25  ;;  %v2148_v42 = vsel %vm571_vm0, %v6628_v59, -inf }
 0xc38   :  { %v2157_v14 = vsel %vm571_vm0, %v6623_v55, -inf }
 0xc39   :  { %2158 = vmax.xlane.f32.xlu1 %v2157_v14  ;;  %v4950_v7 = vpop.f32.mrb[48].mxu1  ;;  %v2151_v47 = vsel %vm571_vm0, %v6635_v61, -inf }
 0xc3a   :  { %v2106_v48 = vmul.f32 0.17677669, %v4950_v7  ;;  %v2077_v20 = vpop.f32.mrb[49].mxu1 }
 0xc3b   :  { %v2104_v26 = vmul.f32 0.17677669, %v2077_v20  ;;  %2149 = vmax.xlane.f32.xlu0 %v2148_v42  ;;  %v4951_v21 = vpop.f32.mrb[50].mxu1 }
 0xc3c   :  { %v2080_v35 = vpop.f32.mrb[51].mxu1  ;;  %v6644_v50 = vadd.f32 %v5546_v53, %v2106_v48  ;;  %v2107_v2 = vmul.f32 0.17677669, %v4951_v21 }
 0xc3d   :  { %2152 = vmax.xlane.f32.xlu1 %v2151_v47  ;;  %v6651_v43 = vadd.f32 %v5547_v29, %v2104_v26  ;;  %v2105_v24 = vmul.f32 0.17677669, %v2080_v35 }
 0xc3e   :  { %v2166_v56 = vsel %vm571_vm0, %v6644_v50, -inf  ;;  %v6664_v23 = vadd.f32 %v5548_v27, %v2107_v2 }
 0xc3f   :  { %2167 = vmax.xlane.f32.xlu0 %v2166_v56  ;;  %v2160_v1 = vsel %vm571_vm0, %v6651_v43, -inf  ;;  %v6671_v11 = vadd.f32 %v5549_v13, %v2105_v24 }
 0xc40   :  { %v2169_v54 = vsel %vm571_vm0, %v6664_v23, -inf }
 0xc41   :  { %v2163_v44 = vsel %vm571_vm0, %v6671_v11, -inf }
 0xc43   :  { %2161 = vmax.xlane.f32.xlu0 %v2160_v1 }
 0xc4e   :  { %2367 = vrot.lane.b32.xlu1 %v6546_v0, %s5575_s30 }
 0xc59   :  { %2365 = vrot.lane.b32.xlu0 %v6551_v19, %s5575_s30 }
 0xc5d   :  { %2428 = vrot.lane.b32.xlu0 %v6546_v0, %s5576_s21 }
 0xc72   :  { %2170 = vmax.xlane.f32.xlu1 %v2169_v54 }
 0xc76   :  { %2164 = vmax.xlane.f32.xlu1 %v2163_v44 }
 0xc87   :  { %2426 = vrot.lane.b32.xlu1 %v6551_v19, %s5576_s21 }
 0xcb4   :  { %v2132_v57 = vpop.xlane.xlu0 %2131 }
 0xcb5   :  { %v2174_v52 = vsub.f32 %v6560_v39, %v2132_v57 }
 0xcb6   :  { %v2135_v22 = vpop.xlane.xlu1 %2134 }
 0xcb7   :  { %v2192_v8 = vmul.f32 1.442695, %v2174_v52  ;;  %v2175_v41 = vsub.f32 %v6567_v37, %v2135_v22 }
 0xcb8   :  { %v2126_v10 = vpop.xlane.xlu0 %2125 }
 0xcb9   :  { %5432 = vpow2.f32 %v2192_v8  ;;  %v2194_v58 = vmul.f32 1.442695, %v2175_v41  ;;  %v2172_v40 = vsub.f32 %v6572_v45, %v2126_v10 }
 0xcba   :  { %v2129_v60 = vpop.xlane.xlu1 %2128 }
 0xcbb   :  { %5434 = vpow2.f32 %v2194_v58  ;;  %v2188_v5 = vmul.f32 1.442695, %v2172_v40  ;;  %v2173_v28 = vsub.f32 %v6579_v63, %v2129_v60 }
 0xcbc   :  { %v2144_v62 = vpop.xlane.xlu0 %2143 }
 0xcbd   :  { %5436 = vpow2.f32 %v2188_v5  ;;  %v2190_v31 = vmul.f32 1.442695, %v2173_v28  ;;  %v2178_v25 = vsub.f32 %v6588_v6, %v2144_v62 }
 0xcbe   :  { %v2147_v39 = vpop.xlane.xlu1 %2146 }
 0xcbf   :  { %5438 = vpow2.f32 %v2190_v31  ;;  %v2200_v18 = vmul.f32 1.442695, %v2178_v25  ;;  %v2179_v37 = vsub.f32 %v6595_v38, %v2147_v39 }
 0xcc0   :  { %v2138_v4 = vpop.xlane.xlu0 %2137 }
 0xcc1   :  { %5440 = vpow2.f32 %v2200_v18  ;;  %v2202_v15 = vmul.f32 1.442695, %v2179_v37  ;;  %v2176_v45 = vsub.f32 %v6600_v30, %v2138_v4 }
 0xcc2   :  { %v2141_v14 = vpop.xlane.xlu1 %2140 }
 0xcc3   :  { %v6684_v17 = vpop.eup %5432  ;;  %5442 = vpow2.f32 %v2202_v15  ;;  %v2196_v63 = vmul.f32 1.442695, %v2176_v45  ;;  %v2177_v7 = vsub.f32 %v6607_v12, %v2141_v14 }
 0xcc4   :  { %v2156_v48 = vpop.xlane.xlu0 %2155  ;;  %v2226_v6 = vsel %vm571_vm0, %v6684_v17, 0.0 }
 0xcc5   :  { %v6689_v20 = vpop.eup %5434  ;;  %5444 = vpow2.f32 %v2196_v63  ;;  %v2198_v38 = vmul.f32 1.442695, %v2177_v7  ;;  %v2182_v42 = vsub.f32 %v6616_v46, %v2156_v48  ;;  %2227 = vadd.xlane.f32.xlu0 %v2226_v6 }
 0xcc6   :  { %v2159_v26 = vpop.xlane.xlu1 %2158  ;;  %v2229_v30 = vsel %vm571_vm0, %v6689_v20, 0.0 }
 0xcc7   :  { %v6694_v21 = vpop.eup %5436  ;;  %5446 = vpow2.f32 %v2198_v38  ;;  %v2208_v35 = vmul.f32 1.442695, %v2182_v42  ;;  %v2183_v12 = vsub.f32 %v6623_v55, %v2159_v26  ;;  %2230 = vadd.xlane.f32.xlu1 %v2229_v30 }
 0xcc8   :  { %v2150_v47 = vpop.xlane.xlu0 %2149  ;;  %v2220_v53 = vsel %vm571_vm0, %v6694_v21, 0.0 }
 0xcc9   :  { %v6699_v56 = vpop.eup %5438  ;;  %5448 = vpow2.f32 %v2208_v35  ;;  %v2210_v46 = vmul.f32 1.442695, %v2183_v12  ;;  %v2180_v29 = vsub.f32 %v6628_v59, %v2150_v47  ;;  %2221 = vadd.xlane.f32.xlu0 %v2220_v53 }
 0xcca   :  { %v2153_v1 = vpop.xlane.xlu1 %2152  ;;  %v2223_v2 = vsel %vm571_vm0, %v6699_v56, 0.0 }
 0xccb   :  { %v6704_v24 = vpop.eup %5440  ;;  %5450 = vpow2.f32 %v2210_v46  ;;  %v2204_v55 = vmul.f32 1.442695, %v2180_v29  ;;  %v2181_v27 = vsub.f32 %v6635_v61, %v2153_v1  ;;  %2224 = vadd.xlane.f32.xlu1 %v2223_v2 }
 0xccc   :  { %v2168_v54 = vpop.xlane.xlu0 %2167  ;;  %v2238_v13 = vsel %vm571_vm0, %v6704_v24, 0.0 }
 0xccd   :  { %v6709_v44 = vpop.eup %5442  ;;  %5452 = vpow2.f32 %v2204_v55  ;;  %v2206_v59 = vmul.f32 1.442695, %v2181_v27  ;;  %v2186_v57 = vsub.f32 %v6644_v50, %v2168_v54  ;;  %2239 = vadd.xlane.f32.xlu0 %v2238_v13 }
 0xcce   :  { %v2241_v52 = vsel %vm571_vm0, %v6709_v44, 0.0  ;;  %v6752_v14 = vpop.permute.xlu1 %2367 }
 0xccf   :  { %v6714_v22 = vpop.eup %5444  ;;  %5454 = vpow2.f32 %v2206_v59  ;;  %v2216_v8 = vmul.f32 1.442695, %v2186_v57  ;;  %2242 = vadd.xlane.f32.xlu1 %v2241_v52 }
 0xcd0   :  { %v2162_v61 = vpop.xlane.xlu0 %2161  ;;  %v2232_v41 = vsel %vm571_vm0, %v6714_v22, 0.0 }
 0xcd1   :  { %v6718_v10 = vpop.eup %5446  ;;  %5456 = vpow2.f32 %v2216_v8  ;;  %v2184_v58 = vsub.f32 %v6651_v43, %v2162_v61  ;;  %2233 = vadd.xlane.f32.xlu0 %v2232_v41 }
 0xcd2   :  { %v2235_v50 = vsel %vm571_vm0, %v6718_v10, 0.0 }
 0xcd3   :  { %v6723_v40 = vpop.eup %5448  ;;  %v2212_v60 = vmul.f32 1.442695, %v2184_v58  ;;  %2236 = vadd.xlane.f32.xlu1 %v2235_v50 }
 0xcd4   :  { %v6725_v5 = vpop.permute.xlu0 %2365  ;;  %v2250_v28 = vsel %vm571_vm0, %v6723_v40, 0.0 }
 0xcd5   :  { %v6729_v62 = vpop.eup %5450  ;;  %5458 = vpow2.f32 %v2212_v60  ;;  %2251 = vadd.xlane.f32.xlu0 %v2250_v28  ;;  %4960 = vmatprep.subr.bf16.mxu0 %v6725_v5 }
 0xcd6   :  { %v2253_v43 = vsel %vm571_vm0, %v6729_v62, 0.0 }
 0xcd7   :  { %v6734_v31 = vpop.eup %5452  ;;  %2254 = vadd.xlane.f32.xlu1 %v2253_v43 }
 0xcd8   :  { %v2244_v25 = vsel %vm571_vm0, %v6734_v31, 0.0 }
 0xcd9   :  { %v6738_v39 = vpop.eup %5454  ;;  %2245 = vadd.xlane.f32.xlu0 %v2244_v25 }
 0xcda   :  { %v2247_v18 = vsel %vm571_vm0, %v6738_v39, 0.0 }
 0xcdb   :  { %v6742_v37 = vpop.eup %5456  ;;  %2248 = vadd.xlane.f32.xlu1 %v2247_v18 }
 0xcdc   :  { %v2262_v4 = vsel %vm571_vm0, %v6742_v37, 0.0 }
 0xcdd   :  { %2263 = vadd.xlane.f32.xlu0 %v2262_v4 }
 0xcdf   :  { %v6746_v15 = vpop.eup %5458 }
 0xce0   :  { %v2256_v45 = vsel %vm571_vm0, %v6746_v15, 0.0 }
 0xce1   :  { %2257 = vadd.xlane.f32.xlu0 %v2256_v45 }
 0xcf7   :  { %2489 = vrot.lane.b32.xlu0 %v6546_v0, %s7316_s0 }
 0xcff   :  { %v2171_v63 = vpop.xlane.xlu1 %2170 }
 0xd00   :  { %v2187_v7 = vsub.f32 %v6664_v23, %v2171_v63  ;;  %v6766_v23 = vpop.permute.xlu0 %2428 }
 0xd02   :  { %v2218_v48 = vmul.f32 1.442695, %v2187_v7 }
 0xd03   :  { %v2165_v6 = vpop.xlane.xlu1 %2164 }
 0xd04   :  { %5460 = vpow2.f32 %v2218_v48  ;;  %v2185_v38 = vsub.f32 %v6671_v11, %v2165_v6 }
 0xd06   :  { %v2214_v42 = vmul.f32 1.442695, %v2185_v38 }
 0xd07   :  { %v2427_v11 = vpop.permute.xlu1 %2426 }
 0xd08   :  { %5462 = vpow2.f32 %v2214_v42 }
 0xd0e   :  { %v6756_v26 = vpop.eup %5460 }
 0xd0f   :  { %v2265_v30 = vsel %vm571_vm0, %v6756_v26, 0.0 }
 0xd10   :  { %2266 = vadd.xlane.f32.xlu1 %v2265_v30 }
 0xd12   :  { %v6760_v35 = vpop.eup %5462 }
 0xd13   :  { %v2259_v0 = vsel %vm571_vm0, %v6760_v35, 0.0 }
 0xd14   :  { %2260 = vadd.xlane.f32.xlu1 %v2259_v0 }
 0xd25   :  { %2487 = vrot.lane.b32.xlu1 %v6551_v19, %s7316_s0 }
 0xd52   :  { %v2228_v12 = vpop.xlane.xlu0 %2227 }
 0xd54   :  { %v2231_v47 = vpop.xlane.xlu1 %2230 }
 0xd55   :  { %5464 = vrcp.f32 %v2231_v47 }
 0xd56   :  { %v2222_v53 = vpop.xlane.xlu0 %2221 }
 0xd57   :  { %5466 = vrcp.f32 %v2222_v53 }
 0xd58   :  { %5468 = vrcp.f32 %v2228_v12  ;;  %v2225_v46 = vpop.xlane.xlu1 %2224 }
 0xd59   :  { %5470 = vrcp.f32 %v2225_v46 }
 0xd5a   :  { %v2240_v29 = vpop.xlane.xlu0 %2239 }
 0xd5c   :  { %v2243_v1 = vpop.xlane.xlu1 %2242 }
 0xd5d   :  { %5472 = vrcp.f32 %v2243_v1 }
 0xd5e   :  { %v2234_v2 = vpop.xlane.xlu0 %2233 }
 0xd5f   :  { %5474 = vrcp.f32 %v2234_v2  ;;  %v5465_v55 = vpop.eup %5464 }
 0xd60   :  { %5476 = vrcp.f32 %v2240_v29  ;;  %v2237_v27 = vpop.xlane.xlu1 %2236  ;;  %v2287_v57 = vmul.f32 %v5465_v55, %v6689_v20 }
 0xd61   :  { %v5467_v19 = vpop.eup %5466  ;;  %5478 = vrcp.f32 %v2237_v27 }
 0xd62   :  { %v5469_v54 = vpop.eup %5468  ;;  %v2252_v13 = vpop.xlane.xlu0 %2251  ;;  %v2284_v8 = vmul.f32 %v5467_v19, %v6694_v21 }
 0xd63   :  { %v5471_v59 = vpop.eup %5470  ;;  %v2286_v41 = vmul.f32 %v5469_v54, %v6684_v17 }
 0xd64   :  { %v2255_v52 = vpop.xlane.xlu1 %2254  ;;  %v2285_v61 = vmul.f32 %v5471_v59, %v6699_v56  ;;  %v5256_v59 = vld [vmem:[%s7284_s6 + $0x40] sm:$0xff]  }
 0xd65   :  { %5480 = vrcp.f32 %v2255_v52  ;;  %v2301_v60 = vpack.c.bf16 %v2287_v57, %v2286_v41  ;;  %v5257_v57 = vld [vmem:[%s7284_s6 + $0x48] sm:$0xff]   ;;  %4984 = vmatprep.subr.bf16.mxu1 %v5256_v59 }
 0xd66   :  { %v2246_v58 = vpop.xlane.xlu0 %2245  ;;  %v2300_v50 = vpack.c.bf16 %v2285_v61, %v2284_v8  ;;  %4985 = vmatpush3.bf16.msra.mxu1 %v5256_v59  ;;  %v5258_v8 = vld [vmem:[%s7284_s6 + $0x50] sm:$0xff]  }
 0xd67   :  { %5482 = vrcp.f32 %v2246_v58  ;;  %v5473_v28 = vpop.eup %5472  ;;  %4986 = vmatprep.subr.bf16.mxu1 %v5257_v57 }
 0xd68   :  { %5484 = vrcp.f32 %v2252_v13  ;;  %4956 = vmatprep.mubr.msk.bf16.mxu0 %vm571_vm0, %v2300_v50  ;;  %v2249_v43 = vpop.xlane.xlu1 %2248  ;;  %v2291_v17 = vmul.f32 %v5473_v28, %v6709_v44  ;;  %v5259_v28 = vld [vmem:[%s7284_s6 + $0x58] sm:$0xff]  }
 0xd69   :  { %v5475_v25 = vpop.eup %5474  ;;  %5486 = vrcp.f32 %v2249_v43  ;;  %4957 = vmatmul.mubr.msk.bf16.vlgmr.msra.gmra.mrb[40].mxu0 %vm571_vm0, %v2301_v60 }
 0xd6a   :  { %v5477_v20 = vpop.eup %5476  ;;  %4961 = vmatpush3.bf16.msra.mxu0 %v6725_v5  ;;  %v2288_v56 = vmul.f32 %v5475_v25, %v6714_v22  ;;  %v2264_v42 = vpop.xlane.xlu0 %2263  ;;  %4987 = vmatpush3.bf16.msra.mxu1 %v5257_v57  ;;  %v5260_v25 = vld [vmem:[%s7284_s6 + $0x60] sm:$0xff]  }
 0xd6b   :  { %v5479_v21 = vpop.eup %5478  ;;  %4962 = vmatprep.subr.bf16.mxu0 %v6752_v14  ;;  %v2290_v4 = vmul.f32 %v5477_v20, %v6704_v24  ;;  %4988 = vmatprep.subr.bf16.mxu1 %v5258_v8  ;;  %v5261_v20 = vld [vmem:[%s7284_s6 + $0x68] sm:$0xff]  }
 0xd6c   :  { %v2289_v18 = vmul.f32 %v5479_v21, %v6718_v10  ;;  %v5262_v21 = vld [vmem:[%s7284_s6 + $0x70] sm:$0xff]  }
 0xd6d   :  { %v2303_v63 = vpack.c.bf16 %v2291_v17, %v2290_v4  ;;  %v5263_v17 = vld [vmem:[%s7284_s6 + $0x78] sm:$0xff]  }
 0xd6e   :  { %4963 = vmatpush3.bf16.msra.mxu0 %v6752_v14  ;;  %v2302_v45 = vpack.c.bf16 %v2289_v18, %v2288_v56  ;;  %v2258_v30 = vpop.xlane.xlu0 %2257  ;;  %4989 = vmatpush3.bf16.msra.mxu1 %v5258_v8 }
 0xd6f   :  { %4968 = vmatprep.subr.bf16.mxu0 %v2427_v11  ;;  %v5481_v7 = vpop.eup %5480  ;;  %4990 = vmatprep.subr.bf16.mxu1 %v5259_v28 }
 0xd70   :  { %4964 = vmatprep.mubr.msk.bf16.mxu0 %vm571_vm0, %v2302_v45  ;;  %v2295_v22 = vmul.f32 %v5481_v7, %v6729_v62 }
 0xd71   :  { %v5483_v5 = vpop.eup %5482  ;;  %4965 = vmatmul.mubr.msk.bf16.vlgmr.msra.gmra.mrb[44].mxu0 %vm571_vm0, %v2303_v63 }
 0xd72   :  { %v5485_v44 = vpop.eup %5484  ;;  %4969 = vmatpush3.bf16.msra.mxu0 %v2427_v11  ;;  %v2292_v24 = vmul.f32 %v5483_v5, %v6734_v31  ;;  %4991 = vmatpush3.bf16.msra.mxu1 %v5259_v28 }
 0xd73   :  { %v5487_v48 = vpop.eup %5486  ;;  %4970 = vmatprep.subr.bf16.mxu0 %v6766_v23  ;;  %v2294_v14 = vmul.f32 %v5485_v44, %v6723_v40  ;;  %4992 = vmatprep.subr.bf16.mxu1 %v5260_v25 }
 0xd74   :  { %v2293_v10 = vmul.f32 %v5487_v48, %v6738_v39  ;;  %v2490_v39 = vpop.permute.xlu0 %2489 }
 0xd75   :  { %v2305_v38 = vpack.c.bf16 %v2295_v22, %v2294_v14 }
 0xd76   :  { %4971 = vmatpush3.bf16.msra.mxu0 %v6766_v23  ;;  %v2304_v6 = vpack.c.bf16 %v2293_v10, %v2292_v24  ;;  %4993 = vmatpush3.bf16.msra.mxu1 %v5260_v25  ;;  %v5264_v25 = vld [vmem:[%s7288_s10 + $0x80] ss:$8 sps:$4 sm:$0xff]  }
 0xd77   :  { %4994 = vmatprep.subr.bf16.mxu1 %v5261_v20 }
 0xd78   :  { %4972 = vmatprep.mubr.msk.bf16.mxu0 %vm571_vm0, %v2304_v6 }
 0xd79   :  { %4973 = vmatmul.mubr.msk.bf16.vlgmr.msra.gmra.mrb[48].mxu0 %vm571_vm0, %v2305_v38 }
 0xd7a   :  { %4995 = vmatpush3.bf16.msra.mxu1 %v5261_v20 }
 0xd7b   :  { %4996 = vmatprep.subr.bf16.mxu1 %v5262_v21 }
 0xd7e   :  { %4997 = vmatpush3.bf16.msra.mxu1 %v5262_v21 }
 0xd7f   :  { %4998 = vmatprep.subr.bf16.mxu1 %v5263_v17 }
 0xd82   :  { %4999 = vmatpush3.bf16.msra.mxu1 %v5263_v17 }
 0xd9d   :  { %v2267_v0 = vpop.xlane.xlu1 %2266 }
 0xd9e   :  { %5488 = vrcp.f32 %v2267_v0 }
 0xd9f   :  { %5490 = vrcp.f32 %v2258_v30 }
 0xda0   :  { %5492 = vrcp.f32 %v2264_v42 }
 0xda1   :  { %v2261_v62 = vpop.xlane.xlu1 %2260 }
 0xda2   :  { %5494 = vrcp.f32 %v2261_v62 }
 0xda5   :  { %v2488_v31 = vpop.permute.xlu1 %2487 }
 0xda6   :  { %4976 = vmatprep.subr.bf16.mxu0 %v2488_v31 }
 0xda7   :  { %4977 = vmatpush3.bf16.msra.mxu0 %v2488_v31 }
 0xda8   :  { %4978 = vmatprep.subr.bf16.mxu0 %v2490_v39  ;;  %v5489_v40 = vpop.eup %5488 }
 0xda9   :  { %v5491_v23 = vpop.eup %5490  ;;  %v2299_v47 = vmul.f32 %v5489_v40, %v6756_v26 }
 0xdaa   :  { %v5493_v11 = vpop.eup %5492  ;;  %v2296_v53 = vmul.f32 %v5491_v23, %v6746_v15 }
 0xdab   :  { %4979 = vmatpush3.bf16.msra.mxu0 %v2490_v39  ;;  %v2298_v29 = vmul.f32 %v5493_v11, %v6742_v37 }
 0xdac   :  { %v5495_v12 = vpop.eup %5494 }
 0xdad   :  { %v2297_v46 = vmul.f32 %v5495_v12, %v6760_v35  ;;  %v2307_v2 = vpack.c.bf16 %v2299_v47, %v2298_v29 }
 0xdaf   :  { %v2306_v1 = vpack.c.bf16 %v2297_v46, %v2296_v53 }
 0xdb1   :  { %4980 = vmatprep.mubr.msk.bf16.mxu0 %vm571_vm0, %v2306_v1 }
 0xdb2   :  { %4981 = vmatmul.mubr.msk.bf16.vlgmr.msra.gmra.mrb[52].mxu0 %vm571_vm0, %v2307_v2 }
 0xdb3   :  { %2948 = vmatprep.mubr.bf16.mxu0 %v5574_v3 }
 0xe3c   :  { %v6798_v55 = vpop.f32.mrb[40].mxu0 }
 0xe3d   :  { %v6800_v27 = vpop.f32.mrb[41].mxu0 }
 0xe3e   :  { %v6802_v19 = vpop.f32.mrb[42].mxu0 }
 0xe3f   :  { %v6804_v26 = vpop.f32.mrb[43].mxu0 }
 0xe44   :  { %v4966_v15 = vpop.f32.mrb[44].mxu0 }
 0xe45   :  { %v2411_v35 = vpop.f32.mrb[45].mxu0 }
 0xe46   :  { %v4967_v54 = vpop.f32.mrb[46].mxu0 }
 0xe47   :  { %v5114_v37 = vpack.i.bf16 %v4967_v54, %v4966_v15  ;;  %v2414_v13 = vpop.f32.mrb[47].mxu0 }
 0xe48   :  { %v5119_v52 = vpack.i.bf16 %v2414_v13, %v2411_v35 }
 0xe49   :  { %5115 = vrot.lane.b32.xlu0 %v5114_v37, %s7316_s0  ;;  %v4346_v37 = vld [vmem:[%s7285_s7 + $0x1] ss:$0 sm:$0xff] }
 0xe4a   :  { %5120 = vrot.lane.b32.xlu1 %v5119_v52, %s7316_s0 }
 0xe4c   :  { %v4974_v61 = vpop.f32.mrb[48].mxu0 }
 0xe4d   :  { %v2472_v41 = vpop.f32.mrb[49].mxu0 }
 0xe4e   :  { %v4975_v58 = vpop.f32.mrb[50].mxu0 }
 0xe4f   :  { %v5124_v50 = vpack.i.bf16 %v4975_v58, %v4974_v61  ;;  %v2475_v60 = vpop.f32.mrb[51].mxu0 }
 0xe50   :  { %v5129_v43 = vpack.i.bf16 %v2475_v60, %v2472_v41 }
 0xe51   :  { %5125 = vrot.lane.b32.xlu0 %v5124_v50, %s5576_s21 }
 0xe52   :  { %5130 = vrot.lane.b32.xlu1 %v5129_v43, %s5576_s21 }
 0xe85   :  { %v4982_v56 = vpop.f32.mrb[52].mxu0 }
 0xe86   :  { %v2533_v18 = vpop.f32.mrb[53].mxu0 }
 0xe87   :  { %v4983_v4 = vpop.f32.mrb[54].mxu0 }
 0xe88   :  { %v5139_v45 = vpack.i.bf16 %v4983_v4, %v4982_v56  ;;  %v2536_v63 = vpop.f32.mrb[55].mxu0 }
 0xe89   :  { %v5134_v7 = vpack.i.bf16 %v2536_v63, %v2533_v18 }
 0xe8a   :  { %5140 = vrot.lane.b32.xlu0 %v5139_v45, %s5575_s30 }
 0xe8b   :  { %5135 = vrot.lane.b32.xlu1 %v5134_v7, %s5575_s30 }
 0xebb   :  { %v5116_v5 = vpop.permute.xlu0 %5115 }
 0xebc   :  { %v5121_v44 = vpop.permute.xlu1 %5120  ;;  %v5118_v22 = vunpack.i.h.bf16 %v5116_v5  ;;  %v5117_v24 = vunpack.i.l.bf16 %v5116_v5 }
 0xebd   :  { %v5123_v14 = vunpack.i.h.bf16 %v5121_v44  ;;  %v5122_v6 = vunpack.i.l.bf16 %v5121_v44 }
 0xebe   :  { %v2599_v62 = vsel %vm571_vm0, %v6802_v19, %v5118_v22  ;;  %v2598_v31 = vsel %vm571_vm0, %v6798_v55, %v5117_v24 }
 0xebf   :  { %v2597_v40 = vsel %vm571_vm0, %v6804_v26, %v5123_v14  ;;  %v2596_v23 = vsel %vm571_vm0, %v6800_v27, %v5122_v6  ;;  %v5272_v14 = vld [vmem:[%s7288_s10 + $0xa4] ss:$8 sps:$4 sm:$0xff]   ;;  %v5270_v6 = vld [vmem:[%s7288_s10 + $0xa0] ss:$8 sps:$4 sm:$0xff]  }
 0xec3   :  { %v5126_v48 = vpop.permute.xlu0 %5125 }
 0xec4   :  { %v5131_v10 = vpop.permute.xlu1 %5130  ;;  %v5128_v38 = vunpack.i.h.bf16 %v5126_v48  ;;  %v5127_v42 = vunpack.i.l.bf16 %v5126_v48 }
 0xec5   :  { %v5133_v30 = vunpack.i.h.bf16 %v5131_v10  ;;  %v5132_v0 = vunpack.i.l.bf16 %v5131_v10 }
 0xec6   :  { %v2603_v53 = vsel %vm1048_vm1, %v2599_v62, %v5128_v38  ;;  %v2602_v46 = vsel %vm1048_vm1, %v2598_v31, %v5127_v42  ;;  %v5275_v38 = vld [vmem:[%s7288_s10 + $0xb4] ss:$8 sps:$4 sm:$0xff]   ;;  %v5273_v42 = vld [vmem:[%s7288_s10 + $0xb0] ss:$8 sps:$4 sm:$0xff]  }
 0xec7   :  { %v2600_v2 = vsel %vm1048_vm1, %v2596_v23, %v5132_v0  ;;  %v2601_v55 = vsel %vm1048_vm1, %v2597_v40, %v5133_v30  ;;  %v5278_v30 = vld [vmem:[%s7288_s10 + $0xc4] ss:$8 sps:$4 sm:$0xff]   ;;  %v5276_v0 = vld [vmem:[%s7288_s10 + $0xc0] ss:$8 sps:$4 sm:$0xff]   ;;  %v5281_v62 = vld [vmem:[%s7288_s10 + $0xd4] ss:$8 sps:$4 sm:$0xff]  }
 0xec8   :  { %v5279_v31 = vld [vmem:[%s7288_s10 + $0xd0] ss:$8 sps:$4 sm:$0xff]   ;;  %v5284_v40 = vld [vmem:[%s7288_s10 + $0xe4] ss:$8 sps:$4 sm:$0xff]   ;;  %v5287_v23 = vld [vmem:[%s7288_s10 + $0xf4] ss:$8 sps:$4 sm:$0xff]  }
 0xec9   :  { %vm5581_vm1 = vmmov 0  }
 0xefc   :  { %v5141_v39 = vpop.permute.xlu0 %5140 }
 0xefd   :  { %v5143_v11 = vunpack.i.h.bf16 %v5141_v39  ;;  %v5142_v12 = vunpack.i.l.bf16 %v5141_v39  ;;  %v5136_v47 = vpop.permute.xlu1 %5135  ;;  %v5282_v39 = vld [vmem:[%s7288_s10 + $0xe0] ss:$8 sps:$4 sm:$0xff]  }
 0xefe   :  { %v5138_v29 = vunpack.i.h.bf16 %v5136_v47  ;;  %v5137_v1 = vunpack.i.l.bf16 %v5136_v47  ;;  %v5289_v47 = vld [vmem:[%s7290_s12 + $0x80] sm:$0xff]  }
 0xeff   :  { %v2607_v19 = vsel %vm1053_vm2, %v2603_v53, %v5143_v11  ;;  %v2606_v26 = vsel %vm1053_vm2, %v2602_v46, %v5142_v12  ;;  %v5285_v11 = vld [vmem:[%s7288_s10 + $0xf0] ss:$8 sps:$4 sm:$0xff]   ;;  %v5288_v12 = vld [vmem:[%s7290_s12 + $0xc0] sm:$0xff]   ;;  %v5290_v53 = vld [vmem:[%s7290_s12 + $0xc8] sm:$0xff]  }
 0xf00   :  { %v2626_v15 = vpack.c.bf16 %v2607_v19, %v2606_v26  ;;  %v2604_v27 = vsel %vm1053_vm2, %v2600_v2, %v5137_v1  ;;  %v2605_v35 = vsel %vm1053_vm2, %v2601_v55, %v5138_v29  ;;  %4707 = vmatprep.subr.bf16.mxu1 %v5288_v12  ;;  %v5291_v46 = vld [vmem:[%s7290_s12 + $0x88] sm:$0xff]   ;;  %v5292_v29 = vld [vmem:[%s7290_s12 + $0xd0] sm:$0xff]   ;;  %v5294_v2 = vld [vmem:[%s7290_s12 + $0xd8] sm:$0xff]   ;;  %vm4096_vm2 = vcmask 130048  }
 0xf01   :  { %v2625_v54 = vpack.c.bf16 %v2605_v35, %v2604_v27  ;;  %v5293_v1 = vld [vmem:[%s7290_s12 + $0x90] sm:$0xff]   ;;  %v5295_v55 = vld [vmem:[%s7290_s12 + $0x98] sm:$0xff]   ;;  %v5296_v19 = vld [vmem:[%s7290_s12 + $0xe0] sm:$0xff]  }
 0xf02   :  { %v5297_v26 = vld [vmem:[%s7290_s12 + $0xa0] sm:$0xff]  }
 0xf03   :  { %5000 = vmatprep.mubr.bf16.mxu1 %v2625_v54 }
 0xf04   :  { %5001 = vmatmul.mubr.bf16.vlgmr.msra.gmra.mrb[52].mxu1 %v2626_v15  ;;  %v5298_v15 = vld [vmem:[%s7290_s12 + $0xe8] sm:$0xff]  }
 0xf05   :  { %4708 = vmatpush3.bf16.msra.mxu1 %v5289_v47 }
 0xf06   :  { %4709 = vmatprep.subr.bf16.mxu1 %v5290_v53 }
 0xf09   :  { %4710 = vmatpush3.bf16.msra.mxu1 %v5291_v46 }
 0xf0a   :  { %4711 = vmatprep.subr.bf16.mxu1 %v5292_v29 }
 0xf0d   :  { %4712 = vmatpush3.bf16.msra.mxu1 %v5293_v1 }
 0xf0e   :  { %4713 = vmatprep.subr.bf16.mxu1 %v5294_v2 }
 0xf11   :  { %4714 = vmatpush3.bf16.msra.mxu1 %v5295_v55 }
 0xf12   :  { %4715 = vmatprep.subr.bf16.mxu1 %v5296_v19 }
 0xf15   :  { %4716 = vmatpush3.bf16.msra.mxu1 %v5297_v26 }
 0xf16   :  { %4717 = vmatprep.subr.bf16.mxu1 %v5298_v15 }
 0xfd7   :  { %v5002_v13 = vpop.f32.mrb[52].mxu1 }
 0xfd8   :  { %v2717_v59 = vpop.f32.mrb[53].mxu1  ;;  %v2726_v50 = vadd.f32 %v5002_v13, %v4346_v37 }
 0xfd9   :  { %v2718_v57 = vadd.f32 %v4346_v37, %v2717_v59  ;;  %v5003_v52 = vpop.f32.mrb[54].mxu1 }
 0xfda   :  { %v2720_v8 = vpop.f32.mrb[55].mxu1  ;;  %v2729_v41 = vadd.f32 %v5003_v52, %v4346_v37  ;;  %v2734_v43 = vadd.f32 %v2726_v50, %v6466_v9  ;;  %v5267_v9 = vld [vmem:[%s7288_s10 + $0x90] ss:$8 sps:$4 sm:$0xff]  }
 0xfdb   :  { %v2732_v61 = vadd.f32 %v2718_v57, %v6457_v49  ;;  %v2721_v58 = vadd.f32 %v4346_v37, %v2720_v8  ;;  %v5266_v49 = vld [vmem:[%s7288_s10 + $0x84] ss:$8 sps:$4 sm:$0xff]  }
 0xfdc   :  { %v2735_v28 = vadd.f32 %v2729_v41, %v6468_v51  ;;  %2916 = vmatprep.subr.bf16.mxu0 %v5266_v49 }
 0xfdd   :  { %v2733_v60 = vadd.f32 %v2721_v58, %v6459_v16  ;;  %2740 = vadd.xlane.f32.xlu1 %v2732_v61  ;;  %v5269_v16 = vld [vmem:[%s7288_s10 + $0x94] ss:$8 sps:$4 sm:$0xff]   ;;  %2917 = vmatpush1.bf16.msra.mxu0 %v5264_v25 }
 0xfde   :  { %2918 = vmatprep.subr.bf16.mxu0 %v5269_v16  ;;  %v4358_v16 = vld [vmem:[%s7287_s9 + $0x1] ss:$0 sm:$0xff] }
 0xfdf   :  { %2742 = vadd.xlane.f32.xlu0 %v2733_v60 }
 0xfe1   :  { %2746 = vadd.xlane.f32.xlu1 %v2735_v28  ;;  %2919 = vmatpush1.bf16.msra.mxu0 %v5267_v9 }
 0xfe2   :  { %2920 = vmatprep.subr.bf16.mxu0 %v5272_v14  ;;  %v4375_v14 = vld [vmem:[%s7289_s11 + $0x2] sm:$0x3] }
 0xfe3   :  { %2744 = vadd.xlane.f32.xlu0 %v2734_v43 }
 0xfe5   :  { %2921 = vmatpush1.bf16.msra.mxu0 %v5270_v6  ;;  %v2829_v6 = vrot.slane %v4375_v14, %v5783_v34 }
 0xfe6   :  { %2922 = vmatprep.subr.bf16.mxu0 %v5275_v38  ;;  %v2833_v38 = vrot.slane %v4375_v14, %v5791_v36 }
 0xfe9   :  { %2923 = vmatpush1.bf16.msra.mxu0 %v5273_v42 }
 0xfea   :  { %2924 = vmatprep.subr.bf16.mxu0 %v5278_v30 }
 0xfed   :  { %2925 = vmatpush1.bf16.msra.mxu0 %v5276_v0 }
 0xfee   :  { %2926 = vmatprep.subr.bf16.mxu0 %v5281_v62 }
 0xff1   :  { %2927 = vmatpush1.bf16.msra.mxu0 %v5279_v31 }
 0xff2   :  { %2928 = vmatprep.subr.bf16.mxu0 %v5284_v40 }
 0xff5   :  { %2929 = vmatpush1.bf16.msra.mxu0 %v5282_v39 }
 0xff6   :  { %2930 = vmatprep.subr.bf16.mxu0 %v5287_v23 }
 0xff9   :  { %2931 = vmatpush1.bf16.msra.mxu0 %v5285_v11 }
0x106a   :  { %v2741_v51 = vpop.xlane.xlu1 %2740 }
0x106b   :  { %v2748_v20 = vmul.f32 0.0078125, %v2741_v51 }
0x106c   :  { %v2743_v21 = vpop.xlane.xlu0 %2742 }
0x106d   :  { %v6871_v17 = vsub.f32 %v2732_v61, %v2748_v20  ;;  %v2749_v56 = vmul.f32 0.0078125, %v2743_v21 }
0x106e   :  { %v2747_v18 = vpop.xlane.xlu1 %2746 }
0x106f   :  { %v6873_v4 = vsub.f32 %v2733_v60, %v2749_v56  ;;  %v2751_v45 = vmul.f32 0.0078125, %v2747_v18  ;;  %v2756_v63 = vmul.f32 %v6871_v17, %v6871_v17  ;;  %v4357_v60 = vld [vmem:[%s7286_s8 + $0x1] ss:$0 sm:$0xff] }
0x1070   :  { %v2745_v7 = vpop.xlane.xlu0 %2744 }
0x1071   :  { %v6877_v5 = vsub.f32 %v2735_v28, %v2751_v45  ;;  %v2750_v44 = vmul.f32 0.0078125, %v2745_v7  ;;  %2760 = vadd.xlane.f32.xlu0 %v2756_v63  ;;  %v2757_v48 = vmul.f32 %v6873_v4, %v6873_v4 }
0x1073   :  { %v6881_v22 = vsub.f32 %v2734_v43, %v2750_v44  ;;  %2762 = vadd.xlane.f32.xlu1 %v2757_v48  ;;  %v2759_v10 = vmul.f32 %v6877_v5, %v6877_v5 }
0x1075   :  { %v2758_v24 = vmul.f32 %v6881_v22, %v6881_v22 }
0x1077   :  { %2764 = vadd.xlane.f32.xlu0 %v2758_v24  ;;  %2766 = vadd.xlane.f32.xlu1 %v2759_v10  ;;  %v5302_v24 = vld [vmem:[%s7290_s12 + $0xf8] sm:$0xff]  }
0x1078   :  { %v5303_v10 = vld [vmem:[%s7290_s12 + $0xb8] sm:$0xff]  }
0x10fe   :  { %v2761_v27 = vpop.xlane.xlu0 %2760 }
0x10ff   :  { %v2768_v35 = vmul.f32 0.0078125, %v2761_v27 }
0x1100   :  { %v2763_v54 = vpop.xlane.xlu1 %2762 }
0x1101   :  { %v2772_v37 = vadd.f32 1e-05, %v2768_v35  ;;  %v2769_v13 = vmul.f32 0.0078125, %v2763_v54 }
0x1103   :  { %5496 = vrsqrt.f32 %v2772_v37  ;;  %v2773_v59 = vadd.f32 1e-05, %v2769_v13 }
0x1104   :  { %v2765_v57 = vpop.xlane.xlu0 %2764  ;;  %v2767_v52 = vpop.xlane.xlu1 %2766 }
0x1105   :  { %5498 = vrsqrt.f32 %v2773_v59  ;;  %v2770_v8 = vmul.f32 0.0078125, %v2765_v57  ;;  %v2771_v61 = vmul.f32 0.0078125, %v2767_v52  ;;  %v4425_v52 = vld [vmem:[%s7291_s13 + $0x1] ss:$0 sm:$0xff]  ;;  %s5582_s13 = smov [#allocation3]  }
0x1106   :  { %s4178_s1 = sshll.u32 %s5582_s13, 4  ;;  %s4179_s1 = int_to_ptr.vmem [resolvable:$true] %s4178_s1 }
0x1107   :  { %v2774_v41 = vadd.f32 1e-05, %v2770_v8  ;;  %v2775_v58 = vadd.f32 1e-05, %v2771_v61  ;;  %s5550_s24 = scalar_lea.vmem %s4179_s1, 32  ;;  %p5555_p1 = scmp.lt.s32.totalorder %s4179_s1, %s4179_s1 }
0x1108   :  { %p5551_p0 = scmp.ne.s32.totalorder %s4179_s1, %s5550_s24  ;;  %p5556_p2 = scmp.lt.s32.totalorder %s5550_s24, %s5550_s24 }
0x1109   :  { %5500 = vrsqrt.f32 %v2774_v41 }
0x110a   :  { %5502 = vrsqrt.f32 %v2775_v58  ;;  %p5557_p3 = por %p5556_p2, %p5555_p1 }
0x110c   :  { %p5558_p4 = pnand %p5557_p3, %p5551_p0 }
0x110d   :  { %v5497_v50 = vpop.eup %5496 }
0x110e   :  { %v2780_v28 = vmul.f32 %v5497_v50, %v6871_v17 }
0x110f   :  { %v5499_v43 = vpop.eup %5498 }
0x1110   :  { %v2781_v25 = vmul.f32 %v5499_v43, %v6873_v4  ;;  %v2790_v49 = vmul.f32 %v4357_v60, %v2780_v28 }
0x1112   :  { %v2791_v9 = vmul.f32 %v4357_v60, %v2781_v25  ;;  %v6964_v21 = vadd.f32 %v4358_v16, %v2790_v49 }
0x1113   :  { %v5501_v51 = vpop.eup %5500 }
0x1114   :  { %v5503_v20 = vpop.eup %5502  ;;  %v6966_v56 = vadd.f32 %v4358_v16, %v2791_v9  ;;  %v2782_v18 = vmul.f32 %v5501_v51, %v6881_v22  ;;  %v5300_v22 = vld [vmem:[%s7290_s12 + $0xf0] sm:$0xff]  }
0x1115   :  { %v2783_v45 = vmul.f32 %v5503_v20, %v6877_v5  ;;  %v5299_v5 = vld [vmem:[%s7290_s12 + $0xa8] sm:$0xff]  }
0x1116   :  { %v2821_v17 = vpack.c.bf16 %v6966_v56, %v6964_v21  ;;  %v2792_v4 = vmul.f32 %v4357_v60, %v2782_v18  ;;  %4718 = vmatpush3.bf16.msra.mxu1 %v5299_v5 }
0x1117   :  { %v2793_v63 = vmul.f32 %v4357_v60, %v2783_v45  ;;  %4719 = vmatprep.subr.bf16.mxu1 %v5300_v22 }
0x1118   :  { %2949 = vmatmul.mubr.bf16.vlgmr.msra.gmra.mrb[56].mxu0 %v2821_v17  ;;  %v6973_v7 = vadd.f32 %v4358_v16, %v2792_v4 }
0x1119   :  { %2958 = vmatprep.mubr.bf16.mxu0 %v5574_v3  ;;  %v6975_v44 = vadd.f32 %v4358_v16, %v2793_v63  ;;  %v5301_v3 = vld [vmem:[%s7290_s12 + $0xb0] sm:$0xff]  }
0x111a   :  { %4720 = vmatpush3.bf16.msra.mxu1 %v5301_v3 }
0x111b   :  { %v2822_v48 = vpack.c.bf16 %v6975_v44, %v6973_v7  ;;  %4721 = vmatprep.subr.bf16.mxu1 %v5302_v24 }
0x111e   :  { %4722 = vmatpush3.bf16.msra.mxu1 %v5303_v10 }
0x1120   :  { %2959 = vmatmul.mubr.bf16.gmra.mrb[60].mxu0 %v2822_v48 }
0x11eb   :  { %v2950_v42 = vpop.f32.mrb[56].mxu0 }
0x11ec   :  { %v2951_v30 = vadd.f32 %v2950_v42, %v2829_v6  ;;  %v2952_v0 = vpop.f32.mrb[57].mxu0 }
0x11ed   :  { %v2953_v62 = vadd.f32 %v2952_v0, %v2833_v38  ;;  %v2954_v31 = vpop.f32.mrb[58].mxu0 }
0x11ee   :  { %v2955_v39 = vadd.f32 %v2954_v31, %v2829_v6  ;;  %v2956_v40 = vpop.f32.mrb[59].mxu0  ;;  %v2969_v11 = vmax.f32 %v2951_v30, 0.0 }
0x11ef   :  { %v2957_v23 = vadd.f32 %v2956_v40, %v2833_v38  ;;  %v2970_v47 = vmax.f32 %v2953_v62, 0.0  ;;  %v5307_v40 = vld [vmem:[%s7294_s16 + $0x8] sm:$0xff]  }
0x11f0   :  { %v2971_v12 = vmax.f32 %v2955_v39, 0.0  ;;  %v5306_v39 = vld [vmem:[%s7294_s16 + $0x48] sm:$0xff]  }
0x11f1   :  { %v2972_v53 = vmax.f32 %v2957_v23, 0.0  ;;  %v5308_v23 = vld [vmem:[%s7294_s16 + $0x50] sm:$0xff]  }
0x11f2   :  { %v3010_v46 = vpack.c.bf16 %v2971_v12, %v2969_v11  ;;  %v5309_v11 = vld [vmem:[%s7294_s16 + $0x80] sm:$0xff]   ;;  %v5310_v12 = vld [vmem:[%s7294_s16 + $0x10] sm:$0xff]  }
0x11f3   :  { %v3011_v29 = vpack.c.bf16 %v2972_v53, %v2970_v47  ;;  %v2960_v1 = vpop.f32.mrb[60].mxu0  ;;  %5004 = vmatprep.subr.bf16.mxu1 %v5309_v11  ;;  %v5311_v47 = vld [vmem:[%s7294_s16 + $0x58] sm:$0xff]   ;;  %v5312_v53 = vld [vmem:[%s7294_s16 + $0x88] sm:$0xff]  }
0x11f4   :  { %v2961_v2 = vadd.f32 %v2960_v1, %v2829_v6  ;;  %v2962_v55 = vpop.f32.mrb[61].mxu0  ;;  %v5314_v1 = vld [vmem:[%s7294_s16 + $0x60] sm:$0xff]  }
0x11f5   :  { %v2963_v34 = vadd.f32 %v2962_v55, %v2833_v38  ;;  %v2964_v19 = vpop.f32.mrb[62].mxu0  ;;  %3150 = vmatprep.mubr.bf16.mxu1 %v3011_v29  ;;  %v4581_v29 = vld [vmem:[#allocation2] ss:$0 sm:$0xff] }
0x11f6   :  { %v2965_v36 = vadd.f32 %v2964_v19, %v2829_v6  ;;  %v2966_v26 = vpop.f32.mrb[63].mxu0  ;;  %3151 = vmatmul.mubr.bf16.vlgmr.msra.gmra.mrb[56].mxu1 %v3010_v46  ;;  %v2973_v27 = vmax.f32 %v2961_v2, 0.0  ;;  %v5313_v46 = vld [vmem:[%s7294_s16 + $0x18] sm:$0xff]   ;;  %v5315_v2 = vld [vmem:[%s7294_s16 + $0x90] sm:$0xff]   ;;  %v5316_v55 = vld [vmem:[%s7294_s16 + $0x20] sm:$0xff]  }
0x11f7   :  { %v2967_v15 = vadd.f32 %v2966_v26, %v2833_v38  ;;  %v2974_v54 = vmax.f32 %v2963_v34, 0.0  ;;  %5005 = vmatpush3.bf16.msra.mxu1 %v5309_v11  ;;  %v5317_v34 = vld [vmem:[%s7294_s16 + $0x68] sm:$0xff]   ;;  %v5318_v19 = vld [vmem:[%s7294_s16 + $0x98] sm:$0xff]   ;;  %v5320_v26 = vld [vmem:[%s7294_s16 + $0x70] sm:$0xff]  }
0x11f8   :  { %v2975_v35 = vmax.f32 %v2965_v36, 0.0  ;;  %5006 = vmatprep.subr.bf16.mxu1 %v5312_v53  ;;  %v5319_v36 = vld [vmem:[%s7294_s16 + $0x28] sm:$0xff]  }
0x11f9   :  { %v2976_v37 = vmax.f32 %v2967_v15, 0.0  ;;  %v5321_v15 = vld [vmem:[%s7294_s16 + $0xa0] sm:$0xff]  }
0x11fa   :  { %v3012_v13 = vpack.c.bf16 %v2975_v35, %v2973_v27  ;;  %v5322_v27 = vld [vmem:[%s7294_s16 + $0x30] sm:$0xff]   ;;  %v5323_v35 = vld [vmem:[%s7294_s16 + $0x78] sm:$0xff]  }
0x11fb   :  { %v3013_v59 = vpack.c.bf16 %v2976_v37, %v2974_v54  ;;  %5007 = vmatpush3.bf16.msra.mxu1 %v5312_v53  ;;  %v5324_v54 = vld [vmem:[%s7294_s16 + $0xa8] sm:$0xff]   ;;  %v5325_v37 = vld [vmem:[%s7294_s16 + $0x38] sm:$0xff]  }
0x11fc   :  { %5008 = vmatprep.subr.bf16.mxu1 %v5315_v2 }
0x11fd   :  { %3158 = vmatprep.mubr.bf16.mxu1 %v3013_v59  ;;  %v5327_v59 = vld [vmem:[%s7294_s16 + $0xb8] sm:$0xff]  }
0x11fe   :  { %3159 = vmatmul.mubr.bf16.gmra.mrb[60].mxu1 %v3012_v13  ;;  %v5326_v13 = vld [vmem:[%s7294_s16 + $0xb0] sm:$0xff]  }
0x11ff   :  { %5009 = vmatpush3.bf16.msra.mxu1 %v5315_v2  ;;  %v5333_v2 = vld [vmem:[%s7294_s16 + $0x110] sm:$0xff]  }
0x1200   :  { %5010 = vmatprep.subr.bf16.mxu1 %v5318_v19 }
0x1203   :  { %5011 = vmatpush3.bf16.msra.mxu1 %v5318_v19 }
0x1204   :  { %5012 = vmatprep.subr.bf16.mxu1 %v5321_v15 }
0x1207   :  { %5013 = vmatpush3.bf16.msra.mxu1 %v5321_v15 }
0x1208   :  { %5014 = vmatprep.subr.bf16.mxu1 %v5324_v54 }
0x120b   :  { %5015 = vmatpush3.bf16.msra.mxu1 %v5324_v54 }
0x120c   :  { %5016 = vmatprep.subr.bf16.mxu1 %v5326_v13 }
0x120f   :  { %5017 = vmatpush3.bf16.msra.mxu1 %v5326_v13 }
0x1210   :  { %5018 = vmatprep.subr.bf16.mxu1 %v5327_v59 }
0x1213   :  { %5019 = vmatpush3.bf16.msra.mxu1 %v5327_v59 }
0x12c9   :  { %v4723_v57 = vpop.f32.mrb[56].mxu1 }
0x12ca   :  { %v4724_v8 = vpop.f32.mrb[57].mxu1 }
0x12cb   :  { %v4725_v61 = vadd.f32 %v4724_v8, %v4723_v57  ;;  %v4726_v41 = vpop.f32.mrb[58].mxu1  ;;  %v5328_v57 = vld [vmem:[%s7294_s16 + $0x100] sm:$0xff]  }
0x12cc   :  { %v4727_v58 = vpop.f32.mrb[59].mxu1 }
0x12cd   :  { %v3153_v50 = vadd.f32 %v4725_v61, %v4425_v52  ;;  %v4728_v60 = vadd.f32 %v4727_v58, %v4726_v41 }
0x12cf   :  { %v3156_v28 = vadd.f32 %v4728_v60, %v4425_v52  ;;  %v3167_v43 = vadd.f32 %v3153_v50, %v6964_v21  ;;  %v5304_v21 = vld [vmem:[%s7294_s16 + $0x40] sm:$0xff]  }
0x12d0   :  { %4735 = vmatprep.subr.bf16.mxu0 %v5304_v21 }
0x12d1   :  { %3175 = vadd.xlane.f32.xlu0 %v3167_v43  ;;  %v4729_v25 = vpop.f32.mrb[60].mxu1  ;;  %v3168_v49 = vadd.f32 %v3156_v28, %v6966_v56  ;;  %v5305_v56 = vld [vmem:[%s7294_s16] sm:$0xff]  }
0x12d2   :  { %v4730_v16 = vpop.f32.mrb[61].mxu1  ;;  %4736 = vmatpush3.bf16.msra.mxu0 %v5305_v56 }
0x12d3   :  { %v4731_v9 = vadd.f32 %v4730_v16, %v4729_v25  ;;  %3177 = vadd.xlane.f32.xlu1 %v3168_v49  ;;  %v4732_v51 = vpop.f32.mrb[62].mxu1  ;;  %4737 = vmatprep.subr.bf16.mxu0 %v5306_v39  ;;  %v3242_v39 = vadd.s32 16, %v5780_v33 }
0x12d4   :  { %v4733_v20 = vpop.f32.mrb[63].mxu1 }
0x12d5   :  { %v3161_v18 = vadd.f32 %v4731_v9, %v4425_v52  ;;  %v4734_v45 = vadd.f32 %v4733_v20, %v4732_v51  ;;  %v4444_v20 = vld [vmem:[%s7292_s14 + $0x1] ss:$0 sm:$0xff]  ;;  %vm4584_vm9 = vcmp.ne.s32.totalorder %v3242_v39, 16 }
0x12d6   :  { %4738 = vmatpush3.bf16.msra.mxu0 %v5307_v40  ;;  %v5330_v40 = vld [vmem:[%s7294_s16 + $0x108] sm:$0xff]   ;;  %vm7163_vm13 = vmpackc.low %vm5578_vm5, %vm4584_vm9 }
0x12d7   :  { %v3164_v17 = vadd.f32 %v4734_v45, %v4425_v52  ;;  %v3169_v4 = vadd.f32 %v3161_v18, %v6973_v7  ;;  %4739 = vmatprep.subr.bf16.mxu0 %v5308_v23  ;;  %v7100_v52 = vld [vmem:[%s7294_s16 + $0x140] sm:$0xff]  }
0x12d8   :  { %5024 = vmatprep.subr.bf16.mxu1 %v7100_v52 }
0x12d9   :  { %3179 = vadd.xlane.f32.xlu0 %v3169_v4  ;;  %v3170_v63 = vadd.f32 %v3164_v17, %v6975_v44  ;;  %v4445_v17 = vld [vmem:[%s7293_s15 + $0x1] ss:$0 sm:$0xff] }
0x12da   :  { %4740 = vmatpush3.bf16.msra.mxu0 %v5310_v12 }
0x12db   :  { %3181 = vadd.xlane.f32.xlu1 %v3170_v63  ;;  %4741 = vmatprep.subr.bf16.mxu0 %v5311_v47 }
0x12de   :  { %4742 = vmatpush3.bf16.msra.mxu0 %v5313_v46 }
0x12df   :  { %4743 = vmatprep.subr.bf16.mxu0 %v5314_v1 }
0x12e2   :  { %4744 = vmatpush3.bf16.msra.mxu0 %v5316_v55 }
0x12e3   :  { %4745 = vmatprep.subr.bf16.mxu0 %v5317_v34 }
0x12e6   :  { %4746 = vmatpush3.bf16.msra.mxu0 %v5319_v36 }
0x12e7   :  { %4747 = vmatprep.subr.bf16.mxu0 %v5320_v26  ;;  %v5579_v26 = vmov 0.0  }
0x12ea   :  { %4748 = vmatpush3.bf16.msra.mxu0 %v5322_v27 }
0x12eb   :  { %4749 = vmatprep.subr.bf16.mxu0 %v5323_v35 }
0x12ee   :  { %4750 = vmatpush3.bf16.msra.mxu0 %v5325_v37 }
0x12ef   :  { %4773 = vmatprep.subr.bf16.mxu0 %v5328_v57  ;;  %v4536_v57 = vld [vmem:[%s7295_s17 + $0x1] ss:$0 sm:$0xff] }
0x135e   :  { %v3176_v48 = vpop.xlane.xlu0 %3175 }
0x135f   :  { %v3183_v5 = vmul.f32 0.0078125, %v3176_v48 }
0x1360   :  { %v3178_v22 = vpop.xlane.xlu1 %3177 }
0x1361   :  { %v7012_v3 = vsub.f32 %v3167_v43, %v3183_v5  ;;  %v3184_v7 = vmul.f32 0.0078125, %v3178_v22 }
0x1363   :  { %v7014_v24 = vsub.f32 %v3168_v49, %v3184_v7  ;;  %v3191_v44 = vmul.f32 %v7012_v3, %v7012_v3 }
0x1365   :  { %3195 = vadd.xlane.f32.xlu0 %v3191_v44  ;;  %v3192_v10 = vmul.f32 %v7014_v24, %v7014_v24 }
0x1366   :  { %v3180_v14 = vpop.xlane.xlu0 %3179 }
0x1367   :  { %v3185_v6 = vmul.f32 0.0078125, %v3180_v14  ;;  %3197 = vadd.xlane.f32.xlu1 %v3192_v10  ;;  %v7114_v14 = vadd.s32 8, %v5780_v33 }
0x1368   :  { %v3182_v38 = vpop.xlane.xlu1 %3181 }
0x1369   :  { %v7020_v42 = vsub.f32 %v3169_v4, %v3185_v6  ;;  %v3186_v30 = vmul.f32 0.0078125, %v3182_v38  ;;  %vm4585_vm8 = vcmp.ne.s32.totalorder %v7114_v14, 15 }
0x136a   :  { %vm7146_vm11 = vmpackc.low %vm4585_vm8, %vm5578_vm5 }
0x136b   :  { %v7022_v0 = vsub.f32 %v3170_v63, %v3186_v30  ;;  %v3193_v62 = vmul.f32 %v7020_v42, %v7020_v42  ;;  %v3997_v30 = vmul.u32 2, %v7114_v14 }
0x136d   :  { %3199 = vadd.xlane.f32.xlu0 %v3193_v62  ;;  %v3194_v31 = vmul.f32 %v7022_v0, %v7022_v0 }
0x136f   :  { %3201 = vadd.xlane.f32.xlu1 %v3194_v31 }
0x1383   :  { %4093 = vperm.xlu0 %5082, %v4581_v29   ;;  %v5332_v29 = vld [vmem:[%s7294_s16 + $0xc8] sm:$0xff]  }
0x13f2   :  { %v3196_v8 = vpop.xlane.xlu0 %3195 }
0x13f3   :  { %v3203_v61 = vmul.f32 0.0078125, %v3196_v8 }
0x13f4   :  { %v3198_v41 = vpop.xlane.xlu1 %3197 }
0x13f5   :  { %v3207_v58 = vadd.f32 1e-05, %v3203_v61  ;;  %v3204_v50 = vmul.f32 0.0078125, %v3198_v41  ;;  %v5334_v61 = vld [vmem:[%s7294_s16 + $0x148] sm:$0xff]   ;;  %v5335_v41 = vld [vmem:[%s7294_s16 + $0xd0] sm:$0xff]  }
0x13f7   :  { %5504 = vrsqrt.f32 %v3207_v58  ;;  %v3208_v60 = vadd.f32 1e-05, %v3204_v50  ;;  %v5336_v50 = vld [vmem:[%s7294_s16 + $0x118] sm:$0xff]  }
0x13f9   :  { %5506 = vrsqrt.f32 %v3208_v60  ;;  %v5337_v60 = vld [vmem:[%s7294_s16 + $0x150] sm:$0xff]  }
0x13fa   :  { %v3200_v28 = vpop.xlane.xlu0 %3199 }
0x13fb   :  { %v3205_v43 = vmul.f32 0.0078125, %v3200_v28  ;;  %v5338_v28 = vld [vmem:[%s7294_s16 + $0xd8] sm:$0xff]  }
0x13fc   :  { %v3202_v25 = vpop.xlane.xlu1 %3201 }
0x13fd   :  { %v3209_v49 = vadd.f32 1e-05, %v3205_v43  ;;  %v3206_v16 = vmul.f32 0.0078125, %v3202_v25  ;;  %v5340_v43 = vld [vmem:[%s7294_s16 + $0x158] sm:$0xff]   ;;  %v5341_v25 = vld [vmem:[%s7294_s16 + $0xe0] sm:$0xff]  }
0x13ff   :  { %5508 = vrsqrt.f32 %v3209_v49  ;;  %v3210_v9 = vadd.f32 1e-05, %v3206_v16  ;;  %v5342_v49 = vld [vmem:[%s7294_s16 + $0x128] sm:$0xff]   ;;  %v5343_v16 = vld [vmem:[%s7294_s16 + $0x160] sm:$0xff]  }
0x1401   :  { %v5505_v51 = vpop.eup %5504  ;;  %5510 = vrsqrt.f32 %v3210_v9  ;;  %v5344_v9 = vld [vmem:[%s7294_s16 + $0xe8] sm:$0xff]  }
0x1402   :  { %v3215_v18 = vmul.f32 %v5505_v51, %v7012_v3  ;;  %v5345_v51 = vld [vmem:[%s7294_s16 + $0x130] sm:$0xff]  }
0x1403   :  { %v5507_v45 = vpop.eup %5506 }
0x1404   :  { %v3216_v4 = vmul.f32 %v5507_v45, %v7014_v24  ;;  %v3225_v63 = vmul.f32 %v4444_v20, %v3215_v18  ;;  %v5347_v18 = vld [vmem:[%s7294_s16 + $0xf0] sm:$0xff]   ;;  %v5348_v45 = vld [vmem:[%s7294_s16 + $0x138] sm:$0xff]  }
0x1406   :  { %v3226_v21 = vmul.f32 %v4444_v20, %v3216_v4  ;;  %v3235_v56 = vadd.f32 %v4445_v17, %v3225_v63  ;;  %v5350_v4 = vld [vmem:[%s7294_s16 + $0xf8] sm:$0xff]  }
0x1407   :  { %v5351_v63 = vld [vmem:[%s7294_s16 + $0x178] sm:$0xff]  }
0x1408   :  { %v3236_v48 = vadd.f32 %v4445_v17, %v3226_v21  ;;  %v3322_v5 = vrot.slane %v3235_v56, 7  ;;  %v3347_v53 = vrot.slane %v3235_v56, 1 }
0x1409   :  { %v5509_v22 = vpop.eup %5508 }
0x140a   :  { %v3323_v7 = vrot.slane %v3236_v48, 7  ;;  %v3372_v44 = vpack.c.bf16 %v3236_v48, %v3235_v56  ;;  %v3217_v3 = vmul.f32 %v5509_v22, %v7020_v42  ;;  %v3333_v38 = vsel %vm3321_vm3, 0.0, %v3322_v5  ;;  %v5329_v42 = vld [vmem:[%s7294_s16 + $0xc0] sm:$0xff]  }
0x140b   :  { %v5511_v10 = vpop.eup %5510  ;;  %v3348_v12 = vrot.slane %v3236_v48, 1 }
0x140c   :  { %v3218_v6 = vmul.f32 %v5511_v10, %v7022_v0  ;;  %v3324_v24 = vsel %vm3321_vm3, %v3322_v5, %v3323_v7  ;;  %3559 = vmatprep.mubr.bf16.mxu0 %v3372_v44  ;;  %v3227_v62 = vmul.f32 %v4444_v20, %v3217_v3  ;;  %v3243_v0 = vadd.s32 24, %v5780_v33  ;;  %v4446_v44 = vld [vmem:[%s7295_s17] ss:$0 sm:$0xff] }
0x140d   :  { %v4473_v31 = vpack.c.bf16 %v3324_v24, %v3333_v38  ;;  %v3349_v19 = vsel %vm3346_vm7, %v3347_v53, %v3348_v12 }
0x140e   :  { %v3228_v23 = vmul.f32 %v4444_v20, %v3218_v6  ;;  %v3237_v11 = vadd.f32 %v4445_v17, %v3227_v62  ;;  %vm4586_vm10 = vcmp.ne.s32.totalorder %v3243_v0, 31  ;;  %v5346_v20 = vld [vmem:[%s7294_s16 + $0x168] sm:$0xff]  }
0x140f   :  { %4474 = vmatmul.mubr.msk.bf16.vlgmr.msra.gmra.mrb[64].mxu0 %vm7120_vm6, %v4473_v31  ;;  %vm7153_vm12 = vmpackc.low %vm4586_vm10, %vm5578_vm5 }
0x1410   :  { %v3238_v47 = vadd.f32 %v4445_v17, %v3228_v23  ;;  %v3350_v46 = vrot.slane %v3237_v11, 1  ;;  %4774 = vmatpush3.bf16.msra.mxu0 %v5329_v42  ;;  %v3325_v1 = vrot.slane %v3237_v11, 7  ;;  %v5349_v17 = vld [vmem:[%s7294_s16 + $0x170] sm:$0xff]  }
0x1411   :  { %4775 = vmatprep.subr.bf16.mxu0 %v5330_v40 }
0x1412   :  { %v3352_v55 = vrot.slane %v3238_v47, 1  ;;  %v3375_v34 = vpack.c.bf16 %v3238_v47, %v3237_v11  ;;  %v3351_v36 = vsel %vm3346_vm7, %v3348_v12, %v3350_v46  ;;  %v3327_v27 = vrot.slane %v3238_v47, 7 }
0x1413   :  { %v4481_v15 = vpack.c.bf16 %v3351_v36, %v3349_v19  ;;  %v3326_v13 = vsel %vm3321_vm3, %v3323_v7, %v3325_v1 }
0x1414   :  { %v3358_v35 = vsel %vm3346_vm7, %v3352_v55, 0.0  ;;  %3567 = vmatprep.mubr.bf16.mxu0 %v3375_v34  ;;  %v3353_v54 = vsel %vm3346_vm7, %v3350_v46, %v3352_v55  ;;  %4776 = vmatpush3.bf16.msra.mxu0 %v5332_v29  ;;  %v3328_v59 = vsel %vm3321_vm3, %v3325_v1, %v3327_v27 }
0x1415   :  { %5020 = vmatprep.mubr.msk.bf16.mxu1 %vm7146_vm11, %v4481_v15  ;;  %v4485_v8 = vpack.c.bf16 %v3358_v35, %v3353_v54  ;;  %4777 = vmatprep.subr.bf16.mxu0 %v5333_v2  ;;  %v4477_v58 = vpack.c.bf16 %v3328_v59, %v3326_v13 }
0x1417   :  { %5021 = vmatmul.mubr.msk.bf16.vlgmr.msra.gmra.mrb[64].mxu1 %vm7153_vm12, %v4485_v8  ;;  %4478 = vmatmul.mubr.msk.bf16.gmra.mrb[68].mxu0 %vm7163_vm13, %v4477_v58 }
0x1418   :  { %5025 = vmatpush3.bf16.msra.mxu1 %v7100_v52  ;;  %4778 = vmatpush3.bf16.msra.mxu0 %v5335_v41  ;;  %v5339_v52 = vld [vmem:[%s7294_s16 + $0x120] sm:$0xff]  }
0x1419   :  { %5026 = vmatprep.subr.bf16.mxu1 %v5334_v61  ;;  %4779 = vmatprep.subr.bf16.mxu0 %v5336_v50 }
0x141c   :  { %5027 = vmatpush3.bf16.msra.mxu1 %v5334_v61  ;;  %4780 = vmatpush3.bf16.msra.mxu0 %v5338_v28 }
0x141d   :  { %5028 = vmatprep.subr.bf16.mxu1 %v5337_v60  ;;  %4781 = vmatprep.subr.bf16.mxu0 %v5339_v52 }
0x1420   :  { %5029 = vmatpush3.bf16.msra.mxu1 %v5337_v60  ;;  %4782 = vmatpush3.bf16.msra.mxu0 %v5341_v25 }
0x1421   :  { %5030 = vmatprep.subr.bf16.mxu1 %v5340_v43  ;;  %4783 = vmatprep.subr.bf16.mxu0 %v5342_v49 }
0x1424   :  { %5031 = vmatpush3.bf16.msra.mxu1 %v5340_v43  ;;  %4784 = vmatpush3.bf16.msra.mxu0 %v5344_v9 }
0x1425   :  { %5032 = vmatprep.subr.bf16.mxu1 %v5343_v16  ;;  %4785 = vmatprep.subr.bf16.mxu0 %v5345_v51 }
0x1428   :  { %5033 = vmatpush3.bf16.msra.mxu1 %v5343_v16  ;;  %4786 = vmatpush3.bf16.msra.mxu0 %v5347_v18  ;;  %v3996_v18 = vmul.u32 2, %v5780_v33 }
0x1429   :  { %5034 = vmatprep.subr.bf16.mxu1 %v5346_v20  ;;  %4787 = vmatprep.subr.bf16.mxu0 %v5348_v45 }
0x142c   :  { %5035 = vmatpush3.bf16.msra.mxu1 %v5346_v20  ;;  %4788 = vmatpush3.bf16.msra.mxu0 %v5350_v4  ;;  %v3995_v20 = vand.u32 127, %v145_v32 }
0x142d   :  { %5036 = vmatprep.subr.bf16.mxu1 %v5349_v17 }
0x142e   :  { %vm3998_vm14 = vcmp.eq.s32.totalorder %v3995_v20, %v3996_v18  ;;  %vm7248_vm15 = vcmp.eq.s32.totalorder %v3995_v20, %v3997_v30 }
0x1430   :  { %5037 = vmatpush3.bf16.msra.mxu1 %v5349_v17  ;;  %v4577_v17 = vsel %vm3998_vm14, 1.0, %v5579_v26 }
0x1431   :  { %5038 = vmatprep.subr.bf16.mxu1 %v5351_v63 }
0x1434   :  { %5039 = vmatpush3.bf16.msra.mxu1 %v5351_v63 }
0x14e2   :  { %v4751_v21 = vpop.f32.mrb[64].mxu0 }
0x14e3   :  { %v4752_v56 = vpop.f32.mrb[65].mxu0 }
0x14e4   :  { %v4753_v48 = vadd.f32 %v4752_v56, %v4751_v21  ;;  %v4754_v5 = vpop.f32.mrb[66].mxu0 }
0x14e5   :  { %v4755_v22 = vpop.f32.mrb[67].mxu0 }
0x14e6   :  { %v4756_v7 = vadd.f32 %v4755_v22, %v4754_v5  ;;  %v3562_v10 = vadd.f32 %v4753_v48, %v4446_v44 }
0x14e8   :  { %v3565_v31 = vadd.f32 %v4756_v7, %v4446_v44 }
0x14ea   :  { %v5022_v3 = vpop.f32.mrb[64].mxu1  ;;  %v4757_v6 = vpop.f32.mrb[68].mxu0 }
0x14eb   :  { %v3610_v24 = vpop.f32.mrb[65].mxu1  ;;  %v4758_v38 = vpop.f32.mrb[69].mxu0 }
0x14ec   :  { %v3611_v62 = vadd.f32 %v3610_v24, %v3562_v10  ;;  %v5023_v42 = vpop.f32.mrb[66].mxu1  ;;  %v4759_v39 = vadd.f32 %v4758_v38, %v4757_v6  ;;  %v4760_v0 = vpop.f32.mrb[70].mxu0 }
0x14ed   :  { %v3613_v40 = vpop.f32.mrb[67].mxu1  ;;  %v4761_v11 = vpop.f32.mrb[71].mxu0 }
0x14ee   :  { %v3625_v23 = vmax.f32 %v3611_v62, 0.0  ;;  %v3614_v12 = vadd.f32 %v3613_v40, %v3565_v31  ;;  %v3570_v47 = vadd.f32 %v4759_v39, %v4446_v44  ;;  %v4762_v53 = vadd.f32 %v4761_v11, %v4760_v0 }
0x14f0   :  { %v3684_v46 = vrot.slane %v3625_v23, 7  ;;  %v3626_v29 = vmax.f32 %v3614_v12, 0.0  ;;  %v3619_v1 = vadd.f32 %v5022_v3, %v3570_v47  ;;  %v3573_v2 = vadd.f32 %v4762_v53, %v4446_v44 }
0x14f1   :  { %v3700_v55 = vrot.slane %v3625_v23, 1 }
0x14f2   :  { %v3685_v34 = vrot.slane %v3626_v29, 7  ;;  %v3701_v19 = vrot.slane %v3626_v29, 1  ;;  %v3717_v36 = vpack.c.bf16 %v3626_v29, %v3625_v23  ;;  %v3627_v15 = vmax.f32 %v3619_v1, 0.0 }
0x14f3   :  { %v3622_v27 = vadd.f32 %v5023_v42, %v3573_v2  ;;  %v3695_v35 = vsel %vm3321_vm3, 0.0, %v3684_v46 }
0x14f4   :  { %v3686_v54 = vsel %vm3321_vm3, %v3684_v46, %v3685_v34  ;;  %3904 = vmatprep.mubr.bf16.mxu0 %v3717_v36  ;;  %v3702_v13 = vsel %vm3346_vm7, %v3700_v55, %v3701_v19  ;;  %v3687_v59 = vrot.slane %v3627_v15, 7  ;;  %v3703_v8 = vrot.slane %v3627_v15, 1 }
0x14f5   :  { %v3628_v61 = vmax.f32 %v3622_v27, 0.0  ;;  %v4563_v41 = vpack.c.bf16 %v3686_v54, %v3695_v35 }
0x14f6   :  { %v3704_v28 = vsel %vm3346_vm7, %v3701_v19, %v3703_v8  ;;  %v3688_v43 = vsel %vm3321_vm3, %v3685_v34, %v3687_v59 }
0x14f7   :  { %v3689_v58 = vrot.slane %v3628_v61, 7  ;;  %v3705_v50 = vrot.slane %v3628_v61, 1  ;;  %4564 = vmatmul.mubr.msk.bf16.vlgmr.msra.gmra.mrb[72].mxu0 %vm7120_vm6, %v4563_v41  ;;  %v3720_v60 = vpack.c.bf16 %v3628_v61, %v3627_v15  ;;  %v4571_v52 = vpack.c.bf16 %v3704_v28, %v3702_v13 }
0x14f9   :  { %v3711_v25 = vsel %vm3346_vm7, %v3705_v50, 0.0  ;;  %3912 = vmatprep.mubr.bf16.mxu0 %v3720_v60  ;;  %v3706_v49 = vsel %vm3346_vm7, %v3703_v8, %v3705_v50  ;;  %v3690_v16 = vsel %vm3321_vm3, %v3687_v59, %v3689_v58  ;;  %5040 = vmatprep.mubr.msk.bf16.mxu1 %vm7146_vm11, %v4571_v52  ;;  %v4578_v59 = vsel %vm7248_vm15, 1.0, %v5579_v26  ;;  %v4085_v50 = vld [vmem:[%s7296_s18] sm:$0x3]  ;;  %v4094_v60 = vpop.permute.xlu0 %4093 }
0x14fa   :  { %v4575_v9 = vpack.c.bf16 %v3711_v25, %v3706_v49  ;;  %v4567_v51 = vpack.c.bf16 %v3690_v16, %v3688_v43  ;;  %v5580_v8 = vmov 0.0|0.0  }
0x14fc   :  { %5041 = vmatmul.mubr.msk.bf16.vlgmr.msra.gmra.mrb[68].mxu1 %vm7153_vm12, %v4575_v9 }
0x14fd   :  { %5052 = vmatprep.mubr.msk.f32.mxu1 %vm571_vm0, %v4577_v17 }
0x14ff   :  { %4568 = vmatmul.mubr.msk.bf16.gmra.mrb[76].mxu0 %vm7163_vm13, %v4567_v51 }
0x15ca   :  { %v4789_v37 = vpop.f32.mrb[72].mxu0 }
0x15cb   :  { %v4790_v4 = vpop.f32.mrb[73].mxu0 }
0x15cc   :  { %v4791_v14 = vadd.f32 %v4790_v4, %v4789_v37  ;;  %v4792_v63 = vpop.f32.mrb[74].mxu0 }
0x15cd   :  { %v4793_v32 = vpop.f32.mrb[75].mxu0 }
0x15ce   :  { %v4794_v21 = vadd.f32 %v4793_v32, %v4792_v63  ;;  %v3907_v33 = vadd.f32 %v4791_v14, %v4536_v57 }
0x15cf   :  { %v5042_v56 = vpop.f32.mrb[68].mxu1 }
0x15d0   :  { %v3955_v48 = vpop.f32.mrb[69].mxu1  ;;  %v3910_v5 = vadd.f32 %v4794_v21, %v4536_v57 }
0x15d1   :  { %v3956_v22 = vadd.f32 %v3955_v48, %v3907_v33  ;;  %v5043_v7 = vpop.f32.mrb[70].mxu1 }
0x15d2   :  { %v3958_v44 = vpop.f32.mrb[71].mxu1  ;;  %v4795_v3 = vpop.f32.mrb[76].mxu0 }
0x15d3   :  { %v3970_v10 = vmax.f32 %v3956_v22, 0.0  ;;  %v3959_v6 = vadd.f32 %v3958_v44, %v3910_v5  ;;  %v4796_v24 = vpop.f32.mrb[77].mxu0 }
0x15d4   :  { %v4797_v38 = vadd.f32 %v4796_v24, %v4795_v3  ;;  %v4798_v62 = vpop.f32.mrb[78].mxu0 }
0x15d5   :  { %v3971_v42 = vmax.f32 %v3959_v6, 0.0  ;;  %v4799_v31 = vpop.f32.mrb[79].mxu0  ;;  %v3978_v40 = vrot.slane %v3970_v10, 1 }
0x15d6   :  { %v3915_v39 = vadd.f32 %v4797_v38, %v4536_v57  ;;  %v4800_v0 = vadd.f32 %v4799_v31, %v4798_v62 }
0x15d7   :  { %v3979_v23 = vrot.slane %v3971_v42, 1 }
0x15d8   :  { %v3964_v11 = vadd.f32 %v5042_v56, %v3915_v39  ;;  %v3918_v12 = vadd.f32 %v4800_v0, %v4536_v57 }
0x15d9   :  { %v3980_v47 = vsel %vm3346_vm7, %v3978_v40, %v3979_v23 }
0x15da   :  { %v3972_v53 = vmax.f32 %v3964_v11, 0.0  ;;  %v3967_v46 = vadd.f32 %v5043_v7, %v3918_v12  ;;  %v3990_v29 = vmax.f32 %v3970_v10, %v3980_v47 }
0x15dc   :  { %v3981_v1 = vrot.slane %v3972_v53, 1  ;;  %v3973_v2 = vmax.f32 %v3967_v46, 0.0 }
0x15de   :  { %v3983_v55 = vrot.slane %v3973_v2, 1  ;;  %v3982_v34 = vsel %vm3346_vm7, %v3979_v23, %v3981_v1 }
0x15df   :  { %v3991_v19 = vmax.f32 %v3971_v42, %v3982_v34 }
0x15e0   :  { %v3984_v36 = vsel %vm3346_vm7, %v3981_v1, %v3983_v55  ;;  %v3989_v15 = vsel %vm3346_vm7, %v3983_v55, %v3973_v2 }
0x15e1   :  { %v5062_v27 = vpack.c.bf16 %v3991_v19, %v3990_v29  ;;  %v3992_v35 = vmax.f32 %v3972_v53, %v3984_v36  ;;  %v3993_v54 = vmax.f32 %v3973_v2, %v3989_v15 }
0x15e3   :  { %5063 = vmatprep.subr.bf16.mxu1 %v5062_v27  ;;  %v5066_v13 = vpack.c.bf16 %v3993_v54, %v3992_v35 }
0x15e4   :  { %5065 = vmatpush3.bf16.msra.mxu1 %v5062_v27 }
0x15e5   :  { %5067 = vmatprep.subr.bf16.mxu1 %v5066_v13 }
0x15e8   :  { %5069 = vmatpush3.bf16.msra.mxu1 %v5066_v13 }
0x15e9   :  { %5070 = vmatprep.subr.bf16.mxu1 %v5580_v8 }
0x15eb   :  { %5053 = vmatmul.mubr.msk.f32.vlgmr.msra.gmra.mrb[72].mxu1 %vm571_vm0, %v4578_v59 }
0x15ec   :  { %5059 = vmatprep.mubr.msk.f32.mxu1 %vm5581_vm1, %v5579_v26 }
0x16be   :  { %v5054_v61 = vpop.f32.mrb[72].mxu1 }
0x16bf   :  { %v4076_v41 = vpop.f32.mrb[73].mxu1 }
0x16c0   :  { %v5071_v58 = vpack.c.bf16 %v5054_v61, %v4076_v41 }
0x16c2   :  { %5072 = vmatpush3.bf16.msra.mxu1 %v5071_v58 }
0x16c5   :  { %5060 = vmatmul.mubr.msk.f32.vlgmr.msra.gmra.mrb[74].mxu1 %vm4096_vm2, %v4085_v50 }
0x1798   :  { %v4166_v28 = vpop.f32.mrb[74].mxu1 }
0x1799   :  { %v4167_v52 = vadd.f32 %v4166_v28, %v4094_v60  ;;  %v5061_v43 = vpop.f32.mrb[75].mxu1 }
0x179b   :  { %5512 = vtanh.f32 %v4167_v52 }
0x17a5   :  { %v5513_v25 = vpop.eup %5512 }
0x17a6   :  { %4171 = vst [vmem:[#allocation3] sm:$0x3] %v5513_v25 }
0x17a7   :  { %5561 = shalt.err (!%p5558_p4)
}
0x17a8   :  { %s5562_s3 = scalar_lea.hbm %s7298_s20, 32 }
0x17a9   :  { %p5563_p5 = scmp.ne.s32.totalorder %s7298_s20, %s5562_s3  ;;  %p5566_p6 = scmp.lt.u32.totalorder %s5562_s3, %s7298_s20 }
0x17ab   :  { %p5568_p7 = pnand %p5566_p6, %p5563_p5 }
0x17ad   :  { %5571 = shalt.err (!%p5568_p7)
}
0x17ae   :  { %4181 = dma.vmem_to_hbm [thread:$0]  %s4179_s1, 32, %s7298_s20, [#allocation4]  }
0x17af   :  { %5572 = dma.done.wait [#allocation4], 32  }
0x17b0   :  { %5573 = vsyncadd [#allocation4], 4294967264 }
0x17b1   :  { %4185 = vsyncpa [#allocation4], 1 }

</bundles_post_ra>
